<compile_context>
chip_gen: v7x
topology: tpu7x:2x2x1
jax: 0.10.0
libtpu: 0.0.40
codegen_flags: <defaults>
</compile_context>

<pallas_src>
import jax
import jax.numpy as jnp
from jax import lax
from jax.experimental import pallas as pl
from jax.experimental.pallas import tpu as pltpu

# ---------------- small synthetic SiglipVisionConfig ----------------
BATCH = 2
CHANNELS = 3
IMAGE_SIZE = 32
PATCH_SIZE = 8
HIDDEN = 128
HEADS = 4
HEAD_DIM = HIDDEN // HEADS
INTERMEDIATE = 256
NUM_LAYERS = 2
EPS = 1e-6
NUM_PATCHES = (IMAGE_SIZE // PATCH_SIZE) ** 2          # 16
PATCH_DIM = CHANNELS * PATCH_SIZE * PATCH_SIZE         # 192
PATCH_DIM_PAD = 256                                    # padded to 2 full lane-vregs
TOKENS = BATCH * NUM_PATCHES                           # 32 (batch folded into M)


# ---------------- in-kernel helpers ----------------
def _layernorm(x, w, b, eps=EPS):
    # x: (M, D) f32; w, b: (1, D) f32
    mean = jnp.mean(x, axis=-1, keepdims=True)
    var = jnp.mean(jnp.square(x - mean), axis=-1, keepdims=True)
    return (x - mean) * lax.rsqrt(var + eps) * w + b


# ---------------- fused Pallas kernel (whole batch in one step) ----------------
def fused_vision_kernel(patch_ref,            # (B*N, 256)    bf16  (zero-padded im2col)
                        conv_w_ref,           # (256, D)      bf16  (zero-padded rows)
                        embed_bias_ref,       # (B*N, D)      f32   (pos_emb + conv bias, tiled)
                        ln_ref,               # (L, 4, D)     f32   [ln1_w, ln1_b, ln2_w, ln2_b]
                        wqkv_ref,             # (L, D, 3D)    bf16  (Wq pre-scaled by head_dim^-0.5)
                        bqkv_ref,             # (L, 1, 3D)    f32   (bq pre-scaled)
                        wo_ref,               # (L, D, D)     bf16
                        bo_ref,               # (L, 1, D)     f32
                        w1_ref,               # (L, D, I)     bf16
                        b1_ref,               # (L, 1, I)     f32
                        w2_ref,               # (L, I, D)     bf16
                        b2_ref,               # (L, 1, D)     f32
                        post_ln_ref,          # (2, D)        f32
                        out_ref):             # (B*N, D)      f32
    bf16 = jnp.bfloat16
    f32 = jnp.float32

    # ---- patch embedding: im2col patches @ conv_w + (conv_b + pos_emb) ----
    x = jnp.dot(patch_ref[...], conv_w_ref[...],
                preferred_element_type=f32) + embed_bias_ref[...]          # (B*N, D) f32

    # ---- encoder layers (static unroll; weights stacked along L) ----
    for l in range(NUM_LAYERS):
        lnp = ln_ref[l]                                                    # (4, D) f32

        # --- self-attention block ---
        h = _layernorm(x, lnp[0:1], lnp[1:2])
        qkv = jnp.dot(h.astype(bf16), wqkv_ref[l],
                      preferred_element_type=f32) + bqkv_ref[l]            # (B*N, 3D) f32
        q = qkv[:, 0 * HIDDEN:1 * HIDDEN]
        k = qkv[:, 1 * HIDDEN:2 * HIDDEN]
        v = qkv[:, 2 * HIDDEN:3 * HIDDEN]

        # single XLU transpose per layer; per-head score matmuls slice it
        kT = k.T                                                           # (D, B*N) f32

        ctx_imgs = []
        for b in range(BATCH):                                             # attention is per-image
            rows = slice(b * NUM_PATCHES, (b + 1) * NUM_PATCHES)
            head_ctx = []
            for hh in range(HEADS):                                        # heads unrolled (static slices)
                cols = slice(hh * HEAD_DIM, (hh + 1) * HEAD_DIM)
                qh = q[rows, cols].astype(bf16)                            # (N, hd)
                kTh = kT[cols, rows].astype(bf16)                          # (hd, N)
                vh = v[rows, cols].astype(bf16)                            # (N, hd)
                # scores = qh @ kh^T (scale already folded into Wq/bq)
                s = jnp.dot(qh, kTh, preferred_element_type=f32)           # (N, N) f32
                s = s - jnp.max(s, axis=-1, keepdims=True)
                e = jnp.exp(s)
                p = e * pl.reciprocal(jnp.sum(e, axis=-1, keepdims=True), approx=True)
                head_ctx.append(jnp.dot(p.astype(bf16), vh,
                                        preferred_element_type=f32))       # (N, hd)
            ctx_imgs.append(jnp.concatenate(head_ctx, axis=1))             # (N, D)
        ctx = jnp.concatenate(ctx_imgs, axis=0).astype(bf16)               # (B*N, D)

        # single full-K output projection for the whole batch
        attn = jnp.dot(ctx, wo_ref[l], preferred_element_type=f32) + bo_ref[l]
        x = x + attn

        # --- MLP block ---
        h = _layernorm(x, lnp[2:3], lnp[3:4])
        m = jnp.dot(h.astype(bf16), w1_ref[l],
                    preferred_element_type=f32) + b1_ref[l]                # (B*N, I) f32
        m = jax.nn.gelu(m, approximate=True)                               # gelu_pytorch_tanh, f32
        m = jnp.dot(m.astype(bf16), w2_ref[l],
                    preferred_element_type=f32) + b2_ref[l]                # (B*N, D) f32
        x = x + m

    # ---- post layernorm ----
    out_ref[...] = _layernorm(x, post_ln_ref[0:1], post_ln_ref[1:2])


# ---------------- wrapper ----------------
def siglip_forward(patches_flat, embed_bias_full, params):
    M = patches_flat.shape[0]                       # B*N
    weight_args = (params['conv_w'], embed_bias_full,
                   params['ln'], params['wqkv'], params['bqkv'],
                   params['wo'], params['bo'],
                   params['w1'], params['b1'], params['w2'], params['b2'],
                   params['post_ln'])
    vmem = pltpu.MemorySpace.VMEM
    return pl.pallas_call(
        fused_vision_kernel,
        out_shape=jax.ShapeDtypeStruct((M, HIDDEN), jnp.float32),
        # no grid: whole batch in one step; whole arrays resident in VMEM
        in_specs=[pl.BlockSpec(memory_space=vmem)] * (1 + len(weight_args)),
        out_specs=pl.BlockSpec(memory_space=vmem),
    )(patches_flat, *weight_args)


def im2col(pixel_values, patch):
    # NCHW -> (B, num_patches, C*P*P) matching Conv2d(kernel=stride=P) weight flattening.
    B, C, H, W = pixel_values.shape
    x = pixel_values.reshape(B, C, H // patch, patch, W // patch, patch)
    x = x.transpose(0, 2, 4, 1, 3, 5)                 # (B, H/P, W/P, C, P, P)
    return x.reshape(B, (H // patch) * (W // patch), C * patch * patch)


@jax.jit
def siglip_vision_model(pixel_values, params):
    B = pixel_values.shape[0]
    patches = im2col(pixel_values, PATCH_SIZE)                                # (B, N, 192) f32
    patches = jnp.pad(patches, ((0, 0), (0, 0), (0, PATCH_DIM_PAD - PATCH_DIM)))
    patches_flat = patches.reshape(B * NUM_PATCHES, PATCH_DIM_PAD).astype(jnp.bfloat16)
    embed_bias_full = jnp.tile(params['embed_bias'], (B, 1))                  # (B*N, D) f32
    out_flat = siglip_forward(patches_flat, embed_bias_full, params)          # (B*N, D)
    return out_flat.reshape(B, NUM_PATCHES, HIDDEN)


# ---------------- deterministic parameter init ----------------
def init_params(key):
    def nrm(k, shape, scale=0.02):
        return scale * jax.random.normal(k, shape, jnp.float32)

    keys = iter(jax.random.split(key, 4 + NUM_LAYERS * 16))
    bf16 = jnp.bfloat16

    # PyTorch Conv2d weight (D, C, P, P) -> flattened (C*P*P, D), rows zero-padded to 256
    conv_w_pt = nrm(next(keys), (HIDDEN, CHANNELS, PATCH_SIZE, PATCH_SIZE))
    conv_w = conv_w_pt.reshape(HIDDEN, -1).T
    conv_w = jnp.pad(conv_w, ((0, PATCH_DIM_PAD - PATCH_DIM), (0, 0)))        # (256, D)
    conv_b = nrm(next(keys), (HIDDEN,))
    pos_emb = nrm(next(keys), (NUM_PATCHES, HIDDEN))
    embed_bias = pos_emb + conv_b[None, :]            # fold conv bias into the positional add

    scale = HEAD_DIM ** -0.5
    ln_l, wqkv_l, bqkv_l, wo_l, bo_l, w1_l, b1_l, w2_l, b2_l = ([] for _ in range(9))
    for _ in range(NUM_LAYERS):
        ln1_w = jnp.ones((HIDDEN,), jnp.float32); ln1_b = jnp.zeros((HIDDEN,), jnp.float32)
        wq = nrm(next(keys), (HIDDEN, HIDDEN)) * scale   # attention scale folded into Wq
        bq = nrm(next(keys), (HIDDEN,)) * scale          # ... and bq
        wk = nrm(next(keys), (HIDDEN, HIDDEN)); bk = nrm(next(keys), (HIDDEN,))
        wv = nrm(next(keys), (HIDDEN, HIDDEN)); bv = nrm(next(keys), (HIDDEN,))
        wo = nrm(next(keys), (HIDDEN, HIDDEN)); bo = nrm(next(keys), (HIDDEN,))
        ln2_w = jnp.ones((HIDDEN,), jnp.float32); ln2_b = jnp.zeros((HIDDEN,), jnp.float32)
        w1 = nrm(next(keys), (HIDDEN, INTERMEDIATE)); b1 = nrm(next(keys), (INTERMEDIATE,))
        w2 = nrm(next(keys), (INTERMEDIATE, HIDDEN)); b2 = nrm(next(keys), (HIDDEN,))

        ln_l.append(jnp.stack([ln1_w, ln1_b, ln2_w, ln2_b]))          # (4, D)
        wqkv_l.append(jnp.concatenate([wq, wk, wv], axis=1))          # (D, 3D)
        bqkv_l.append(jnp.concatenate([bq, bk, bv])[None, :])         # (1, 3D)
        wo_l.append(wo); bo_l.append(bo[None, :])
        w1_l.append(w1); b1_l.append(b1[None, :])
        w2_l.append(w2); b2_l.append(b2[None, :])

    post_ln = jnp.stack([jnp.ones((HIDDEN,), jnp.float32),
                         jnp.zeros((HIDDEN,), jnp.float32)])          # (2, D)

    return dict(
        conv_w=conv_w.astype(bf16),            # (256, D)    bf16
        embed_bias=embed_bias,                 # (N, D)      f32
        ln=jnp.stack(ln_l),                    # (L, 4, D)   f32
        wqkv=jnp.stack(wqkv_l).astype(bf16),   # (L, D, 3D)  bf16
        bqkv=jnp.stack(bqkv_l),                # (L, 1, 3D)  f32
        wo=jnp.stack(wo_l).astype(bf16),       # (L, D, D)   bf16
        bo=jnp.stack(bo_l),                    # (L, 1, D)   f32
        w1=jnp.stack(w1_l).astype(bf16),       # (L, D, I)   bf16
        b1=jnp.stack(b1_l),                    # (L, 1, I)   f32
        w2=jnp.stack(w2_l).astype(bf16),       # (L, I, D)   bf16
        b2=jnp.stack(b2_l),                    # (L, 1, D)   f32
        post_ln=post_ln,                       # (2, D)      f32
    )


if __name__ == "__main__":
    key = jax.random.PRNGKey(0)
    pkey, wkey = jax.random.split(key)
    pixel_values = jax.random.normal(
        pkey, (BATCH, CHANNELS, IMAGE_SIZE, IMAGE_SIZE), jnp.float32)
    params = init_params(wkey)

    out = siglip_vision_model(pixel_values, params)
    jax.block_until_ready(out)

    assert out.shape == (BATCH, NUM_PATCHES, HIDDEN), out.shape
    assert bool(jnp.all(jnp.isfinite(out)))
    print("KERNEL_OK")
</pallas_src>

<mosaic_0001>
module attributes {stable_mosaic.version = 11 : i64} {
  func.func @fused_vision_kernel(%arg0: memref<32x256xbf16, #tpu.memory_space<vmem>>, %arg1: memref<256x128xbf16, #tpu.memory_space<vmem>>, %arg2: memref<32x128xf32, #tpu.memory_space<vmem>>, %arg3: memref<2x4x128xf32, #tpu.memory_space<vmem>>, %arg4: memref<2x128x384xbf16, #tpu.memory_space<vmem>>, %arg5: memref<2x1x384xf32, #tpu.memory_space<vmem>>, %arg6: memref<2x128x128xbf16, #tpu.memory_space<vmem>>, %arg7: memref<2x1x128xf32, #tpu.memory_space<vmem>>, %arg8: memref<2x128x256xbf16, #tpu.memory_space<vmem>>, %arg9: memref<2x1x256xf32, #tpu.memory_space<vmem>>, %arg10: memref<2x256x128xbf16, #tpu.memory_space<vmem>>, %arg11: memref<2x1x128xf32, #tpu.memory_space<vmem>>, %arg12: memref<2x128xf32, #tpu.memory_space<vmem>>, %arg13: memref<32x128xf32, #tpu.memory_space<vmem>>) attributes {dimension_semantics = [], scalar_prefetch = 0 : i64, scratch_operands = 0 : i64, tpu.core_type = #tpu.core_type<tc>} {
    %c0 = arith.constant 0 : index
    %c0_0 = arith.constant 0 : index
    %0 = vector.load %arg0[%c0, %c0_0] : memref<32x256xbf16, #tpu.memory_space<vmem>>, vector<32x256xbf16>
    %c0_1 = arith.constant 0 : index
    %c0_2 = arith.constant 0 : index
    %1 = vector.load %arg1[%c0_1, %c0_2] : memref<256x128xbf16, #tpu.memory_space<vmem>>, vector<256x128xbf16>
    %cst = arith.constant dense<0.000000e+00> : vector<32x128xf32>
    %2 = tpu.matmul %0, %1, %cst {dimension_numbers = #tpu.dot_dimension_numbers<[1], [0], [0], [1], [0, 0, 1, 1], [], []>} : vector<32x256xbf16>, vector<256x128xbf16>, vector<32x128xf32> -> vector<32x128xf32>
    %c0_3 = arith.constant 0 : index
    %c0_4 = arith.constant 0 : index
    %3 = vector.load %arg2[%c0_3, %c0_4] : memref<32x128xf32, #tpu.memory_space<vmem>>, vector<32x128xf32>
    %4 = arith.addf %2, %3 : vector<32x128xf32>
    %c0_5 = arith.constant 0 : index
    %c0_6 = arith.constant 0 : index
    %c0_7 = arith.constant 0 : index
    %5 = vector.load %arg3[%c0_5, %c0_6, %c0_7] : memref<2x4x128xf32, #tpu.memory_space<vmem>>, vector<1x4x128xf32>
    %6 = vector.shape_cast %5 : vector<1x4x128xf32> to vector<4x128xf32>
    %7 = vector.extract_strided_slice %6 {offsets = [0, 0], sizes = [1, 128], strides = [1, 1]} : vector<4x128xf32> to vector<1x128xf32>
    %8 = vector.extract_strided_slice %6 {offsets = [1, 0], sizes = [1, 128], strides = [1, 1]} : vector<4x128xf32> to vector<1x128xf32>
    %cst_8 = arith.constant dense<0.000000e+00> : vector<32xf32>
    %9 = vector.multi_reduction <add>, %4, %cst_8 [1] : vector<32x128xf32> to vector<32xf32>
    %10 = vector.shape_cast %9 : vector<32xf32> to vector<32x1xf32>
    %cst_9 = arith.constant 1.280000e+02 : f32
    %11 = vector.broadcast %cst_9 : f32 to vector<32x1xf32>
    %12 = arith.divf %10, %11 : vector<32x1xf32>
    %13 = vector.broadcast %12 : vector<32x1xf32> to vector<32x128xf32>
    %14 = arith.subf %4, %13 : vector<32x128xf32>
    %15 = arith.mulf %14, %14 : vector<32x128xf32>
    %cst_10 = arith.constant dense<0.000000e+00> : vector<32xf32>
    %16 = vector.multi_reduction <add>, %15, %cst_10 [1] : vector<32x128xf32> to vector<32xf32>
    %17 = vector.shape_cast %16 : vector<32xf32> to vector<32x1xf32>
    %cst_11 = arith.constant 1.280000e+02 : f32
    %18 = vector.broadcast %cst_11 : f32 to vector<32x1xf32>
    %19 = arith.divf %17, %18 : vector<32x1xf32>
    %20 = vector.broadcast %12 : vector<32x1xf32> to vector<32x128xf32>
    %21 = arith.subf %4, %20 : vector<32x128xf32>
    %cst_12 = arith.constant 9.99999997E-7 : f32
    %22 = vector.broadcast %cst_12 : f32 to vector<32x1xf32>
    %23 = arith.addf %19, %22 : vector<32x1xf32>
    %24 = math.rsqrt %23 : vector<32x1xf32>
    %25 = vector.broadcast %24 : vector<32x1xf32> to vector<32x128xf32>
    %26 = arith.mulf %21, %25 : vector<32x128xf32>
    %27 = vector.broadcast %7 : vector<1x128xf32> to vector<32x128xf32>
    %28 = arith.mulf %26, %27 : vector<32x128xf32>
    %29 = vector.broadcast %8 : vector<1x128xf32> to vector<32x128xf32>
    %30 = arith.addf %28, %29 : vector<32x128xf32>
    %31 = arith.truncf %30 : vector<32x128xf32> to vector<32x128xbf16>
    %c0_13 = arith.constant 0 : index
    %c0_14 = arith.constant 0 : index
    %c0_15 = arith.constant 0 : index
    %32 = vector.load %arg4[%c0_13, %c0_14, %c0_15] : memref<2x128x384xbf16, #tpu.memory_space<vmem>>, vector<1x128x384xbf16>
    %33 = vector.shape_cast %32 : vector<1x128x384xbf16> to vector<128x384xbf16>
    %cst_16 = arith.constant dense<0.000000e+00> : vector<32x384xf32>
    %34 = tpu.matmul %31, %33, %cst_16 {dimension_numbers = #tpu.dot_dimension_numbers<[1], [0], [0], [1], [0, 0, 1, 1], [], []>} : vector<32x128xbf16>, vector<128x384xbf16>, vector<32x384xf32> -> vector<32x384xf32>
    %c0_17 = arith.constant 0 : index
    %c0_18 = arith.constant 0 : index
    %c0_19 = arith.constant 0 : index
    %35 = vector.load %arg5[%c0_17, %c0_18, %c0_19] : memref<2x1x384xf32, #tpu.memory_space<vmem>>, vector<1x1x384xf32>
    %36 = vector.shape_cast %35 : vector<1x1x384xf32> to vector<1x384xf32>
    %37 = vector.broadcast %36 : vector<1x384xf32> to vector<32x384xf32>
    %38 = arith.addf %34, %37 : vector<32x384xf32>
    %39 = vector.extract_strided_slice %38 {offsets = [0, 0], sizes = [32, 128], strides = [1, 1]} : vector<32x384xf32> to vector<32x128xf32>
    %40 = vector.extract_strided_slice %38 {offsets = [0, 128], sizes = [32, 128], strides = [1, 1]} : vector<32x384xf32> to vector<32x128xf32>
    %41 = vector.extract_strided_slice %38 {offsets = [0, 256], sizes = [32, 128], strides = [1, 1]} : vector<32x384xf32> to vector<32x128xf32>
    %42 = tpu.transpose %40, [1, 0] : vector<32x128xf32> -> vector<128x32xf32>
    %43 = vector.extract_strided_slice %39 {offsets = [0, 0], sizes = [16, 32], strides = [1, 1]} : vector<32x128xf32> to vector<16x32xf32>
    %44 = arith.truncf %43 : vector<16x32xf32> to vector<16x32xbf16>
    %45 = vector.extract_strided_slice %42 {offsets = [0, 0], sizes = [32, 16], strides = [1, 1]} : vector<128x32xf32> to vector<32x16xf32>
    %46 = arith.truncf %45 : vector<32x16xf32> to vector<32x16xbf16>
    %47 = vector.extract_strided_slice %41 {offsets = [0, 0], sizes = [16, 32], strides = [1, 1]} : vector<32x128xf32> to vector<16x32xf32>
    %48 = arith.truncf %47 : vector<16x32xf32> to vector<16x32xbf16>
    %cst_20 = arith.constant dense<0.000000e+00> : vector<16x16xf32>
    %49 = tpu.matmul %44, %46, %cst_20 {dimension_numbers = #tpu.dot_dimension_numbers<[1], [0], [0], [1], [0, 0, 1, 1], [], []>} : vector<16x32xbf16>, vector<32x16xbf16>, vector<16x16xf32> -> vector<16x16xf32>
    %cst_21 = arith.constant dense<0xFF800000> : vector<16xf32>
    %50 = vector.multi_reduction <maximumf>, %49, %cst_21 [1] : vector<16x16xf32> to vector<16xf32>
    %51 = vector.shape_cast %50 : vector<16xf32> to vector<16x1xf32>
    %52 = vector.broadcast %51 : vector<16x1xf32> to vector<16x16xf32>
    %53 = arith.subf %49, %52 : vector<16x16xf32>
    %54 = math.exp %53 : vector<16x16xf32>
    %cst_22 = arith.constant dense<0.000000e+00> : vector<16xf32>
    %55 = vector.multi_reduction <add>, %54, %cst_22 [1] : vector<16x16xf32> to vector<16xf32>
    %56 = vector.shape_cast %55 : vector<16xf32> to vector<16x1xf32>
    %57 = tpu.reciprocal %56 {approx = true} : vector<16x1xf32> -> vector<16x1xf32>
    %58 = vector.broadcast %57 : vector<16x1xf32> to vector<16x16xf32>
    %59 = arith.mulf %54, %58 : vector<16x16xf32>
    %60 = arith.truncf %59 : vector<16x16xf32> to vector<16x16xbf16>
    %cst_23 = arith.constant dense<0.000000e+00> : vector<16x32xf32>
    %61 = tpu.matmul %60, %48, %cst_23 {dimension_numbers = #tpu.dot_dimension_numbers<[1], [0], [0], [1], [0, 0, 1, 1], [], []>} : vector<16x16xbf16>, vector<16x32xbf16>, vector<16x32xf32> -> vector<16x32xf32>
    %62 = vector.extract_strided_slice %39 {offsets = [0, 32], sizes = [16, 32], strides = [1, 1]} : vector<32x128xf32> to vector<16x32xf32>
    %63 = arith.truncf %62 : vector<16x32xf32> to vector<16x32xbf16>
    %64 = vector.extract_strided_slice %42 {offsets = [32, 0], sizes = [32, 16], strides = [1, 1]} : vector<128x32xf32> to vector<32x16xf32>
    %65 = arith.truncf %64 : vector<32x16xf32> to vector<32x16xbf16>
    %66 = vector.extract_strided_slice %41 {offsets = [0, 32], sizes = [16, 32], strides = [1, 1]} : vector<32x128xf32> to vector<16x32xf32>
    %67 = arith.truncf %66 : vector<16x32xf32> to vector<16x32xbf16>
    %cst_24 = arith.constant dense<0.000000e+00> : vector<16x16xf32>
    %68 = tpu.matmul %63, %65, %cst_24 {dimension_numbers = #tpu.dot_dimension_numbers<[1], [0], [0], [1], [0, 0, 1, 1], [], []>} : vector<16x32xbf16>, vector<32x16xbf16>, vector<16x16xf32> -> vector<16x16xf32>
    %cst_25 = arith.constant dense<0xFF800000> : vector<16xf32>
    %69 = vector.multi_reduction <maximumf>, %68, %cst_25 [1] : vector<16x16xf32> to vector<16xf32>
    %70 = vector.shape_cast %69 : vector<16xf32> to vector<16x1xf32>
    %71 = vector.broadcast %70 : vector<16x1xf32> to vector<16x16xf32>
    %72 = arith.subf %68, %71 : vector<16x16xf32>
    %73 = math.exp %72 : vector<16x16xf32>
    %cst_26 = arith.constant dense<0.000000e+00> : vector<16xf32>
    %74 = vector.multi_reduction <add>, %73, %cst_26 [1] : vector<16x16xf32> to vector<16xf32>
    %75 = vector.shape_cast %74 : vector<16xf32> to vector<16x1xf32>
    %76 = tpu.reciprocal %75 {approx = true} : vector<16x1xf32> -> vector<16x1xf32>
    %77 = vector.broadcast %76 : vector<16x1xf32> to vector<16x16xf32>
    %78 = arith.mulf %73, %77 : vector<16x16xf32>
    %79 = arith.truncf %78 : vector<16x16xf32> to vector<16x16xbf16>
    %cst_27 = arith.constant dense<0.000000e+00> : vector<16x32xf32>
    %80 = tpu.matmul %79, %67, %cst_27 {dimension_numbers = #tpu.dot_dimension_numbers<[1], [0], [0], [1], [0, 0, 1, 1], [], []>} : vector<16x16xbf16>, vector<16x32xbf16>, vector<16x32xf32> -> vector<16x32xf32>
    %81 = vector.extract_strided_slice %39 {offsets = [0, 64], sizes = [16, 32], strides = [1, 1]} : vector<32x128xf32> to vector<16x32xf32>
    %82 = arith.truncf %81 : vector<16x32xf32> to vector<16x32xbf16>
    %83 = vector.extract_strided_slice %42 {offsets = [64, 0], sizes = [32, 16], strides = [1, 1]} : vector<128x32xf32> to vector<32x16xf32>
    %84 = arith.truncf %83 : vector<32x16xf32> to vector<32x16xbf16>
    %85 = vector.extract_strided_slice %41 {offsets = [0, 64], sizes = [16, 32], strides = [1, 1]} : vector<32x128xf32> to vector<16x32xf32>
    %86 = arith.truncf %85 : vector<16x32xf32> to vector<16x32xbf16>
    %cst_28 = arith.constant dense<0.000000e+00> : vector<16x16xf32>
    %87 = tpu.matmul %82, %84, %cst_28 {dimension_numbers = #tpu.dot_dimension_numbers<[1], [0], [0], [1], [0, 0, 1, 1], [], []>} : vector<16x32xbf16>, vector<32x16xbf16>, vector<16x16xf32> -> vector<16x16xf32>
    %cst_29 = arith.constant dense<0xFF800000> : vector<16xf32>
    %88 = vector.multi_reduction <maximumf>, %87, %cst_29 [1] : vector<16x16xf32> to vector<16xf32>
    %89 = vector.shape_cast %88 : vector<16xf32> to vector<16x1xf32>
    %90 = vector.broadcast %89 : vector<16x1xf32> to vector<16x16xf32>
    %91 = arith.subf %87, %90 : vector<16x16xf32>
    %92 = math.exp %91 : vector<16x16xf32>
    %cst_30 = arith.constant dense<0.000000e+00> : vector<16xf32>
    %93 = vector.multi_reduction <add>, %92, %cst_30 [1] : vector<16x16xf32> to vector<16xf32>
    %94 = vector.shape_cast %93 : vector<16xf32> to vector<16x1xf32>
    %95 = tpu.reciprocal %94 {approx = true} : vector<16x1xf32> -> vector<16x1xf32>
    %96 = vector.broadcast %95 : vector<16x1xf32> to vector<16x16xf32>
    %97 = arith.mulf %92, %96 : vector<16x16xf32>
    %98 = arith.truncf %97 : vector<16x16xf32> to vector<16x16xbf16>
    %cst_31 = arith.constant dense<0.000000e+00> : vector<16x32xf32>
    %99 = tpu.matmul %98, %86, %cst_31 {dimension_numbers = #tpu.dot_dimension_numbers<[1], [0], [0], [1], [0, 0, 1, 1], [], []>} : vector<16x16xbf16>, vector<16x32xbf16>, vector<16x32xf32> -> vector<16x32xf32>
    %100 = vector.extract_strided_slice %39 {offsets = [0, 96], sizes = [16, 32], strides = [1, 1]} : vector<32x128xf32> to vector<16x32xf32>
    %101 = arith.truncf %100 : vector<16x32xf32> to vector<16x32xbf16>
    %102 = vector.extract_strided_slice %42 {offsets = [96, 0], sizes = [32, 16], strides = [1, 1]} : vector<128x32xf32> to vector<32x16xf32>
    %103 = arith.truncf %102 : vector<32x16xf32> to vector<32x16xbf16>
    %104 = vector.extract_strided_slice %41 {offsets = [0, 96], sizes = [16, 32], strides = [1, 1]} : vector<32x128xf32> to vector<16x32xf32>
    %105 = arith.truncf %104 : vector<16x32xf32> to vector<16x32xbf16>
    %cst_32 = arith.constant dense<0.000000e+00> : vector<16x16xf32>
    %106 = tpu.matmul %101, %103, %cst_32 {dimension_numbers = #tpu.dot_dimension_numbers<[1], [0], [0], [1], [0, 0, 1, 1], [], []>} : vector<16x32xbf16>, vector<32x16xbf16>, vector<16x16xf32> -> vector<16x16xf32>
    %cst_33 = arith.constant dense<0xFF800000> : vector<16xf32>
    %107 = vector.multi_reduction <maximumf>, %106, %cst_33 [1] : vector<16x16xf32> to vector<16xf32>
    %108 = vector.shape_cast %107 : vector<16xf32> to vector<16x1xf32>
    %109 = vector.broadcast %108 : vector<16x1xf32> to vector<16x16xf32>
    %110 = arith.subf %106, %109 : vector<16x16xf32>
    %111 = math.exp %110 : vector<16x16xf32>
    %cst_34 = arith.constant dense<0.000000e+00> : vector<16xf32>
    %112 = vector.multi_reduction <add>, %111, %cst_34 [1] : vector<16x16xf32> to vector<16xf32>
    %113 = vector.shape_cast %112 : vector<16xf32> to vector<16x1xf32>
    %114 = tpu.reciprocal %113 {approx = true} : vector<16x1xf32> -> vector<16x1xf32>
    %115 = vector.broadcast %114 : vector<16x1xf32> to vector<16x16xf32>
    %116 = arith.mulf %111, %115 : vector<16x16xf32>
    %117 = arith.truncf %116 : vector<16x16xf32> to vector<16x16xbf16>
    %cst_35 = arith.constant dense<0.000000e+00> : vector<16x32xf32>
    %118 = tpu.matmul %117, %105, %cst_35 {dimension_numbers = #tpu.dot_dimension_numbers<[1], [0], [0], [1], [0, 0, 1, 1], [], []>} : vector<16x16xbf16>, vector<16x32xbf16>, vector<16x32xf32> -> vector<16x32xf32>
    %119 = tpu.concatenate %61, %80, %99, %118 in 1 : vector<16x32xf32>, vector<16x32xf32>, vector<16x32xf32>, vector<16x32xf32> -> vector<16x128xf32>
    %120 = vector.extract_strided_slice %39 {offsets = [16, 0], sizes = [16, 32], strides = [1, 1]} : vector<32x128xf32> to vector<16x32xf32>
    %121 = arith.truncf %120 : vector<16x32xf32> to vector<16x32xbf16>
    %122 = vector.extract_strided_slice %42 {offsets = [0, 16], sizes = [32, 16], strides = [1, 1]} : vector<128x32xf32> to vector<32x16xf32>
    %123 = arith.truncf %122 : vector<32x16xf32> to vector<32x16xbf16>
    %124 = vector.extract_strided_slice %41 {offsets = [16, 0], sizes = [16, 32], strides = [1, 1]} : vector<32x128xf32> to vector<16x32xf32>
    %125 = arith.truncf %124 : vector<16x32xf32> to vector<16x32xbf16>
    %cst_36 = arith.constant dense<0.000000e+00> : vector<16x16xf32>
    %126 = tpu.matmul %121, %123, %cst_36 {dimension_numbers = #tpu.dot_dimension_numbers<[1], [0], [0], [1], [0, 0, 1, 1], [], []>} : vector<16x32xbf16>, vector<32x16xbf16>, vector<16x16xf32> -> vector<16x16xf32>
    %cst_37 = arith.constant dense<0xFF800000> : vector<16xf32>
    %127 = vector.multi_reduction <maximumf>, %126, %cst_37 [1] : vector<16x16xf32> to vector<16xf32>
    %128 = vector.shape_cast %127 : vector<16xf32> to vector<16x1xf32>
    %129 = vector.broadcast %128 : vector<16x1xf32> to vector<16x16xf32>
    %130 = arith.subf %126, %129 : vector<16x16xf32>
    %131 = math.exp %130 : vector<16x16xf32>
    %cst_38 = arith.constant dense<0.000000e+00> : vector<16xf32>
    %132 = vector.multi_reduction <add>, %131, %cst_38 [1] : vector<16x16xf32> to vector<16xf32>
    %133 = vector.shape_cast %132 : vector<16xf32> to vector<16x1xf32>
    %134 = tpu.reciprocal %133 {approx = true} : vector<16x1xf32> -> vector<16x1xf32>
    %135 = vector.broadcast %134 : vector<16x1xf32> to vector<16x16xf32>
    %136 = arith.mulf %131, %135 : vector<16x16xf32>
    %137 = arith.truncf %136 : vector<16x16xf32> to vector<16x16xbf16>
    %cst_39 = arith.constant dense<0.000000e+00> : vector<16x32xf32>
    %138 = tpu.matmul %137, %125, %cst_39 {dimension_numbers = #tpu.dot_dimension_numbers<[1], [0], [0], [1], [0, 0, 1, 1], [], []>} : vector<16x16xbf16>, vector<16x32xbf16>, vector<16x32xf32> -> vector<16x32xf32>
    %139 = vector.extract_strided_slice %39 {offsets = [16, 32], sizes = [16, 32], strides = [1, 1]} : vector<32x128xf32> to vector<16x32xf32>
    %140 = arith.truncf %139 : vector<16x32xf32> to vector<16x32xbf16>
    %141 = vector.extract_strided_slice %42 {offsets = [32, 16], sizes = [32, 16], strides = [1, 1]} : vector<128x32xf32> to vector<32x16xf32>
    %142 = arith.truncf %141 : vector<32x16xf32> to vector<32x16xbf16>
    %143 = vector.extract_strided_slice %41 {offsets = [16, 32], sizes = [16, 32], strides = [1, 1]} : vector<32x128xf32> to vector<16x32xf32>
    %144 = arith.truncf %143 : vector<16x32xf32> to vector<16x32xbf16>
    %cst_40 = arith.constant dense<0.000000e+00> : vector<16x16xf32>
    %145 = tpu.matmul %140, %142, %cst_40 {dimension_numbers = #tpu.dot_dimension_numbers<[1], [0], [0], [1], [0, 0, 1, 1], [], []>} : vector<16x32xbf16>, vector<32x16xbf16>, vector<16x16xf32> -> vector<16x16xf32>
    %cst_41 = arith.constant dense<0xFF800000> : vector<16xf32>
    %146 = vector.multi_reduction <maximumf>, %145, %cst_41 [1] : vector<16x16xf32> to vector<16xf32>
    %147 = vector.shape_cast %146 : vector<16xf32> to vector<16x1xf32>
    %148 = vector.broadcast %147 : vector<16x1xf32> to vector<16x16xf32>
    %149 = arith.subf %145, %148 : vector<16x16xf32>
    %150 = math.exp %149 : vector<16x16xf32>
    %cst_42 = arith.constant dense<0.000000e+00> : vector<16xf32>
    %151 = vector.multi_reduction <add>, %150, %cst_42 [1] : vector<16x16xf32> to vector<16xf32>
    %152 = vector.shape_cast %151 : vector<16xf32> to vector<16x1xf32>
    %153 = tpu.reciprocal %152 {approx = true} : vector<16x1xf32> -> vector<16x1xf32>
    %154 = vector.broadcast %153 : vector<16x1xf32> to vector<16x16xf32>
    %155 = arith.mulf %150, %154 : vector<16x16xf32>
    %156 = arith.truncf %155 : vector<16x16xf32> to vector<16x16xbf16>
    %cst_43 = arith.constant dense<0.000000e+00> : vector<16x32xf32>
    %157 = tpu.matmul %156, %144, %cst_43 {dimension_numbers = #tpu.dot_dimension_numbers<[1], [0], [0], [1], [0, 0, 1, 1], [], []>} : vector<16x16xbf16>, vector<16x32xbf16>, vector<16x32xf32> -> vector<16x32xf32>
    %158 = vector.extract_strided_slice %39 {offsets = [16, 64], sizes = [16, 32], strides = [1, 1]} : vector<32x128xf32> to vector<16x32xf32>
    %159 = arith.truncf %158 : vector<16x32xf32> to vector<16x32xbf16>
    %160 = vector.extract_strided_slice %42 {offsets = [64, 16], sizes = [32, 16], strides = [1, 1]} : vector<128x32xf32> to vector<32x16xf32>
    %161 = arith.truncf %160 : vector<32x16xf32> to vector<32x16xbf16>
    %162 = vector.extract_strided_slice %41 {offsets = [16, 64], sizes = [16, 32], strides = [1, 1]} : vector<32x128xf32> to vector<16x32xf32>
    %163 = arith.truncf %162 : vector<16x32xf32> to vector<16x32xbf16>
    %cst_44 = arith.constant dense<0.000000e+00> : vector<16x16xf32>
    %164 = tpu.matmul %159, %161, %cst_44 {dimension_numbers = #tpu.dot_dimension_numbers<[1], [0], [0], [1], [0, 0, 1, 1], [], []>} : vector<16x32xbf16>, vector<32x16xbf16>, vector<16x16xf32> -> vector<16x16xf32>
    %cst_45 = arith.constant dense<0xFF800000> : vector<16xf32>
    %165 = vector.multi_reduction <maximumf>, %164, %cst_45 [1] : vector<16x16xf32> to vector<16xf32>
    %166 = vector.shape_cast %165 : vector<16xf32> to vector<16x1xf32>
    %167 = vector.broadcast %166 : vector<16x1xf32> to vector<16x16xf32>
    %168 = arith.subf %164, %167 : vector<16x16xf32>
    %169 = math.exp %168 : vector<16x16xf32>
    %cst_46 = arith.constant dense<0.000000e+00> : vector<16xf32>
    %170 = vector.multi_reduction <add>, %169, %cst_46 [1] : vector<16x16xf32> to vector<16xf32>
    %171 = vector.shape_cast %170 : vector<16xf32> to vector<16x1xf32>
    %172 = tpu.reciprocal %171 {approx = true} : vector<16x1xf32> -> vector<16x1xf32>
    %173 = vector.broadcast %172 : vector<16x1xf32> to vector<16x16xf32>
    %174 = arith.mulf %169, %173 : vector<16x16xf32>
    %175 = arith.truncf %174 : vector<16x16xf32> to vector<16x16xbf16>
    %cst_47 = arith.constant dense<0.000000e+00> : vector<16x32xf32>
    %176 = tpu.matmul %175, %163, %cst_47 {dimension_numbers = #tpu.dot_dimension_numbers<[1], [0], [0], [1], [0, 0, 1, 1], [], []>} : vector<16x16xbf16>, vector<16x32xbf16>, vector<16x32xf32> -> vector<16x32xf32>
    %177 = vector.extract_strided_slice %39 {offsets = [16, 96], sizes = [16, 32], strides = [1, 1]} : vector<32x128xf32> to vector<16x32xf32>
    %178 = arith.truncf %177 : vector<16x32xf32> to vector<16x32xbf16>
    %179 = vector.extract_strided_slice %42 {offsets = [96, 16], sizes = [32, 16], strides = [1, 1]} : vector<128x32xf32> to vector<32x16xf32>
    %180 = arith.truncf %179 : vector<32x16xf32> to vector<32x16xbf16>
    %181 = vector.extract_strided_slice %41 {offsets = [16, 96], sizes = [16, 32], strides = [1, 1]} : vector<32x128xf32> to vector<16x32xf32>
    %182 = arith.truncf %181 : vector<16x32xf32> to vector<16x32xbf16>
    %cst_48 = arith.constant dense<0.000000e+00> : vector<16x16xf32>
    %183 = tpu.matmul %178, %180, %cst_48 {dimension_numbers = #tpu.dot_dimension_numbers<[1], [0], [0], [1], [0, 0, 1, 1], [], []>} : vector<16x32xbf16>, vector<32x16xbf16>, vector<16x16xf32> -> vector<16x16xf32>
    %cst_49 = arith.constant dense<0xFF800000> : vector<16xf32>
    %184 = vector.multi_reduction <maximumf>, %183, %cst_49 [1] : vector<16x16xf32> to vector<16xf32>
    %185 = vector.shape_cast %184 : vector<16xf32> to vector<16x1xf32>
    %186 = vector.broadcast %185 : vector<16x1xf32> to vector<16x16xf32>
    %187 = arith.subf %183, %186 : vector<16x16xf32>
    %188 = math.exp %187 : vector<16x16xf32>
    %cst_50 = arith.constant dense<0.000000e+00> : vector<16xf32>
    %189 = vector.multi_reduction <add>, %188, %cst_50 [1] : vector<16x16xf32> to vector<16xf32>
    %190 = vector.shape_cast %189 : vector<16xf32> to vector<16x1xf32>
    %191 = tpu.reciprocal %190 {approx = true} : vector<16x1xf32> -> vector<16x1xf32>
    %192 = vector.broadcast %191 : vector<16x1xf32> to vector<16x16xf32>
    %193 = arith.mulf %188, %192 : vector<16x16xf32>
    %194 = arith.truncf %193 : vector<16x16xf32> to vector<16x16xbf16>
    %cst_51 = arith.constant dense<0.000000e+00> : vector<16x32xf32>
    %195 = tpu.matmul %194, %182, %cst_51 {dimension_numbers = #tpu.dot_dimension_numbers<[1], [0], [0], [1], [0, 0, 1, 1], [], []>} : vector<16x16xbf16>, vector<16x32xbf16>, vector<16x32xf32> -> vector<16x32xf32>
    %196 = tpu.concatenate %138, %157, %176, %195 in 1 : vector<16x32xf32>, vector<16x32xf32>, vector<16x32xf32>, vector<16x32xf32> -> vector<16x128xf32>
    %197 = tpu.concatenate %119, %196 in 0 : vector<16x128xf32>, vector<16x128xf32> -> vector<32x128xf32>
    %198 = arith.truncf %197 : vector<32x128xf32> to vector<32x128xbf16>
    %c0_52 = arith.constant 0 : index
    %c0_53 = arith.constant 0 : index
    %c0_54 = arith.constant 0 : index
    %199 = vector.load %arg6[%c0_52, %c0_53, %c0_54] : memref<2x128x128xbf16, #tpu.memory_space<vmem>>, vector<1x128x128xbf16>
    %200 = vector.shape_cast %199 : vector<1x128x128xbf16> to vector<128x128xbf16>
    %cst_55 = arith.constant dense<0.000000e+00> : vector<32x128xf32>
    %201 = tpu.matmul %198, %200, %cst_55 {dimension_numbers = #tpu.dot_dimension_numbers<[1], [0], [0], [1], [0, 0, 1, 1], [], []>} : vector<32x128xbf16>, vector<128x128xbf16>, vector<32x128xf32> -> vector<32x128xf32>
    %c0_56 = arith.constant 0 : index
    %c0_57 = arith.constant 0 : index
    %c0_58 = arith.constant 0 : index
    %202 = vector.load %arg7[%c0_56, %c0_57, %c0_58] : memref<2x1x128xf32, #tpu.memory_space<vmem>>, vector<1x1x128xf32>
    %203 = vector.shape_cast %202 : vector<1x1x128xf32> to vector<1x128xf32>
    %204 = vector.broadcast %203 : vector<1x128xf32> to vector<32x128xf32>
    %205 = arith.addf %201, %204 : vector<32x128xf32>
    %206 = arith.addf %4, %205 : vector<32x128xf32>
    %207 = vector.extract_strided_slice %6 {offsets = [2, 0], sizes = [1, 128], strides = [1, 1]} : vector<4x128xf32> to vector<1x128xf32>
    %208 = vector.extract_strided_slice %6 {offsets = [3, 0], sizes = [1, 128], strides = [1, 1]} : vector<4x128xf32> to vector<1x128xf32>
    %cst_59 = arith.constant dense<0.000000e+00> : vector<32xf32>
    %209 = vector.multi_reduction <add>, %206, %cst_59 [1] : vector<32x128xf32> to vector<32xf32>
    %210 = vector.shape_cast %209 : vector<32xf32> to vector<32x1xf32>
    %cst_60 = arith.constant 1.280000e+02 : f32
    %211 = vector.broadcast %cst_60 : f32 to vector<32x1xf32>
    %212 = arith.divf %210, %211 : vector<32x1xf32>
    %213 = vector.broadcast %212 : vector<32x1xf32> to vector<32x128xf32>
    %214 = arith.subf %206, %213 : vector<32x128xf32>
    %215 = arith.mulf %214, %214 : vector<32x128xf32>
    %cst_61 = arith.constant dense<0.000000e+00> : vector<32xf32>
    %216 = vector.multi_reduction <add>, %215, %cst_61 [1] : vector<32x128xf32> to vector<32xf32>
    %217 = vector.shape_cast %216 : vector<32xf32> to vector<32x1xf32>
    %cst_62 = arith.constant 1.280000e+02 : f32
    %218 = vector.broadcast %cst_62 : f32 to vector<32x1xf32>
    %219 = arith.divf %217, %218 : vector<32x1xf32>
    %220 = vector.broadcast %212 : vector<32x1xf32> to vector<32x128xf32>
    %221 = arith.subf %206, %220 : vector<32x128xf32>
    %cst_63 = arith.constant 9.99999997E-7 : f32
    %222 = vector.broadcast %cst_63 : f32 to vector<32x1xf32>
    %223 = arith.addf %219, %222 : vector<32x1xf32>
    %224 = math.rsqrt %223 : vector<32x1xf32>
    %225 = vector.broadcast %224 : vector<32x1xf32> to vector<32x128xf32>
    %226 = arith.mulf %221, %225 : vector<32x128xf32>
    %227 = vector.broadcast %207 : vector<1x128xf32> to vector<32x128xf32>
    %228 = arith.mulf %226, %227 : vector<32x128xf32>
    %229 = vector.broadcast %208 : vector<1x128xf32> to vector<32x128xf32>
    %230 = arith.addf %228, %229 : vector<32x128xf32>
    %231 = arith.truncf %230 : vector<32x128xf32> to vector<32x128xbf16>
    %c0_64 = arith.constant 0 : index
    %c0_65 = arith.constant 0 : index
    %c0_66 = arith.constant 0 : index
    %232 = vector.load %arg8[%c0_64, %c0_65, %c0_66] : memref<2x128x256xbf16, #tpu.memory_space<vmem>>, vector<1x128x256xbf16>
    %233 = vector.shape_cast %232 : vector<1x128x256xbf16> to vector<128x256xbf16>
    %cst_67 = arith.constant dense<0.000000e+00> : vector<32x256xf32>
    %234 = tpu.matmul %231, %233, %cst_67 {dimension_numbers = #tpu.dot_dimension_numbers<[1], [0], [0], [1], [0, 0, 1, 1], [], []>} : vector<32x128xbf16>, vector<128x256xbf16>, vector<32x256xf32> -> vector<32x256xf32>
    %c0_68 = arith.constant 0 : index
    %c0_69 = arith.constant 0 : index
    %c0_70 = arith.constant 0 : index
    %235 = vector.load %arg9[%c0_68, %c0_69, %c0_70] : memref<2x1x256xf32, #tpu.memory_space<vmem>>, vector<1x1x256xf32>
    %236 = vector.shape_cast %235 : vector<1x1x256xf32> to vector<1x256xf32>
    %237 = vector.broadcast %236 : vector<1x256xf32> to vector<32x256xf32>
    %238 = arith.addf %234, %237 : vector<32x256xf32>
    %239 = arith.mulf %238, %238 : vector<32x256xf32>
    %240 = arith.mulf %238, %239 : vector<32x256xf32>
    %cst_71 = arith.constant 4.471500e-02 : f32
    %241 = vector.broadcast %cst_71 : f32 to vector<32x256xf32>
    %242 = arith.mulf %241, %240 : vector<32x256xf32>
    %243 = arith.addf %238, %242 : vector<32x256xf32>
    %cst_72 = arith.constant 0.797884583 : f32
    %244 = vector.broadcast %cst_72 : f32 to vector<32x256xf32>
    %245 = arith.mulf %244, %243 : vector<32x256xf32>
    %246 = math.tanh %245 : vector<32x256xf32>
    %cst_73 = arith.constant 1.000000e+00 : f32
    %247 = vector.broadcast %cst_73 : f32 to vector<32x256xf32>
    %248 = arith.addf %247, %246 : vector<32x256xf32>
    %cst_74 = arith.constant 5.000000e-01 : f32
    %249 = vector.broadcast %cst_74 : f32 to vector<32x256xf32>
    %250 = arith.mulf %249, %248 : vector<32x256xf32>
    %251 = arith.mulf %238, %250 : vector<32x256xf32>
    %252 = arith.truncf %251 : vector<32x256xf32> to vector<32x256xbf16>
    %c0_75 = arith.constant 0 : index
    %c0_76 = arith.constant 0 : index
    %c0_77 = arith.constant 0 : index
    %253 = vector.load %arg10[%c0_75, %c0_76, %c0_77] : memref<2x256x128xbf16, #tpu.memory_space<vmem>>, vector<1x256x128xbf16>
    %254 = vector.shape_cast %253 : vector<1x256x128xbf16> to vector<256x128xbf16>
    %cst_78 = arith.constant dense<0.000000e+00> : vector<32x128xf32>
    %255 = tpu.matmul %252, %254, %cst_78 {dimension_numbers = #tpu.dot_dimension_numbers<[1], [0], [0], [1], [0, 0, 1, 1], [], []>} : vector<32x256xbf16>, vector<256x128xbf16>, vector<32x128xf32> -> vector<32x128xf32>
    %c0_79 = arith.constant 0 : index
    %c0_80 = arith.constant 0 : index
    %c0_81 = arith.constant 0 : index
    %256 = vector.load %arg11[%c0_79, %c0_80, %c0_81] : memref<2x1x128xf32, #tpu.memory_space<vmem>>, vector<1x1x128xf32>
    %257 = vector.shape_cast %256 : vector<1x1x128xf32> to vector<1x128xf32>
    %258 = vector.broadcast %257 : vector<1x128xf32> to vector<32x128xf32>
    %259 = arith.addf %255, %258 : vector<32x128xf32>
    %260 = arith.addf %206, %259 : vector<32x128xf32>
    %c1 = arith.constant 1 : index
    %c0_82 = arith.constant 0 : index
    %c0_83 = arith.constant 0 : index
    %261 = vector.load %arg3[%c1, %c0_82, %c0_83] : memref<2x4x128xf32, #tpu.memory_space<vmem>>, vector<1x4x128xf32>
    %262 = vector.shape_cast %261 : vector<1x4x128xf32> to vector<4x128xf32>
    %263 = vector.extract_strided_slice %262 {offsets = [0, 0], sizes = [1, 128], strides = [1, 1]} : vector<4x128xf32> to vector<1x128xf32>
    %264 = vector.extract_strided_slice %262 {offsets = [1, 0], sizes = [1, 128], strides = [1, 1]} : vector<4x128xf32> to vector<1x128xf32>
    %cst_84 = arith.constant dense<0.000000e+00> : vector<32xf32>
    %265 = vector.multi_reduction <add>, %260, %cst_84 [1] : vector<32x128xf32> to vector<32xf32>
    %266 = vector.shape_cast %265 : vector<32xf32> to vector<32x1xf32>
    %cst_85 = arith.constant 1.280000e+02 : f32
    %267 = vector.broadcast %cst_85 : f32 to vector<32x1xf32>
    %268 = arith.divf %266, %267 : vector<32x1xf32>
    %269 = vector.broadcast %268 : vector<32x1xf32> to vector<32x128xf32>
    %270 = arith.subf %260, %269 : vector<32x128xf32>
    %271 = arith.mulf %270, %270 : vector<32x128xf32>
    %cst_86 = arith.constant dense<0.000000e+00> : vector<32xf32>
    %272 = vector.multi_reduction <add>, %271, %cst_86 [1] : vector<32x128xf32> to vector<32xf32>
    %273 = vector.shape_cast %272 : vector<32xf32> to vector<32x1xf32>
    %cst_87 = arith.constant 1.280000e+02 : f32
    %274 = vector.broadcast %cst_87 : f32 to vector<32x1xf32>
    %275 = arith.divf %273, %274 : vector<32x1xf32>
    %276 = vector.broadcast %268 : vector<32x1xf32> to vector<32x128xf32>
    %277 = arith.subf %260, %276 : vector<32x128xf32>
    %cst_88 = arith.constant 9.99999997E-7 : f32
    %278 = vector.broadcast %cst_88 : f32 to vector<32x1xf32>
    %279 = arith.addf %275, %278 : vector<32x1xf32>
    %280 = math.rsqrt %279 : vector<32x1xf32>
    %281 = vector.broadcast %280 : vector<32x1xf32> to vector<32x128xf32>
    %282 = arith.mulf %277, %281 : vector<32x128xf32>
    %283 = vector.broadcast %263 : vector<1x128xf32> to vector<32x128xf32>
    %284 = arith.mulf %282, %283 : vector<32x128xf32>
    %285 = vector.broadcast %264 : vector<1x128xf32> to vector<32x128xf32>
    %286 = arith.addf %284, %285 : vector<32x128xf32>
    %287 = arith.truncf %286 : vector<32x128xf32> to vector<32x128xbf16>
    %c1_89 = arith.constant 1 : index
    %c0_90 = arith.constant 0 : index
    %c0_91 = arith.constant 0 : index
    %288 = vector.load %arg4[%c1_89, %c0_90, %c0_91] : memref<2x128x384xbf16, #tpu.memory_space<vmem>>, vector<1x128x384xbf16>
    %289 = vector.shape_cast %288 : vector<1x128x384xbf16> to vector<128x384xbf16>
    %cst_92 = arith.constant dense<0.000000e+00> : vector<32x384xf32>
    %290 = tpu.matmul %287, %289, %cst_92 {dimension_numbers = #tpu.dot_dimension_numbers<[1], [0], [0], [1], [0, 0, 1, 1], [], []>} : vector<32x128xbf16>, vector<128x384xbf16>, vector<32x384xf32> -> vector<32x384xf32>
    %c1_93 = arith.constant 1 : index
    %c0_94 = arith.constant 0 : index
    %c0_95 = arith.constant 0 : index
    %291 = vector.load %arg5[%c1_93, %c0_94, %c0_95] : memref<2x1x384xf32, #tpu.memory_space<vmem>>, vector<1x1x384xf32>
    %292 = vector.shape_cast %291 : vector<1x1x384xf32> to vector<1x384xf32>
    %293 = vector.broadcast %292 : vector<1x384xf32> to vector<32x384xf32>
    %294 = arith.addf %290, %293 : vector<32x384xf32>
    %295 = vector.extract_strided_slice %294 {offsets = [0, 0], sizes = [32, 128], strides = [1, 1]} : vector<32x384xf32> to vector<32x128xf32>
    %296 = vector.extract_strided_slice %294 {offsets = [0, 128], sizes = [32, 128], strides = [1, 1]} : vector<32x384xf32> to vector<32x128xf32>
    %297 = vector.extract_strided_slice %294 {offsets = [0, 256], sizes = [32, 128], strides = [1, 1]} : vector<32x384xf32> to vector<32x128xf32>
    %298 = tpu.transpose %296, [1, 0] : vector<32x128xf32> -> vector<128x32xf32>
    %299 = vector.extract_strided_slice %295 {offsets = [0, 0], sizes = [16, 32], strides = [1, 1]} : vector<32x128xf32> to vector<16x32xf32>
    %300 = arith.truncf %299 : vector<16x32xf32> to vector<16x32xbf16>
    %301 = vector.extract_strided_slice %298 {offsets = [0, 0], sizes = [32, 16], strides = [1, 1]} : vector<128x32xf32> to vector<32x16xf32>
    %302 = arith.truncf %301 : vector<32x16xf32> to vector<32x16xbf16>
    %303 = vector.extract_strided_slice %297 {offsets = [0, 0], sizes = [16, 32], strides = [1, 1]} : vector<32x128xf32> to vector<16x32xf32>
    %304 = arith.truncf %303 : vector<16x32xf32> to vector<16x32xbf16>
    %cst_96 = arith.constant dense<0.000000e+00> : vector<16x16xf32>
    %305 = tpu.matmul %300, %302, %cst_96 {dimension_numbers = #tpu.dot_dimension_numbers<[1], [0], [0], [1], [0, 0, 1, 1], [], []>} : vector<16x32xbf16>, vector<32x16xbf16>, vector<16x16xf32> -> vector<16x16xf32>
    %cst_97 = arith.constant dense<0xFF800000> : vector<16xf32>
    %306 = vector.multi_reduction <maximumf>, %305, %cst_97 [1] : vector<16x16xf32> to vector<16xf32>
    %307 = vector.shape_cast %306 : vector<16xf32> to vector<16x1xf32>
    %308 = vector.broadcast %307 : vector<16x1xf32> to vector<16x16xf32>
    %309 = arith.subf %305, %308 : vector<16x16xf32>
    %310 = math.exp %309 : vector<16x16xf32>
    %cst_98 = arith.constant dense<0.000000e+00> : vector<16xf32>
    %311 = vector.multi_reduction <add>, %310, %cst_98 [1] : vector<16x16xf32> to vector<16xf32>
    %312 = vector.shape_cast %311 : vector<16xf32> to vector<16x1xf32>
    %313 = tpu.reciprocal %312 {approx = true} : vector<16x1xf32> -> vector<16x1xf32>
    %314 = vector.broadcast %313 : vector<16x1xf32> to vector<16x16xf32>
    %315 = arith.mulf %310, %314 : vector<16x16xf32>
    %316 = arith.truncf %315 : vector<16x16xf32> to vector<16x16xbf16>
    %cst_99 = arith.constant dense<0.000000e+00> : vector<16x32xf32>
    %317 = tpu.matmul %316, %304, %cst_99 {dimension_numbers = #tpu.dot_dimension_numbers<[1], [0], [0], [1], [0, 0, 1, 1], [], []>} : vector<16x16xbf16>, vector<16x32xbf16>, vector<16x32xf32> -> vector<16x32xf32>
    %318 = vector.extract_strided_slice %295 {offsets = [0, 32], sizes = [16, 32], strides = [1, 1]} : vector<32x128xf32> to vector<16x32xf32>
    %319 = arith.truncf %318 : vector<16x32xf32> to vector<16x32xbf16>
    %320 = vector.extract_strided_slice %298 {offsets = [32, 0], sizes = [32, 16], strides = [1, 1]} : vector<128x32xf32> to vector<32x16xf32>
    %321 = arith.truncf %320 : vector<32x16xf32> to vector<32x16xbf16>
    %322 = vector.extract_strided_slice %297 {offsets = [0, 32], sizes = [16, 32], strides = [1, 1]} : vector<32x128xf32> to vector<16x32xf32>
    %323 = arith.truncf %322 : vector<16x32xf32> to vector<16x32xbf16>
    %cst_100 = arith.constant dense<0.000000e+00> : vector<16x16xf32>
    %324 = tpu.matmul %319, %321, %cst_100 {dimension_numbers = #tpu.dot_dimension_numbers<[1], [0], [0], [1], [0, 0, 1, 1], [], []>} : vector<16x32xbf16>, vector<32x16xbf16>, vector<16x16xf32> -> vector<16x16xf32>
    %cst_101 = arith.constant dense<0xFF800000> : vector<16xf32>
    %325 = vector.multi_reduction <maximumf>, %324, %cst_101 [1] : vector<16x16xf32> to vector<16xf32>
    %326 = vector.shape_cast %325 : vector<16xf32> to vector<16x1xf32>
    %327 = vector.broadcast %326 : vector<16x1xf32> to vector<16x16xf32>
    %328 = arith.subf %324, %327 : vector<16x16xf32>
    %329 = math.exp %328 : vector<16x16xf32>
    %cst_102 = arith.constant dense<0.000000e+00> : vector<16xf32>
    %330 = vector.multi_reduction <add>, %329, %cst_102 [1] : vector<16x16xf32> to vector<16xf32>
    %331 = vector.shape_cast %330 : vector<16xf32> to vector<16x1xf32>
    %332 = tpu.reciprocal %331 {approx = true} : vector<16x1xf32> -> vector<16x1xf32>
    %333 = vector.broadcast %332 : vector<16x1xf32> to vector<16x16xf32>
    %334 = arith.mulf %329, %333 : vector<16x16xf32>
    %335 = arith.truncf %334 : vector<16x16xf32> to vector<16x16xbf16>
    %cst_103 = arith.constant dense<0.000000e+00> : vector<16x32xf32>
    %336 = tpu.matmul %335, %323, %cst_103 {dimension_numbers = #tpu.dot_dimension_numbers<[1], [0], [0], [1], [0, 0, 1, 1], [], []>} : vector<16x16xbf16>, vector<16x32xbf16>, vector<16x32xf32> -> vector<16x32xf32>
    %337 = vector.extract_strided_slice %295 {offsets = [0, 64], sizes = [16, 32], strides = [1, 1]} : vector<32x128xf32> to vector<16x32xf32>
    %338 = arith.truncf %337 : vector<16x32xf32> to vector<16x32xbf16>
    %339 = vector.extract_strided_slice %298 {offsets = [64, 0], sizes = [32, 16], strides = [1, 1]} : vector<128x32xf32> to vector<32x16xf32>
    %340 = arith.truncf %339 : vector<32x16xf32> to vector<32x16xbf16>
    %341 = vector.extract_strided_slice %297 {offsets = [0, 64], sizes = [16, 32], strides = [1, 1]} : vector<32x128xf32> to vector<16x32xf32>
    %342 = arith.truncf %341 : vector<16x32xf32> to vector<16x32xbf16>
    %cst_104 = arith.constant dense<0.000000e+00> : vector<16x16xf32>
    %343 = tpu.matmul %338, %340, %cst_104 {dimension_numbers = #tpu.dot_dimension_numbers<[1], [0], [0], [1], [0, 0, 1, 1], [], []>} : vector<16x32xbf16>, vector<32x16xbf16>, vector<16x16xf32> -> vector<16x16xf32>
    %cst_105 = arith.constant dense<0xFF800000> : vector<16xf32>
    %344 = vector.multi_reduction <maximumf>, %343, %cst_105 [1] : vector<16x16xf32> to vector<16xf32>
    %345 = vector.shape_cast %344 : vector<16xf32> to vector<16x1xf32>
    %346 = vector.broadcast %345 : vector<16x1xf32> to vector<16x16xf32>
    %347 = arith.subf %343, %346 : vector<16x16xf32>
    %348 = math.exp %347 : vector<16x16xf32>
    %cst_106 = arith.constant dense<0.000000e+00> : vector<16xf32>
    %349 = vector.multi_reduction <add>, %348, %cst_106 [1] : vector<16x16xf32> to vector<16xf32>
    %350 = vector.shape_cast %349 : vector<16xf32> to vector<16x1xf32>
    %351 = tpu.reciprocal %350 {approx = true} : vector<16x1xf32> -> vector<16x1xf32>
    %352 = vector.broadcast %351 : vector<16x1xf32> to vector<16x16xf32>
    %353 = arith.mulf %348, %352 : vector<16x16xf32>
    %354 = arith.truncf %353 : vector<16x16xf32> to vector<16x16xbf16>
    %cst_107 = arith.constant dense<0.000000e+00> : vector<16x32xf32>
    %355 = tpu.matmul %354, %342, %cst_107 {dimension_numbers = #tpu.dot_dimension_numbers<[1], [0], [0], [1], [0, 0, 1, 1], [], []>} : vector<16x16xbf16>, vector<16x32xbf16>, vector<16x32xf32> -> vector<16x32xf32>
    %356 = vector.extract_strided_slice %295 {offsets = [0, 96], sizes = [16, 32], strides = [1, 1]} : vector<32x128xf32> to vector<16x32xf32>
    %357 = arith.truncf %356 : vector<16x32xf32> to vector<16x32xbf16>
    %358 = vector.extract_strided_slice %298 {offsets = [96, 0], sizes = [32, 16], strides = [1, 1]} : vector<128x32xf32> to vector<32x16xf32>
    %359 = arith.truncf %358 : vector<32x16xf32> to vector<32x16xbf16>
    %360 = vector.extract_strided_slice %297 {offsets = [0, 96], sizes = [16, 32], strides = [1, 1]} : vector<32x128xf32> to vector<16x32xf32>
    %361 = arith.truncf %360 : vector<16x32xf32> to vector<16x32xbf16>
    %cst_108 = arith.constant dense<0.000000e+00> : vector<16x16xf32>
    %362 = tpu.matmul %357, %359, %cst_108 {dimension_numbers = #tpu.dot_dimension_numbers<[1], [0], [0], [1], [0, 0, 1, 1], [], []>} : vector<16x32xbf16>, vector<32x16xbf16>, vector<16x16xf32> -> vector<16x16xf32>
    %cst_109 = arith.constant dense<0xFF800000> : vector<16xf32>
    %363 = vector.multi_reduction <maximumf>, %362, %cst_109 [1] : vector<16x16xf32> to vector<16xf32>
    %364 = vector.shape_cast %363 : vector<16xf32> to vector<16x1xf32>
    %365 = vector.broadcast %364 : vector<16x1xf32> to vector<16x16xf32>
    %366 = arith.subf %362, %365 : vector<16x16xf32>
    %367 = math.exp %366 : vector<16x16xf32>
    %cst_110 = arith.constant dense<0.000000e+00> : vector<16xf32>
    %368 = vector.multi_reduction <add>, %367, %cst_110 [1] : vector<16x16xf32> to vector<16xf32>
    %369 = vector.shape_cast %368 : vector<16xf32> to vector<16x1xf32>
    %370 = tpu.reciprocal %369 {approx = true} : vector<16x1xf32> -> vector<16x1xf32>
    %371 = vector.broadcast %370 : vector<16x1xf32> to vector<16x16xf32>
    %372 = arith.mulf %367, %371 : vector<16x16xf32>
    %373 = arith.truncf %372 : vector<16x16xf32> to vector<16x16xbf16>
    %cst_111 = arith.constant dense<0.000000e+00> : vector<16x32xf32>
    %374 = tpu.matmul %373, %361, %cst_111 {dimension_numbers = #tpu.dot_dimension_numbers<[1], [0], [0], [1], [0, 0, 1, 1], [], []>} : vector<16x16xbf16>, vector<16x32xbf16>, vector<16x32xf32> -> vector<16x32xf32>
    %375 = tpu.concatenate %317, %336, %355, %374 in 1 : vector<16x32xf32>, vector<16x32xf32>, vector<16x32xf32>, vector<16x32xf32> -> vector<16x128xf32>
    %376 = vector.extract_strided_slice %295 {offsets = [16, 0], sizes = [16, 32], strides = [1, 1]} : vector<32x128xf32> to vector<16x32xf32>
    %377 = arith.truncf %376 : vector<16x32xf32> to vector<16x32xbf16>
    %378 = vector.extract_strided_slice %298 {offsets = [0, 16], sizes = [32, 16], strides = [1, 1]} : vector<128x32xf32> to vector<32x16xf32>
    %379 = arith.truncf %378 : vector<32x16xf32> to vector<32x16xbf16>
    %380 = vector.extract_strided_slice %297 {offsets = [16, 0], sizes = [16, 32], strides = [1, 1]} : vector<32x128xf32> to vector<16x32xf32>
    %381 = arith.truncf %380 : vector<16x32xf32> to vector<16x32xbf16>
    %cst_112 = arith.constant dense<0.000000e+00> : vector<16x16xf32>
    %382 = tpu.matmul %377, %379, %cst_112 {dimension_numbers = #tpu.dot_dimension_numbers<[1], [0], [0], [1], [0, 0, 1, 1], [], []>} : vector<16x32xbf16>, vector<32x16xbf16>, vector<16x16xf32> -> vector<16x16xf32>
    %cst_113 = arith.constant dense<0xFF800000> : vector<16xf32>
    %383 = vector.multi_reduction <maximumf>, %382, %cst_113 [1] : vector<16x16xf32> to vector<16xf32>
    %384 = vector.shape_cast %383 : vector<16xf32> to vector<16x1xf32>
    %385 = vector.broadcast %384 : vector<16x1xf32> to vector<16x16xf32>
    %386 = arith.subf %382, %385 : vector<16x16xf32>
    %387 = math.exp %386 : vector<16x16xf32>
    %cst_114 = arith.constant dense<0.000000e+00> : vector<16xf32>
    %388 = vector.multi_reduction <add>, %387, %cst_114 [1] : vector<16x16xf32> to vector<16xf32>
    %389 = vector.shape_cast %388 : vector<16xf32> to vector<16x1xf32>
    %390 = tpu.reciprocal %389 {approx = true} : vector<16x1xf32> -> vector<16x1xf32>
    %391 = vector.broadcast %390 : vector<16x1xf32> to vector<16x16xf32>
    %392 = arith.mulf %387, %391 : vector<16x16xf32>
    %393 = arith.truncf %392 : vector<16x16xf32> to vector<16x16xbf16>
    %cst_115 = arith.constant dense<0.000000e+00> : vector<16x32xf32>
    %394 = tpu.matmul %393, %381, %cst_115 {dimension_numbers = #tpu.dot_dimension_numbers<[1], [0], [0], [1], [0, 0, 1, 1], [], []>} : vector<16x16xbf16>, vector<16x32xbf16>, vector<16x32xf32> -> vector<16x32xf32>
    %395 = vector.extract_strided_slice %295 {offsets = [16, 32], sizes = [16, 32], strides = [1, 1]} : vector<32x128xf32> to vector<16x32xf32>
    %396 = arith.truncf %395 : vector<16x32xf32> to vector<16x32xbf16>
    %397 = vector.extract_strided_slice %298 {offsets = [32, 16], sizes = [32, 16], strides = [1, 1]} : vector<128x32xf32> to vector<32x16xf32>
    %398 = arith.truncf %397 : vector<32x16xf32> to vector<32x16xbf16>
    %399 = vector.extract_strided_slice %297 {offsets = [16, 32], sizes = [16, 32], strides = [1, 1]} : vector<32x128xf32> to vector<16x32xf32>
    %400 = arith.truncf %399 : vector<16x32xf32> to vector<16x32xbf16>
    %cst_116 = arith.constant dense<0.000000e+00> : vector<16x16xf32>
    %401 = tpu.matmul %396, %398, %cst_116 {dimension_numbers = #tpu.dot_dimension_numbers<[1], [0], [0], [1], [0, 0, 1, 1], [], []>} : vector<16x32xbf16>, vector<32x16xbf16>, vector<16x16xf32> -> vector<16x16xf32>
    %cst_117 = arith.constant dense<0xFF800000> : vector<16xf32>
    %402 = vector.multi_reduction <maximumf>, %401, %cst_117 [1] : vector<16x16xf32> to vector<16xf32>
    %403 = vector.shape_cast %402 : vector<16xf32> to vector<16x1xf32>
    %404 = vector.broadcast %403 : vector<16x1xf32> to vector<16x16xf32>
    %405 = arith.subf %401, %404 : vector<16x16xf32>
    %406 = math.exp %405 : vector<16x16xf32>
    %cst_118 = arith.constant dense<0.000000e+00> : vector<16xf32>
    %407 = vector.multi_reduction <add>, %406, %cst_118 [1] : vector<16x16xf32> to vector<16xf32>
    %408 = vector.shape_cast %407 : vector<16xf32> to vector<16x1xf32>
    %409 = tpu.reciprocal %408 {approx = true} : vector<16x1xf32> -> vector<16x1xf32>
    %410 = vector.broadcast %409 : vector<16x1xf32> to vector<16x16xf32>
    %411 = arith.mulf %406, %410 : vector<16x16xf32>
    %412 = arith.truncf %411 : vector<16x16xf32> to vector<16x16xbf16>
    %cst_119 = arith.constant dense<0.000000e+00> : vector<16x32xf32>
    %413 = tpu.matmul %412, %400, %cst_119 {dimension_numbers = #tpu.dot_dimension_numbers<[1], [0], [0], [1], [0, 0, 1, 1], [], []>} : vector<16x16xbf16>, vector<16x32xbf16>, vector<16x32xf32> -> vector<16x32xf32>
    %414 = vector.extract_strided_slice %295 {offsets = [16, 64], sizes = [16, 32], strides = [1, 1]} : vector<32x128xf32> to vector<16x32xf32>
    %415 = arith.truncf %414 : vector<16x32xf32> to vector<16x32xbf16>
    %416 = vector.extract_strided_slice %298 {offsets = [64, 16], sizes = [32, 16], strides = [1, 1]} : vector<128x32xf32> to vector<32x16xf32>
    %417 = arith.truncf %416 : vector<32x16xf32> to vector<32x16xbf16>
    %418 = vector.extract_strided_slice %297 {offsets = [16, 64], sizes = [16, 32], strides = [1, 1]} : vector<32x128xf32> to vector<16x32xf32>
    %419 = arith.truncf %418 : vector<16x32xf32> to vector<16x32xbf16>
    %cst_120 = arith.constant dense<0.000000e+00> : vector<16x16xf32>
    %420 = tpu.matmul %415, %417, %cst_120 {dimension_numbers = #tpu.dot_dimension_numbers<[1], [0], [0], [1], [0, 0, 1, 1], [], []>} : vector<16x32xbf16>, vector<32x16xbf16>, vector<16x16xf32> -> vector<16x16xf32>
    %cst_121 = arith.constant dense<0xFF800000> : vector<16xf32>
    %421 = vector.multi_reduction <maximumf>, %420, %cst_121 [1] : vector<16x16xf32> to vector<16xf32>
    %422 = vector.shape_cast %421 : vector<16xf32> to vector<16x1xf32>
    %423 = vector.broadcast %422 : vector<16x1xf32> to vector<16x16xf32>
    %424 = arith.subf %420, %423 : vector<16x16xf32>
    %425 = math.exp %424 : vector<16x16xf32>
    %cst_122 = arith.constant dense<0.000000e+00> : vector<16xf32>
    %426 = vector.multi_reduction <add>, %425, %cst_122 [1] : vector<16x16xf32> to vector<16xf32>
    %427 = vector.shape_cast %426 : vector<16xf32> to vector<16x1xf32>
    %428 = tpu.reciprocal %427 {approx = true} : vector<16x1xf32> -> vector<16x1xf32>
    %429 = vector.broadcast %428 : vector<16x1xf32> to vector<16x16xf32>
    %430 = arith.mulf %425, %429 : vector<16x16xf32>
    %431 = arith.truncf %430 : vector<16x16xf32> to vector<16x16xbf16>
    %cst_123 = arith.constant dense<0.000000e+00> : vector<16x32xf32>
    %432 = tpu.matmul %431, %419, %cst_123 {dimension_numbers = #tpu.dot_dimension_numbers<[1], [0], [0], [1], [0, 0, 1, 1], [], []>} : vector<16x16xbf16>, vector<16x32xbf16>, vector<16x32xf32> -> vector<16x32xf32>
    %433 = vector.extract_strided_slice %295 {offsets = [16, 96], sizes = [16, 32], strides = [1, 1]} : vector<32x128xf32> to vector<16x32xf32>
    %434 = arith.truncf %433 : vector<16x32xf32> to vector<16x32xbf16>
    %435 = vector.extract_strided_slice %298 {offsets = [96, 16], sizes = [32, 16], strides = [1, 1]} : vector<128x32xf32> to vector<32x16xf32>
    %436 = arith.truncf %435 : vector<32x16xf32> to vector<32x16xbf16>
    %437 = vector.extract_strided_slice %297 {offsets = [16, 96], sizes = [16, 32], strides = [1, 1]} : vector<32x128xf32> to vector<16x32xf32>
    %438 = arith.truncf %437 : vector<16x32xf32> to vector<16x32xbf16>
    %cst_124 = arith.constant dense<0.000000e+00> : vector<16x16xf32>
    %439 = tpu.matmul %434, %436, %cst_124 {dimension_numbers = #tpu.dot_dimension_numbers<[1], [0], [0], [1], [0, 0, 1, 1], [], []>} : vector<16x32xbf16>, vector<32x16xbf16>, vector<16x16xf32> -> vector<16x16xf32>
    %cst_125 = arith.constant dense<0xFF800000> : vector<16xf32>
    %440 = vector.multi_reduction <maximumf>, %439, %cst_125 [1] : vector<16x16xf32> to vector<16xf32>
    %441 = vector.shape_cast %440 : vector<16xf32> to vector<16x1xf32>
    %442 = vector.broadcast %441 : vector<16x1xf32> to vector<16x16xf32>
    %443 = arith.subf %439, %442 : vector<16x16xf32>
    %444 = math.exp %443 : vector<16x16xf32>
    %cst_126 = arith.constant dense<0.000000e+00> : vector<16xf32>
    %445 = vector.multi_reduction <add>, %444, %cst_126 [1] : vector<16x16xf32> to vector<16xf32>
    %446 = vector.shape_cast %445 : vector<16xf32> to vector<16x1xf32>
    %447 = tpu.reciprocal %446 {approx = true} : vector<16x1xf32> -> vector<16x1xf32>
    %448 = vector.broadcast %447 : vector<16x1xf32> to vector<16x16xf32>
    %449 = arith.mulf %444, %448 : vector<16x16xf32>
    %450 = arith.truncf %449 : vector<16x16xf32> to vector<16x16xbf16>
    %cst_127 = arith.constant dense<0.000000e+00> : vector<16x32xf32>
    %451 = tpu.matmul %450, %438, %cst_127 {dimension_numbers = #tpu.dot_dimension_numbers<[1], [0], [0], [1], [0, 0, 1, 1], [], []>} : vector<16x16xbf16>, vector<16x32xbf16>, vector<16x32xf32> -> vector<16x32xf32>
    %452 = tpu.concatenate %394, %413, %432, %451 in 1 : vector<16x32xf32>, vector<16x32xf32>, vector<16x32xf32>, vector<16x32xf32> -> vector<16x128xf32>
    %453 = tpu.concatenate %375, %452 in 0 : vector<16x128xf32>, vector<16x128xf32> -> vector<32x128xf32>
    %454 = arith.truncf %453 : vector<32x128xf32> to vector<32x128xbf16>
    %c1_128 = arith.constant 1 : index
    %c0_129 = arith.constant 0 : index
    %c0_130 = arith.constant 0 : index
    %455 = vector.load %arg6[%c1_128, %c0_129, %c0_130] : memref<2x128x128xbf16, #tpu.memory_space<vmem>>, vector<1x128x128xbf16>
    %456 = vector.shape_cast %455 : vector<1x128x128xbf16> to vector<128x128xbf16>
    %cst_131 = arith.constant dense<0.000000e+00> : vector<32x128xf32>
    %457 = tpu.matmul %454, %456, %cst_131 {dimension_numbers = #tpu.dot_dimension_numbers<[1], [0], [0], [1], [0, 0, 1, 1], [], []>} : vector<32x128xbf16>, vector<128x128xbf16>, vector<32x128xf32> -> vector<32x128xf32>
    %c1_132 = arith.constant 1 : index
    %c0_133 = arith.constant 0 : index
    %c0_134 = arith.constant 0 : index
    %458 = vector.load %arg7[%c1_132, %c0_133, %c0_134] : memref<2x1x128xf32, #tpu.memory_space<vmem>>, vector<1x1x128xf32>
    %459 = vector.shape_cast %458 : vector<1x1x128xf32> to vector<1x128xf32>
    %460 = vector.broadcast %459 : vector<1x128xf32> to vector<32x128xf32>
    %461 = arith.addf %457, %460 : vector<32x128xf32>
    %462 = arith.addf %260, %461 : vector<32x128xf32>
    %463 = vector.extract_strided_slice %262 {offsets = [2, 0], sizes = [1, 128], strides = [1, 1]} : vector<4x128xf32> to vector<1x128xf32>
    %464 = vector.extract_strided_slice %262 {offsets = [3, 0], sizes = [1, 128], strides = [1, 1]} : vector<4x128xf32> to vector<1x128xf32>
    %cst_135 = arith.constant dense<0.000000e+00> : vector<32xf32>
    %465 = vector.multi_reduction <add>, %462, %cst_135 [1] : vector<32x128xf32> to vector<32xf32>
    %466 = vector.shape_cast %465 : vector<32xf32> to vector<32x1xf32>
    %cst_136 = arith.constant 1.280000e+02 : f32
    %467 = vector.broadcast %cst_136 : f32 to vector<32x1xf32>
    %468 = arith.divf %466, %467 : vector<32x1xf32>
    %469 = vector.broadcast %468 : vector<32x1xf32> to vector<32x128xf32>
    %470 = arith.subf %462, %469 : vector<32x128xf32>
    %471 = arith.mulf %470, %470 : vector<32x128xf32>
    %cst_137 = arith.constant dense<0.000000e+00> : vector<32xf32>
    %472 = vector.multi_reduction <add>, %471, %cst_137 [1] : vector<32x128xf32> to vector<32xf32>
    %473 = vector.shape_cast %472 : vector<32xf32> to vector<32x1xf32>
    %cst_138 = arith.constant 1.280000e+02 : f32
    %474 = vector.broadcast %cst_138 : f32 to vector<32x1xf32>
    %475 = arith.divf %473, %474 : vector<32x1xf32>
    %476 = vector.broadcast %468 : vector<32x1xf32> to vector<32x128xf32>
    %477 = arith.subf %462, %476 : vector<32x128xf32>
    %cst_139 = arith.constant 9.99999997E-7 : f32
    %478 = vector.broadcast %cst_139 : f32 to vector<32x1xf32>
    %479 = arith.addf %475, %478 : vector<32x1xf32>
    %480 = math.rsqrt %479 : vector<32x1xf32>
    %481 = vector.broadcast %480 : vector<32x1xf32> to vector<32x128xf32>
    %482 = arith.mulf %477, %481 : vector<32x128xf32>
    %483 = vector.broadcast %463 : vector<1x128xf32> to vector<32x128xf32>
    %484 = arith.mulf %482, %483 : vector<32x128xf32>
    %485 = vector.broadcast %464 : vector<1x128xf32> to vector<32x128xf32>
    %486 = arith.addf %484, %485 : vector<32x128xf32>
    %487 = arith.truncf %486 : vector<32x128xf32> to vector<32x128xbf16>
    %c1_140 = arith.constant 1 : index
    %c0_141 = arith.constant 0 : index
    %c0_142 = arith.constant 0 : index
    %488 = vector.load %arg8[%c1_140, %c0_141, %c0_142] : memref<2x128x256xbf16, #tpu.memory_space<vmem>>, vector<1x128x256xbf16>
    %489 = vector.shape_cast %488 : vector<1x128x256xbf16> to vector<128x256xbf16>
    %cst_143 = arith.constant dense<0.000000e+00> : vector<32x256xf32>
    %490 = tpu.matmul %487, %489, %cst_143 {dimension_numbers = #tpu.dot_dimension_numbers<[1], [0], [0], [1], [0, 0, 1, 1], [], []>} : vector<32x128xbf16>, vector<128x256xbf16>, vector<32x256xf32> -> vector<32x256xf32>
    %c1_144 = arith.constant 1 : index
    %c0_145 = arith.constant 0 : index
    %c0_146 = arith.constant 0 : index
    %491 = vector.load %arg9[%c1_144, %c0_145, %c0_146] : memref<2x1x256xf32, #tpu.memory_space<vmem>>, vector<1x1x256xf32>
    %492 = vector.shape_cast %491 : vector<1x1x256xf32> to vector<1x256xf32>
    %493 = vector.broadcast %492 : vector<1x256xf32> to vector<32x256xf32>
    %494 = arith.addf %490, %493 : vector<32x256xf32>
    %495 = arith.mulf %494, %494 : vector<32x256xf32>
    %496 = arith.mulf %494, %495 : vector<32x256xf32>
    %cst_147 = arith.constant 4.471500e-02 : f32
    %497 = vector.broadcast %cst_147 : f32 to vector<32x256xf32>
    %498 = arith.mulf %497, %496 : vector<32x256xf32>
    %499 = arith.addf %494, %498 : vector<32x256xf32>
    %cst_148 = arith.constant 0.797884583 : f32
    %500 = vector.broadcast %cst_148 : f32 to vector<32x256xf32>
    %501 = arith.mulf %500, %499 : vector<32x256xf32>
    %502 = math.tanh %501 : vector<32x256xf32>
    %cst_149 = arith.constant 1.000000e+00 : f32
    %503 = vector.broadcast %cst_149 : f32 to vector<32x256xf32>
    %504 = arith.addf %503, %502 : vector<32x256xf32>
    %cst_150 = arith.constant 5.000000e-01 : f32
    %505 = vector.broadcast %cst_150 : f32 to vector<32x256xf32>
    %506 = arith.mulf %505, %504 : vector<32x256xf32>
    %507 = arith.mulf %494, %506 : vector<32x256xf32>
    %508 = arith.truncf %507 : vector<32x256xf32> to vector<32x256xbf16>
    %c1_151 = arith.constant 1 : index
    %c0_152 = arith.constant 0 : index
    %c0_153 = arith.constant 0 : index
    %509 = vector.load %arg10[%c1_151, %c0_152, %c0_153] : memref<2x256x128xbf16, #tpu.memory_space<vmem>>, vector<1x256x128xbf16>
    %510 = vector.shape_cast %509 : vector<1x256x128xbf16> to vector<256x128xbf16>
    %cst_154 = arith.constant dense<0.000000e+00> : vector<32x128xf32>
    %511 = tpu.matmul %508, %510, %cst_154 {dimension_numbers = #tpu.dot_dimension_numbers<[1], [0], [0], [1], [0, 0, 1, 1], [], []>} : vector<32x256xbf16>, vector<256x128xbf16>, vector<32x128xf32> -> vector<32x128xf32>
    %c1_155 = arith.constant 1 : index
    %c0_156 = arith.constant 0 : index
    %c0_157 = arith.constant 0 : index
    %512 = vector.load %arg11[%c1_155, %c0_156, %c0_157] : memref<2x1x128xf32, #tpu.memory_space<vmem>>, vector<1x1x128xf32>
    %513 = vector.shape_cast %512 : vector<1x1x128xf32> to vector<1x128xf32>
    %514 = vector.broadcast %513 : vector<1x128xf32> to vector<32x128xf32>
    %515 = arith.addf %511, %514 : vector<32x128xf32>
    %516 = arith.addf %462, %515 : vector<32x128xf32>
    %c0_158 = arith.constant 0 : index
    %c0_159 = arith.constant 0 : index
    %517 = vector.load %arg12[%c0_158, %c0_159] : memref<2x128xf32, #tpu.memory_space<vmem>>, vector<1x128xf32>
    %c1_160 = arith.constant 1 : index
    %c0_161 = arith.constant 0 : index
    %518 = vector.load %arg12[%c1_160, %c0_161] : memref<2x128xf32, #tpu.memory_space<vmem>>, vector<1x128xf32>
    %cst_162 = arith.constant dense<0.000000e+00> : vector<32xf32>
    %519 = vector.multi_reduction <add>, %516, %cst_162 [1] : vector<32x128xf32> to vector<32xf32>
    %520 = vector.shape_cast %519 : vector<32xf32> to vector<32x1xf32>
    %cst_163 = arith.constant 1.280000e+02 : f32
    %521 = vector.broadcast %cst_163 : f32 to vector<32x1xf32>
    %522 = arith.divf %520, %521 : vector<32x1xf32>
    %523 = vector.broadcast %522 : vector<32x1xf32> to vector<32x128xf32>
    %524 = arith.subf %516, %523 : vector<32x128xf32>
    %525 = arith.mulf %524, %524 : vector<32x128xf32>
    %cst_164 = arith.constant dense<0.000000e+00> : vector<32xf32>
    %526 = vector.multi_reduction <add>, %525, %cst_164 [1] : vector<32x128xf32> to vector<32xf32>
    %527 = vector.shape_cast %526 : vector<32xf32> to vector<32x1xf32>
    %cst_165 = arith.constant 1.280000e+02 : f32
    %528 = vector.broadcast %cst_165 : f32 to vector<32x1xf32>
    %529 = arith.divf %527, %528 : vector<32x1xf32>
    %530 = vector.broadcast %522 : vector<32x1xf32> to vector<32x128xf32>
    %531 = arith.subf %516, %530 : vector<32x128xf32>
    %cst_166 = arith.constant 9.99999997E-7 : f32
    %532 = vector.broadcast %cst_166 : f32 to vector<32x1xf32>
    %533 = arith.addf %529, %532 : vector<32x1xf32>
    %534 = math.rsqrt %533 : vector<32x1xf32>
    %535 = vector.broadcast %534 : vector<32x1xf32> to vector<32x128xf32>
    %536 = arith.mulf %531, %535 : vector<32x128xf32>
    %537 = vector.broadcast %517 : vector<1x128xf32> to vector<32x128xf32>
    %538 = arith.mulf %536, %537 : vector<32x128xf32>
    %539 = vector.broadcast %518 : vector<1x128xf32> to vector<32x128xf32>
    %540 = arith.addf %538, %539 : vector<32x128xf32>
    %c0_167 = arith.constant 0 : index
    %c0_168 = arith.constant 0 : index
    %541 = vector.load %arg13[%c0_167, %c0_168] : memref<32x128xf32, #tpu.memory_space<vmem>>, vector<32x128xf32>
    tpu.vector_store %arg13[%c0_167, %c0_168], %540 {strides = array<i32>} : memref<32x128xf32, #tpu.memory_space<vmem>>, vector<32x128xf32>,
    return
  }
}

</mosaic_0001>

<bundles_post_ra>
// kernel: siglip_vision_model.1
= control target key start
LH: loop header
LB: loop body
LE: loop exit
PB: predicated region body
PF: predicated region fallthrough
CT: control target
= control target key end

     0   :  { %s7065_s0 = inlined_call_operand.vmem [shape: bf16[32,256], index: 0, kind: input, shape index: {}]   ;;  %s7066_s1 = inlined_call_operand.vmem [shape: bf16[256,128], index: 1, kind: input, shape index: {}]   ;;  %s7067_s2 = inlined_call_operand.vmem [shape: f32[32,128], index: 2, kind: input, shape index: {}]   ;;  %s7068_s3 = inlined_call_operand.vmem [shape: f32[2,4,128], index: 3, kind: input, shape index: {}]   ;;  %s7069_s4 = inlined_call_operand.vmem [shape: bf16[2,128,384], index: 4, kind: input, shape index: {}]   ;;  %s7070_s5 = inlined_call_operand.vmem [shape: f32[2,1,384], index: 5, kind: input, shape index: {}]   ;;  %s7071_s6 = inlined_call_operand.vmem [shape: bf16[2,128,128], index: 6, kind: input, shape index: {}]   ;;  %s7072_s7 = inlined_call_operand.vmem [shape: f32[2,1,128], index: 7, kind: input, shape index: {}]   ;;  %s7073_s8 = inlined_call_operand.vmem [shape: bf16[2,128,256], index: 8, kind: input, shape index: {}]   ;;  %s7074_s9 = inlined_call_operand.vmem [shape: f32[2,1,256], index: 9, kind: input, shape index: {}]   ;;  %s7075_s10 = inlined_call_operand.vmem [shape: bf16[2,256,128], index: 10, kind: input, shape index: {}]   ;;  %s7076_s11 = inlined_call_operand.vmem [shape: f32[2,1,128], index: 11, kind: input, shape index: {}]   ;;  %s7077_s12 = inlined_call_operand.vmem [shape: f32[2,128], index: 12, kind: input, shape index: {}]   ;;  %s7078_s13 = inlined_call_operand.hbm [shape: f32[32,128], index: 13, kind: output, shape index: {}]  }
   0x1   :  { %v5238_v0 = vld [vmem:[%s7066_s1 + $0x40] sm:$0xff]   ;;  %v5240_v2 = vld [vmem:[%s7066_s1 + $0x48] sm:$0xff]   ;;  %v5242_v4 = vld [vmem:[%s7066_s1 + $0x50] sm:$0xff]  }
   0x2   :  { %v5239_v1 = vld [vmem:[%s7066_s1] sm:$0xff]   ;;  %4660 = vmatprep.subr.bf16.mxu0 %v5238_v0  ;;  %v5241_v3 = vld [vmem:[%s7066_s1 + $0x8] sm:$0xff]   ;;  %v5243_v5 = vld [vmem:[%s7066_s1 + $0x10] sm:$0xff]  }
   0x3   :  { %4661 = vmatpush3.bf16.msra.mxu0 %v5239_v1  ;;  %v5244_v6 = vld [vmem:[%s7066_s1 + $0x58] sm:$0xff]   ;;  %v5246_v8 = vld [vmem:[%s7066_s1 + $0x60] sm:$0xff]   ;;  %v5248_v10 = vld [vmem:[%s7066_s1 + $0x68] sm:$0xff]  }
   0x4   :  { %4662 = vmatprep.subr.bf16.mxu0 %v5240_v2  ;;  %v5245_v7 = vld [vmem:[%s7066_s1 + $0x18] sm:$0xff]   ;;  %v5247_v9 = vld [vmem:[%s7066_s1 + $0x20] sm:$0xff]   ;;  %v5249_v12 = vld [vmem:[%s7066_s1 + $0x28] sm:$0xff]  }
   0x5   :  { %v5256_v11 = vld [vmem:[%s7065_s0 + $0x4] ss:$8 sps:$4 sm:$0xff]   ;;  %v5250_v13 = vld [vmem:[%s7066_s1 + $0x70] sm:$0xff]   ;;  %v5252_v15 = vld [vmem:[%s7066_s1 + $0x78] sm:$0xff]  }
   0x6   :  { %234 = vmatprep.mubr.bf16.mxu0 %v5256_v11  ;;  %v5251_v14 = vld [vmem:[%s7066_s1 + $0x30] sm:$0xff]   ;;  %v5253_v16 = vld [vmem:[%s7066_s1 + $0x38] sm:$0xff]   ;;  %v5254_v17 = vld [vmem:[%s7065_s0] ss:$8 sps:$4 sm:$0xff]  }
   0x7   :  { %4663 = vmatpush3.bf16.msra.mxu0 %v5241_v3  ;;  %v5257_v18 = vld [vmem:[%s7065_s0 + $0x14] ss:$8 sps:$4 sm:$0xff]   ;;  %v5259_v19 = vld [vmem:[%s7065_s0 + $0x10] ss:$8 sps:$4 sm:$0xff]  }
   0x8   :  { %4664 = vmatprep.subr.bf16.mxu0 %v5242_v4 }
   0xb   :  { %4665 = vmatpush3.bf16.msra.mxu0 %v5243_v5 }
   0xc   :  { %4666 = vmatprep.subr.bf16.mxu0 %v5244_v6 }
   0xf   :  { %4667 = vmatpush3.bf16.msra.mxu0 %v5245_v7 }
  0x10   :  { %4668 = vmatprep.subr.bf16.mxu0 %v5246_v8 }
  0x13   :  { %4669 = vmatpush3.bf16.msra.mxu0 %v5247_v9 }
  0x14   :  { %4670 = vmatprep.subr.bf16.mxu0 %v5248_v10 }
  0x17   :  { %4671 = vmatpush3.bf16.msra.mxu0 %v5249_v12 }
  0x18   :  { %4672 = vmatprep.subr.bf16.mxu0 %v5250_v13 }
  0x1b   :  { %4673 = vmatpush3.bf16.msra.mxu0 %v5251_v14 }
  0x1c   :  { %4674 = vmatprep.subr.bf16.mxu0 %v5252_v15 }
  0x1f   :  { %4675 = vmatpush3.bf16.msra.mxu0 %v5253_v16 }
  0x22   :  { %235 = vmatmul.mubr.bf16.vlgmr.msra.gmra.mrb[0].mxu0 %v5254_v17 }
  0x23   :  { %242 = vmatprep.mubr.bf16.mxu0 %v5257_v18 }
  0x2a   :  { %243 = vmatmul.mubr.bf16.gmra.mrb[4].mxu0 %v5259_v19 }
  0x2b   :  { %18 = vsyncpa [#allocation3], 0  ;;  %v82_v21 = vld [vmem:[%s7067_s2] sm:$0xff]  ;;  %v83_v28 = vld [vmem:[%s7067_s2 + $0x8] sm:$0xff]  ;;  %v5646_v7 = vmov 0   ;;  %v297_v14 = vlaneseq  ;;  %vm5648_vm0 = vmmov 0  }
  0x2c   :  { %v84_v31 = vld [vmem:[%s7067_s2 + $0x10] sm:$0xff]  ;;  %v85_v38 = vld [vmem:[%s7067_s2 + $0x18] sm:$0xff]  ;;  %v5262_v41 = vld [vmem:[%s7069_s4] ss:$12 sps:$4 sm:$0xff]   ;;  %524 = vmatprep.mubr.bf16.mxu1 %v5646_v7  ;;  %s5649_s1 = smov 96   ;;  %vm630_vm1 = vcmask 261120  }
  0x2d   :  { %v5260_v40 = vld [vmem:[%s7069_s4 + $0x4] ss:$12 sps:$4 sm:$0xff]   ;;  %v5263_v42 = vld [vmem:[%s7069_s4 + $0x1c] ss:$12 sps:$4 sm:$0xff]   ;;  %v5266_v60 = vld [vmem:[%s7069_s4 + $0x34] ss:$12 sps:$4 sm:$0xff]  }
  0x2e   :  { %492 = vmatprep.subr.bf16.mxu1 %v5260_v40  ;;  %v5265_v43 = vld [vmem:[%s7069_s4 + $0x18] ss:$12 sps:$4 sm:$0xff]   ;;  %v5268_v61 = vld [vmem:[%s7069_s4 + $0x30] ss:$12 sps:$4 sm:$0xff]   ;;  %v5271_v63 = vld [vmem:[%s7069_s4 + $0x48] ss:$12 sps:$4 sm:$0xff]  }
  0x2f   :  { %493 = vmatpush1.bf16.msra.mxu1 %v5262_v41  ;;  %v5269_v62 = vld [vmem:[%s7069_s4 + $0x4c] ss:$12 sps:$4 sm:$0xff]   ;;  %v5272_v0 = vld [vmem:[%s7069_s4 + $0x64] ss:$12 sps:$4 sm:$0xff]   ;;  %v5275_v2 = vld [vmem:[%s7069_s4 + $0x7c] ss:$12 sps:$4 sm:$0xff]  }
  0x30   :  { %494 = vmatprep.subr.bf16.mxu1 %v5263_v42  ;;  %v5274_v1 = vld [vmem:[%s7069_s4 + $0x60] ss:$12 sps:$4 sm:$0xff]   ;;  %v5277_v3 = vld [vmem:[%s7069_s4 + $0x78] ss:$12 sps:$4 sm:$0xff]   ;;  %v5280_v5 = vld [vmem:[%s7069_s4 + $0x90] ss:$12 sps:$4 sm:$0xff]  }
  0x31   :  { %v5278_v4 = vld [vmem:[%s7069_s4 + $0x94] ss:$12 sps:$4 sm:$0xff]   ;;  %v5281_v6 = vld [vmem:[%s7069_s4 + $0xac] ss:$12 sps:$4 sm:$0xff]   ;;  %v5882_v18 = vshrl.u32 %v297_v14, 7  ;;  %vm675_vm2 = vcmask 130048  }
  0x32   :  { %v5283_v8 = vld [vmem:[%s7069_s4 + $0xa8] ss:$12 sps:$4 sm:$0xff]   ;;  %s5650_s14 = smov 64   ;;  %s5651_s15 = smov 32   ;;  %vm1125_vm3 = vcmask 523264   ;;  %vm1128_vm4 = vcmask 785408  }
  0x33   :  { %495 = vmatpush1.bf16.msra.mxu1 %v5265_v43  ;;  %v5284_v9 = vld [vmem:[%s7069_s4 + $0x8] ss:$12 sps:$4 sm:$0xff]   ;;  %s5652_s16 = smov 112   ;;  %s5653_s22 = smov [#allocation2]  }
  0x34   :  { %496 = vmatprep.subr.bf16.mxu1 %v5266_v60 }
  0x37   :  { %497 = vmatpush1.bf16.msra.mxu1 %v5268_v61 }
  0x38   :  { %498 = vmatprep.subr.bf16.mxu1 %v5269_v62 }
  0x3b   :  { %499 = vmatpush1.bf16.msra.mxu1 %v5271_v63 }
  0x3c   :  { %500 = vmatprep.subr.bf16.mxu1 %v5272_v0 }
  0x3f   :  { %501 = vmatpush1.bf16.msra.mxu1 %v5274_v1 }
  0x40   :  { %502 = vmatprep.subr.bf16.mxu1 %v5275_v2 }
  0x43   :  { %503 = vmatpush1.bf16.msra.mxu1 %v5277_v3 }
  0x44   :  { %504 = vmatprep.subr.bf16.mxu1 %v5278_v4 }
  0x47   :  { %505 = vmatpush1.bf16.msra.mxu1 %v5280_v5 }
  0x48   :  { %506 = vmatprep.subr.bf16.mxu1 %v5281_v6 }
  0x4b   :  { %507 = vmatpush1.bf16.msra.mxu1 %v5283_v8 }
  0x4c   :  { %4864 = vmatprep.subr.bf16.mxu1 %v5284_v9 }
  0xf5   :  { %v4676_v20 = vpop.f32.mrb[0].mxu0 }
  0xf6   :  { %v4677_v22 = vpop.f32.mrb[1].mxu0 }
  0xf7   :  { %v4678_v23 = vadd.f32 %v4677_v22, %v4676_v20  ;;  %v4679_v24 = vpop.f32.mrb[2].mxu0  ;;  %v5885_v22 = vsub.s32 0, %v5882_v18 }
  0xf8   :  { %v4680_v25 = vpop.f32.mrb[3].mxu0 }
  0xf9   :  { %v5789_v26 = vadd.f32 %v4678_v23, %v82_v21  ;;  %v4681_v27 = vadd.f32 %v4680_v25, %v4679_v24  ;;  %v251_v24 = vld [vmem:[%s7068_s3] sm:$0xf] }
  0xfb   :  { %252 = vadd.xlane.f32.xlu0 %v5789_v26  ;;  %v5795_v29 = vadd.f32 %v4681_v27, %v83_v28 }
  0xfd   :  { %v4682_v30 = vpop.f32.mrb[4].mxu0 }
  0xfe   :  { %v4683_v32 = vpop.f32.mrb[5].mxu0 }
  0xff   :  { %v4684_v33 = vadd.f32 %v4683_v32, %v4682_v30  ;;  %v4685_v34 = vpop.f32.mrb[6].mxu0  ;;  %254 = vadd.xlane.f32.xlu0 %v5795_v29  ;;  %v300_v30 = vrot.slane %v251_v24, %v5885_v22 }
 0x100   :  { %v4686_v35 = vpop.f32.mrb[7].mxu0 }
 0x101   :  { %v5801_v36 = vadd.f32 %v4684_v33, %v84_v31  ;;  %v4687_v37 = vadd.f32 %v4686_v35, %v4685_v34  ;;  %v5893_v31 = vsub.s32 1, %v5882_v18 }
 0x103   :  { %256 = vadd.xlane.f32.xlu1 %v5801_v36  ;;  %v5807_v39 = vadd.f32 %v4687_v37, %v85_v38  ;;  %v308_v35 = vrot.slane %v251_v24, %v5893_v31 }
 0x107   :  { %258 = vadd.xlane.f32.xlu1 %v5807_v39 }
 0x188   :  { %v253_v44 = vpop.xlane.xlu0 %252 }
 0x189   :  { %v261_v45 = vmul.f32 0.0078125, %v253_v44  ;;  %v5285_v44 = vld [vmem:[%s7069_s4 + $0x20] ss:$12 sps:$4 sm:$0xff]  }
 0x18b   :  { %v5823_v46 = vsub.f32 %v5789_v26, %v261_v45 }
 0x18c   :  { %v255_v47 = vpop.xlane.xlu0 %254 }
 0x18d   :  { %v262_v48 = vmul.f32 0.0078125, %v255_v47  ;;  %v269_v49 = vmul.f32 %v5823_v46, %v5823_v46 }
 0x18f   :  { %273 = vadd.xlane.f32.xlu0 %v269_v49  ;;  %v5828_v50 = vsub.f32 %v5795_v29, %v262_v48  ;;  %v5286_v48 = vld [vmem:[%s7069_s4 + $0x38] ss:$12 sps:$4 sm:$0xff]  }
 0x190   :  { %v257_v51 = vpop.xlane.xlu1 %256 }
 0x191   :  { %v263_v52 = vmul.f32 0.0078125, %v257_v51  ;;  %v270_v53 = vmul.f32 %v5828_v50, %v5828_v50 }
 0x193   :  { %275 = vadd.xlane.f32.xlu1 %v270_v53  ;;  %v5833_v54 = vsub.f32 %v5801_v36, %v263_v52  ;;  %v5287_v53 = vld [vmem:[%s7069_s4 + $0x50] ss:$12 sps:$4 sm:$0xff]  }
 0x194   :  { %v259_v55 = vpop.xlane.xlu1 %258 }
 0x195   :  { %v264_v56 = vmul.f32 0.0078125, %v259_v55  ;;  %v271_v57 = vmul.f32 %v5833_v54, %v5833_v54  ;;  %v5289_v55 = vld [vmem:[%s7069_s4 + $0x80] ss:$12 sps:$4 sm:$0xff]  }
 0x197   :  { %277 = vadd.xlane.f32.xlu0 %v271_v57  ;;  %v5838_v58 = vsub.f32 %v5807_v39, %v264_v56  ;;  %v5290_v56 = vld [vmem:[%s7069_s4 + $0x98] ss:$12 sps:$4 sm:$0xff]   ;;  %v5291_v57 = vld [vmem:[%s7069_s4 + $0xb0] ss:$12 sps:$4 sm:$0xff]  }
 0x199   :  { %v272_v59 = vmul.f32 %v5838_v58, %v5838_v58 }
 0x19b   :  { %279 = vadd.xlane.f32.xlu1 %v272_v59  ;;  %v347_v59 = vld [vmem:[%s7070_s5] sm:$0x7] }
 0x19c   :  { %v356_v60 = vrot.slane %v347_v59, %v5893_v31  ;;  %v352_v61 = vrot.slane %v347_v59, %v5885_v22 }
 0x21c   :  { %v274_v10 = vpop.xlane.xlu0 %273 }
 0x21d   :  { %v281_v11 = vmul.f32 0.0078125, %v274_v10 }
 0x21f   :  { %v285_v12 = vadd.f32 1e-06, %v281_v11 }
 0x220   :  { %v276_v13 = vpop.xlane.xlu1 %275 }
 0x221   :  { %5420 = vrsqrt.f32 %v285_v12  ;;  %v282_v15 = vmul.f32 0.0078125, %v276_v13 }
 0x223   :  { %v286_v16 = vadd.f32 1e-06, %v282_v15 }
 0x224   :  { %v278_v17 = vpop.xlane.xlu0 %277 }
 0x225   :  { %5422 = vrsqrt.f32 %v286_v16  ;;  %v283_v19 = vmul.f32 0.0078125, %v278_v17  ;;  %v5937_v17 = vsub.s32 2, %v5882_v18 }
 0x227   :  { %v287_v20 = vadd.f32 1e-06, %v283_v19  ;;  %v360_v19 = vrot.slane %v347_v59, %v5937_v17 }
 0x228   :  { %v280_v21 = vpop.xlane.xlu1 %279 }
 0x229   :  { %5424 = vrsqrt.f32 %v287_v20  ;;  %v284_v23 = vmul.f32 0.0078125, %v280_v21 }
 0x22b   :  { %v5421_v25 = vpop.eup %5420  ;;  %v288_v27 = vadd.f32 1e-06, %v284_v23 }
 0x22c   :  { %v293_v28 = vmul.f32 %v5421_v25, %v5823_v46 }
 0x22d   :  { %5426 = vrsqrt.f32 %v288_v27 }
 0x22e   :  { %v301_v34 = vmul.f32 %v300_v30, %v293_v28 }
 0x22f   :  { %v5423_v32 = vpop.eup %5422 }
 0x230   :  { %v294_v33 = vmul.f32 %v5423_v32, %v5828_v50  ;;  %v309_v40 = vadd.f32 %v308_v35, %v301_v34 }
 0x232   :  { %v302_v37 = vmul.f32 %v300_v30, %v294_v33 }
 0x233   :  { %v5425_v38 = vpop.eup %5424 }
 0x234   :  { %v310_v41 = vadd.f32 %v308_v35, %v302_v37  ;;  %v295_v42 = vmul.f32 %v5425_v38, %v5833_v54  ;;  %v5288_v54 = vld [vmem:[%s7069_s4 + $0x68] ss:$12 sps:$4 sm:$0xff]  }
 0x236   :  { %v313_v43 = vpack.c.bf16 %v310_v41, %v309_v40  ;;  %v303_v47 = vmul.f32 %v300_v30, %v295_v42 }
 0x237   :  { %v5427_v45 = vpop.eup %5426 }
 0x238   :  { %525 = vmatmul.mubr.bf16.vlgmr.msra.gmra.mrb[0].mxu1 %v313_v43  ;;  %v296_v46 = vmul.f32 %v5427_v45, %v5838_v58  ;;  %v311_v50 = vadd.f32 %v308_v35, %v303_v47  ;;  %v5647_v58 = vmov 0.0  }
 0x239   :  { %4865 = vmatpush3.bf16.msra.mxu1 %v5284_v9  ;;  %534 = vmatprep.mubr.bf16.mxu1 %v5646_v7 }
 0x23a   :  { %4866 = vmatprep.subr.bf16.mxu1 %v5285_v44  ;;  %v304_v49 = vmul.f32 %v300_v30, %v296_v46  ;;  %4884 = vmatprep.subr.bf16.mxu0 %v5647_v58 }
 0x23b   :  { %4888 = vmatprep.mubr.msk.bf16.mxu0 %vm5648_vm0, %v5647_v58 }
 0x23c   :  { %v312_v51 = vadd.f32 %v308_v35, %v304_v49 }
 0x23d   :  { %4867 = vmatpush3.bf16.msra.mxu1 %v5285_v44 }
 0x23e   :  { %4868 = vmatprep.subr.bf16.mxu1 %v5286_v48  ;;  %v314_v52 = vpack.c.bf16 %v312_v51, %v311_v50 }
 0x240   :  { %535 = vmatmul.mubr.bf16.gmra.mrb[4].mxu1 %v314_v52 }
 0x241   :  { %4869 = vmatpush3.bf16.msra.mxu1 %v5286_v48  ;;  %4880 = vmatprep.mubr.bf16.mxu1 %v313_v43 }
 0x242   :  { %4870 = vmatprep.subr.bf16.mxu1 %v5287_v53 }
 0x245   :  { %4871 = vmatpush3.bf16.msra.mxu1 %v5287_v53 }
 0x246   :  { %4872 = vmatprep.subr.bf16.mxu1 %v5288_v54 }
 0x249   :  { %4873 = vmatpush3.bf16.msra.mxu1 %v5288_v54 }
 0x24a   :  { %4874 = vmatprep.subr.bf16.mxu1 %v5289_v55 }
 0x24d   :  { %4875 = vmatpush3.bf16.msra.mxu1 %v5289_v55 }
 0x24e   :  { %4876 = vmatprep.subr.bf16.mxu1 %v5290_v56 }
 0x251   :  { %4877 = vmatpush3.bf16.msra.mxu1 %v5290_v56 }
 0x252   :  { %4878 = vmatprep.subr.bf16.mxu1 %v5291_v57 }
 0x255   :  { %4879 = vmatpush3.bf16.msra.mxu1 %v5291_v57 }
 0x256   :  { %4892 = vmatprep.subr.bf16.mxu1 %v5647_v58 }
 0x258   :  { %4881 = vmatmul.mubr.bf16.vlgmr.msra.gmra.mrb[8].mxu1 %v314_v52 }
 0x259   :  { %4894 = vmatprep.mubr.msk.bf16.mxu1 %vm5648_vm0, %v5647_v58 }
 0x30b   :  { %v526_v62 = vpop.f32.mrb[0].mxu1 }
 0x30c   :  { %v528_v63 = vpop.f32.mrb[1].mxu1  ;;  %v527_v2 = vadd.f32 %v526_v62, %v352_v61 }
 0x30d   :  { %v529_v0 = vadd.f32 %v528_v63, %v356_v60  ;;  %v530_v1 = vpop.f32.mrb[2].mxu1 }
 0x30e   :  { %v531_v3 = vadd.f32 %v530_v1, %v352_v61  ;;  %v532_v4 = vpop.f32.mrb[3].mxu1 }
 0x30f   :  { %594 = vxpose.xlu0.b32.start [1/4] (short) %v529_v0, 128  ;;  %v533_v6 = vadd.f32 %v532_v4, %v356_v60 }
 0x310   :  { %v5928_v5 = vpack.c.bf16 %v531_v3, %v527_v2 }
 0x313   :  { %595 = vxpose.xlu0.b32.cont [2/4] (short) %v533_v6, 128  ;;  %v536_v8 = vpop.f32.mrb[4].mxu1 }
 0x314   :  { %v538_v9 = vpop.f32.mrb[5].mxu1  ;;  %v537_v12 = vadd.f32 %v536_v8, %v352_v61 }
 0x315   :  { %v539_v10 = vadd.f32 %v538_v9, %v356_v60  ;;  %v540_v11 = vpop.f32.mrb[6].mxu1 }
 0x316   :  { %v541_v13 = vadd.f32 %v540_v11, %v352_v61  ;;  %v542_v14 = vpop.f32.mrb[7].mxu1 }
 0x317   :  { %596 = vxpose.xlu0.b32.cont [3/4] (short) %v539_v10, 128  ;;  %v543_v16 = vadd.f32 %v542_v14, %v356_v60 }
 0x318   :  { %v5930_v15 = vpack.c.bf16 %v541_v13, %v537_v12 }
 0x31b   :  { %597 = vxpose.xlu0.b32.end [4/4] (short) %v543_v16, 128 }
 0x32b   :  { %v4882_v20 = vpop.f32.mrb[8].mxu1 }
 0x32c   :  { %v588_v21 = vadd.f32 %v4882_v20, %v360_v19  ;;  %v579_v23 = vpop.f32.mrb[9].mxu1 }
 0x32d   :  { %v4883_v24 = vpop.f32.mrb[10].mxu1  ;;  %v580_v28 = vadd.f32 %v579_v23, %v360_v19 }
 0x32e   :  { %v591_v25 = vadd.f32 %v4883_v24, %v360_v19  ;;  %v582_v27 = vpop.f32.mrb[11].mxu1 }
 0x32f   :  { %v583_v30 = vadd.f32 %v582_v27, %v360_v19 }
 0x330   :  { %v5940_v32 = vpack.c.bf16 %v591_v25, %v588_v21 }
 0x331   :  { %v5942_v33 = vpack.c.bf16 %v583_v30, %v580_v28 }
 0x333   :  { %4893 = vmatpush3.bf16.msra.mxu1 %v5942_v33 }
 0x334   :  { %4898 = vmatprep.subr.bf16.mxu1 %v5647_v58 }
 0x374   :  { %1253 = vrot.lane.b32.xlu0 %v5930_v15, %s5649_s1 }
 0x38f   :  { %v610_v34 = vpop.trf.xlu0 }
 0x393   :  { %v611_v35 = vpop.trf.xlu0 }
 0x394   :  { %v627_v37 = vpack.c.bf16 %v611_v35, %v610_v34 }
 0x396   :  { %4885 = vmatpush3.bf16.msra.mxu0 %v627_v37 }
 0x397   :  { %v612_v38 = vpop.trf.xlu0  ;;  %4886 = vmatprep.subr.bf16.mxu0 %v5647_v58 }
 0x39b   :  { %v613_v40 = vpop.trf.xlu0 }
 0x39c   :  { %v628_v41 = vpack.c.bf16 %v613_v40, %v612_v38 }
 0x39e   :  { %4887 = vmatpush3.bf16.msra.mxu0 %v628_v41 }
 0x39f   :  { %4906 = vmatprep.subr.bf16.mxu0 %v5647_v58  ;;  %v614_v54 = vpop.trf.xlu0 }
 0x3a1   :  { %4889 = vmatmul.mubr.msk.bf16.vlgmr.msra.gmra.mrb[8].mxu0 %vm630_vm1, %v5928_v5 }
 0x3a2   :  { %4908 = vmatprep.mubr.msk.bf16.mxu0 %vm5648_vm0, %v5647_v58 }
 0x3a3   :  { %v615_v57 = vpop.trf.xlu0 }
 0x3a4   :  { %v743_v3 = vpack.c.bf16 %v615_v57, %v614_v54 }
 0x3a7   :  { %v616_v61 = vpop.trf.xlu0 }
 0x3ab   :  { %v617_v62 = vpop.trf.xlu0 }
 0x3ac   :  { %v744_v4 = vpack.c.bf16 %v617_v62, %v616_v61 }
 0x3af   :  { %v618_v63 = vpop.trf.xlu0 }
 0x3b3   :  { %v619_v0 = vpop.trf.xlu0 }
 0x3b4   :  { %v863_v8 = vpack.c.bf16 %v619_v0, %v618_v63 }
 0x3b7   :  { %v620_v1 = vpop.trf.xlu0 }
 0x3bb   :  { %v621_v2 = vpop.trf.xlu0 }
 0x3bc   :  { %v864_v10 = vpack.c.bf16 %v621_v2, %v620_v1 }
 0x3bf   :  { %v622_v6 = vpop.trf.xlu0 }
 0x3c3   :  { %v623_v9 = vpop.trf.xlu0 }
 0x3c4   :  { %v981_v11 = vpack.c.bf16 %v623_v9, %v622_v6 }
 0x474   :  { %v668_v42 = vpop.f32.mrb[8].mxu0 }
 0x475   :  { %v4890_v43 = vpop.f32.mrb[9].mxu0  ;;  %v676_v44 = vsel %vm675_vm2, %v668_v42, -inf }
 0x476   :  { %677 = vmax.xlane.f32.xlu1 %v676_v44  ;;  %v671_v45 = vpop.f32.mrb[10].mxu0 }
 0x477   :  { %v4891_v46 = vpop.f32.mrb[11].mxu0  ;;  %v679_v47 = vsel %vm675_vm2, %v671_v45, -inf }
 0x47a   :  { %680 = vmax.xlane.f32.xlu1 %v679_v47 }
 0x503   :  { %v678_v48 = vpop.xlane.xlu1 %677 }
 0x504   :  { %v682_v49 = vsub.f32 %v668_v42, %v678_v48 }
 0x506   :  { %v684_v50 = vmul.f32 1.442695, %v682_v49 }
 0x507   :  { %v681_v51 = vpop.xlane.xlu1 %680 }
 0x508   :  { %5428 = vpow2.f32 %v684_v50  ;;  %v683_v52 = vsub.f32 %v671_v45, %v681_v51 }
 0x50a   :  { %v686_v53 = vmul.f32 1.442695, %v683_v52 }
 0x50c   :  { %5430 = vpow2.f32 %v686_v53 }
 0x512   :  { %v5429_v55 = vpop.eup %5428 }
 0x513   :  { %v688_v56 = vsel %vm675_vm2, %v5429_v55, 0.0 }
 0x514   :  { %689 = vadd.xlane.f32.xlu1 %v688_v56 }
 0x516   :  { %v5431_v59 = vpop.eup %5430 }
 0x517   :  { %v691_v60 = vsel %vm675_vm2, %v5431_v59, 0.0 }
 0x518   :  { %692 = vadd.xlane.f32.xlu1 %v691_v60 }
 0x529   :  { %746 = vrot.lane.b32.xlu1 %v5928_v5, %s5649_s1 }
 0x52d   :  { %865 = vrot.lane.b32.xlu1 %v5928_v5, %s5650_s14 }
 0x531   :  { %983 = vrot.lane.b32.xlu1 %v5928_v5, %s5651_s15  ;;  %v624_v5 = vpop.trf.xlu0 }
 0x535   :  { %1135 = vrot.lane.b32.xlu1 %v627_v37, %s5652_s16  ;;  %v625_v12 = vpop.trf.xlu0 }
 0x536   :  { %v982_v13 = vpack.c.bf16 %v625_v12, %v624_v5 }
 0x539   :  { %1137 = vrot.lane.b32.xlu1 %v628_v41, %s5652_s16  ;;  %v1254_v42 = vpop.permute.xlu0 %1253 }
 0x53d   :  { %1257 = vrot.lane.b32.xlu1 %v743_v3, %s5652_s16 }
 0x541   :  { %1259 = vrot.lane.b32.xlu1 %v744_v4, %s5652_s16 }
 0x545   :  { %1382 = vrot.lane.b32.xlu1 %v863_v8, %s5652_s16 }
 0x549   :  { %1384 = vrot.lane.b32.xlu1 %v864_v10, %s5652_s16 }
 0x54d   :  { %1378 = vrot.lane.b32.xlu1 %v5930_v15, %s5650_s14 }
 0x551   :  { %1506 = vrot.lane.b32.xlu1 %v981_v11, %s5652_s16 }
 0x555   :  { %1508 = vrot.lane.b32.xlu1 %v982_v13, %s5652_s16 }
 0x559   :  { %1502 = vrot.lane.b32.xlu1 %v5930_v15, %s5651_s15 }
 0x5a1   :  { %v690_v14 = vpop.xlane.xlu1 %689 }
 0x5a2   :  { %5432 = vrcp.f32 %v690_v14 }
 0x5a5   :  { %v693_v16 = vpop.xlane.xlu1 %692 }
 0x5a6   :  { %5434 = vrcp.f32 %v693_v16 }
 0x5a9   :  { %v747_v19 = vpop.permute.xlu1 %746 }
 0x5ac   :  { %v5433_v21 = vpop.eup %5432 }
 0x5ad   :  { %v866_v20 = vpop.permute.xlu1 %865  ;;  %v696_v24 = vmul.f32 %v5433_v21, %v5429_v55 }
 0x5b0   :  { %v5435_v23 = vpop.eup %5434 }
 0x5b1   :  { %v697_v25 = vmul.f32 %v5435_v23, %v5431_v59  ;;  %v984_v27 = vpop.permute.xlu1 %983 }
 0x5b3   :  { %v698_v28 = vpack.c.bf16 %v697_v25, %v696_v24 }
 0x5b5   :  { %4895 = vmatmul.mubr.msk.bf16.vlgmr.msra.gmra.mrb[12].mxu1 %vm675_vm2, %v698_v28  ;;  %v1136_v30 = vpop.permute.xlu1 %1135 }
 0x5b6   :  { %4899 = vmatpush3.bf16.msra.mxu1 %v743_v3  ;;  %4902 = vmatprep.mubr.msk.bf16.mxu1 %vm5648_vm0, %v5647_v58 }
 0x5b7   :  { %4900 = vmatprep.subr.bf16.mxu1 %v5647_v58 }
 0x5b9   :  { %v1138_v34 = vpop.permute.xlu1 %1137 }
 0x5ba   :  { %4901 = vmatpush3.bf16.msra.mxu1 %v744_v4 }
 0x5bb   :  { %4912 = vmatprep.subr.bf16.mxu1 %v5647_v58 }
 0x5bd   :  { %4903 = vmatmul.mubr.msk.bf16.vlgmr.msra.gmra.mrb[16].mxu1 %vm630_vm1, %v747_v19  ;;  %v1258_v35 = vpop.permute.xlu1 %1257 }
 0x5be   :  { %4913 = vmatpush3.bf16.msra.mxu1 %v863_v8  ;;  %4916 = vmatprep.mubr.msk.bf16.mxu1 %vm5648_vm0, %v5647_v58 }
 0x5bf   :  { %4914 = vmatprep.subr.bf16.mxu1 %v5647_v58 }
 0x5c1   :  { %v1260_v37 = vpop.permute.xlu1 %1259 }
 0x5c2   :  { %4915 = vmatpush3.bf16.msra.mxu1 %v864_v10 }
 0x5c3   :  { %4926 = vmatprep.subr.bf16.mxu1 %v5647_v58 }
 0x5c5   :  { %4917 = vmatmul.mubr.msk.bf16.vlgmr.msra.gmra.mrb[20].mxu1 %vm630_vm1, %v866_v20  ;;  %v1383_v38 = vpop.permute.xlu1 %1382 }
 0x5c6   :  { %4927 = vmatpush3.bf16.msra.mxu1 %v981_v11  ;;  %4930 = vmatprep.mubr.msk.bf16.mxu1 %vm5648_vm0, %v5647_v58 }
 0x5c7   :  { %4928 = vmatprep.subr.bf16.mxu1 %v5647_v58 }
 0x5c9   :  { %v1385_v40 = vpop.permute.xlu1 %1384 }
 0x5ca   :  { %4929 = vmatpush3.bf16.msra.mxu1 %v982_v13 }
 0x5cb   :  { %4940 = vmatprep.subr.bf16.mxu1 %v5647_v58 }
 0x5cd   :  { %4931 = vmatmul.mubr.msk.bf16.vlgmr.msra.gmra.mrb[24].mxu1 %vm630_vm1, %v984_v27  ;;  %v1379_v41 = vpop.permute.xlu1 %1378 }
 0x5ce   :  { %4941 = vmatpush3.bf16.msra.mxu1 %v1136_v30  ;;  %4944 = vmatprep.mubr.msk.bf16.mxu1 %vm5648_vm0, %v5647_v58 }
 0x5cf   :  { %4942 = vmatprep.subr.bf16.mxu1 %v5647_v58 }
 0x5d2   :  { %4943 = vmatpush3.bf16.msra.mxu1 %v1138_v34 }
 0x5d3   :  { %4954 = vmatprep.subr.bf16.mxu1 %v5647_v58 }
 0x5d5   :  { %4945 = vmatmul.mubr.msk.bf16.vlgmr.msra.gmra.mrb[28].mxu1 %vm630_vm1, %v5930_v15  ;;  %v1507_v15 = vpop.permute.xlu1 %1506 }
 0x5d6   :  { %4955 = vmatpush3.bf16.msra.mxu1 %v1258_v35  ;;  %4958 = vmatprep.mubr.msk.bf16.mxu1 %vm5648_vm0, %v5647_v58 }
 0x5d7   :  { %4956 = vmatprep.subr.bf16.mxu1 %v5647_v58 }
 0x5d9   :  { %v1509_v43 = vpop.permute.xlu1 %1508 }
 0x5da   :  { %4957 = vmatpush3.bf16.msra.mxu1 %v1260_v37 }
 0x5db   :  { %4968 = vmatprep.subr.bf16.mxu1 %v5647_v58 }
 0x5dd   :  { %4959 = vmatmul.mubr.msk.bf16.vlgmr.msra.gmra.mrb[32].mxu1 %vm630_vm1, %v1254_v42  ;;  %v1503_v44 = vpop.permute.xlu1 %1502 }
 0x5de   :  { %4969 = vmatpush3.bf16.msra.mxu1 %v1383_v38  ;;  %4972 = vmatprep.mubr.msk.bf16.mxu1 %vm5648_vm0, %v5647_v58 }
 0x5df   :  { %4970 = vmatprep.subr.bf16.mxu1 %v5647_v58 }
 0x5e2   :  { %4971 = vmatpush3.bf16.msra.mxu1 %v1385_v40 }
 0x5e3   :  { %4982 = vmatprep.subr.bf16.mxu1 %v5647_v58 }
 0x5e5   :  { %4973 = vmatmul.mubr.msk.bf16.vlgmr.msra.gmra.mrb[36].mxu1 %vm630_vm1, %v1379_v41 }
 0x5e6   :  { %4983 = vmatpush3.bf16.msra.mxu1 %v1507_v15  ;;  %4986 = vmatprep.mubr.msk.bf16.mxu1 %vm5648_vm0, %v5647_v58 }
 0x5e7   :  { %4984 = vmatprep.subr.bf16.mxu1 %v5647_v58 }
 0x5ea   :  { %4985 = vmatpush3.bf16.msra.mxu1 %v1509_v43 }
 0x5ed   :  { %4987 = vmatmul.mubr.msk.bf16.vlgmr.msra.gmra.mrb[40].mxu1 %vm630_vm1, %v1503_v44 }
 0x688   :  { %v6012_v45 = vpop.f32.mrb[12].mxu1 }
 0x689   :  { %v4896_v46 = vpop.f32.mrb[13].mxu1 }
 0x68a   :  { %v6014_v47 = vpop.f32.mrb[14].mxu1 }
 0x68b   :  { %v4897_v48 = vpop.f32.mrb[15].mxu1 }
 0x690   :  { %v785_v49 = vpop.f32.mrb[16].mxu1 }
 0x691   :  { %v4904_v50 = vpop.f32.mrb[17].mxu1  ;;  %v792_v51 = vsel %vm675_vm2, %v785_v49, -inf }
 0x692   :  { %v788_v52 = vpop.f32.mrb[18].mxu1  ;;  %793 = vmax.xlane.f32.xlu1 %v792_v51 }
 0x693   :  { %v4905_v53 = vpop.f32.mrb[19].mxu1  ;;  %v795_v54 = vsel %vm675_vm2, %v788_v52, -inf }
 0x696   :  { %796 = vmax.xlane.f32.xlu1 %v795_v54 }
 0x698   :  { %v904_v55 = vpop.f32.mrb[20].mxu1 }
 0x699   :  { %v4918_v56 = vpop.f32.mrb[21].mxu1  ;;  %v911_v57 = vsel %vm675_vm2, %v904_v55, -inf }
 0x69a   :  { %v6019_v59 = vpop.f32.mrb[22].mxu1  ;;  %912 = vmax.xlane.f32.xlu1 %v911_v57 }
 0x69b   :  { %v4919_v60 = vpop.f32.mrb[23].mxu1  ;;  %v914_v61 = vsel %vm675_vm2, %v6019_v59, -inf }
 0x69e   :  { %915 = vmax.xlane.f32.xlu1 %v914_v61 }
 0x6a0   :  { %v6023_v62 = vpop.f32.mrb[24].mxu1 }
 0x6a1   :  { %v4932_v63 = vpop.f32.mrb[25].mxu1  ;;  %v1029_v0 = vsel %vm675_vm2, %v6023_v62, -inf }
 0x6a2   :  { %v6027_v1 = vpop.f32.mrb[26].mxu1  ;;  %1030 = vmax.xlane.f32.xlu1 %v1029_v0 }
 0x6a3   :  { %v4933_v2 = vpop.f32.mrb[27].mxu1  ;;  %v1032_v3 = vsel %vm675_vm2, %v6027_v1, -inf }
 0x6a6   :  { %1033 = vmax.xlane.f32.xlu1 %v1032_v3 }
 0x6a8   :  { %v6031_v4 = vpop.f32.mrb[28].mxu1 }
 0x6a9   :  { %v4946_v6 = vpop.f32.mrb[29].mxu1  ;;  %v1185_v8 = vsel %vm675_vm2, %v6031_v4, -inf }
 0x6aa   :  { %1186 = vmax.xlane.f32.xlu1 %v1185_v8  ;;  %v6035_v9 = vpop.f32.mrb[30].mxu1 }
 0x6ab   :  { %v4947_v10 = vpop.f32.mrb[31].mxu1  ;;  %v1188_v5 = vsel %vm675_vm2, %v6035_v9, -inf }
 0x6ae   :  { %1189 = vmax.xlane.f32.xlu1 %v1188_v5 }
 0x6b0   :  { %v6039_v11 = vpop.f32.mrb[32].mxu1 }
 0x6b1   :  { %v4960_v12 = vpop.f32.mrb[33].mxu1  ;;  %v1307_v13 = vsel %vm675_vm2, %v6039_v11, -inf }
 0x6b2   :  { %1308 = vmax.xlane.f32.xlu1 %v1307_v13  ;;  %v6043_v14 = vpop.f32.mrb[34].mxu1 }
 0x6b3   :  { %v4961_v16 = vpop.f32.mrb[35].mxu1  ;;  %v1310_v19 = vsel %vm675_vm2, %v6043_v14, -inf }
 0x6b4   :  { %1311 = vmax.xlane.f32.xlu0 %v1310_v19 }
 0x6b8   :  { %v6047_v20 = vpop.f32.mrb[36].mxu1 }
 0x6b9   :  { %v4974_v21 = vpop.f32.mrb[37].mxu1  ;;  %v1432_v34 = vsel %vm675_vm2, %v6047_v20, -inf }
 0x6ba   :  { %v6049_v23 = vpop.f32.mrb[38].mxu1 }
 0x6bb   :  { %v4975_v24 = vpop.f32.mrb[39].mxu1  ;;  %v1435_v35 = vsel %vm675_vm2, %v6049_v23, -inf }
 0x6c0   :  { %v6051_v25 = vpop.f32.mrb[40].mxu1 }
 0x6c1   :  { %v4988_v27 = vpop.f32.mrb[41].mxu1  ;;  %v1556_v37 = vsel %vm675_vm2, %v6051_v25, -inf }
 0x6c2   :  { %v6053_v28 = vpop.f32.mrb[42].mxu1 }
 0x6c3   :  { %816 = vrot.lane.b32.xlu1 %v5942_v33, %s5649_s1  ;;  %v4989_v30 = vpop.f32.mrb[43].mxu1  ;;  %v1559_v38 = vsel %vm675_vm2, %v6053_v28, -inf }
 0x6ca   :  { %934 = vrot.lane.b32.xlu0 %v5942_v33, %s5650_s14 }
 0x6e7   :  { %1433 = vmax.xlane.f32.xlu1 %v1432_v34 }
 0x6eb   :  { %1436 = vmax.xlane.f32.xlu1 %v1435_v35 }
 0x6ef   :  { %1557 = vmax.xlane.f32.xlu1 %v1556_v37 }
 0x6f3   :  { %1560 = vmax.xlane.f32.xlu1 %v1559_v38 }
 0x704   :  { %1052 = vrot.lane.b32.xlu1 %v5942_v33, %s5651_s15 }
 0x71f   :  { %v794_v40 = vpop.xlane.xlu1 %793 }
 0x720   :  { %v798_v41 = vsub.f32 %v785_v49, %v794_v40 }
 0x722   :  { %v800_v42 = vmul.f32 1.442695, %v798_v41 }
 0x723   :  { %v797_v15 = vpop.xlane.xlu1 %796 }
 0x724   :  { %5436 = vpow2.f32 %v800_v42  ;;  %v799_v43 = vsub.f32 %v788_v52, %v797_v15 }
 0x726   :  { %v802_v44 = vmul.f32 1.442695, %v799_v43 }
 0x727   :  { %v913_v46 = vpop.xlane.xlu1 %912 }
 0x728   :  { %5438 = vpow2.f32 %v802_v44  ;;  %v917_v48 = vsub.f32 %v904_v55, %v913_v46 }
 0x72a   :  { %v919_v50 = vmul.f32 1.442695, %v917_v48 }
 0x72b   :  { %v916_v51 = vpop.xlane.xlu1 %915 }
 0x72c   :  { %5440 = vpow2.f32 %v919_v50  ;;  %v918_v53 = vsub.f32 %v6019_v59, %v916_v51 }
 0x72e   :  { %v6070_v54 = vpop.eup %5436  ;;  %v921_v56 = vmul.f32 1.442695, %v918_v53 }
 0x72f   :  { %v1031_v57 = vpop.xlane.xlu1 %1030  ;;  %v804_v33 = vsel %vm675_vm2, %v6070_v54, 0.0 }
 0x730   :  { %5442 = vpow2.f32 %v921_v56  ;;  %v1035_v49 = vsub.f32 %v6023_v62, %v1031_v57  ;;  %805 = vadd.xlane.f32.xlu1 %v804_v33 }
 0x732   :  { %v6075_v52 = vpop.eup %5438  ;;  %v1037_v60 = vmul.f32 1.442695, %v1035_v49 }
 0x733   :  { %v1034_v55 = vpop.xlane.xlu1 %1033  ;;  %v807_v61 = vsel %vm675_vm2, %v6075_v52, 0.0 }
 0x734   :  { %5444 = vpow2.f32 %v1037_v60  ;;  %v1036_v59 = vsub.f32 %v6027_v1, %v1034_v55  ;;  %808 = vadd.xlane.f32.xlu1 %v807_v61 }
 0x736   :  { %v6080_v63 = vpop.eup %5440  ;;  %v1039_v0 = vmul.f32 1.442695, %v1036_v59 }
 0x737   :  { %v1187_v2 = vpop.xlane.xlu1 %1186  ;;  %v923_v3 = vsel %vm675_vm2, %v6080_v63, 0.0 }
 0x738   :  { %5446 = vpow2.f32 %v1039_v0  ;;  %v1191_v62 = vsub.f32 %v6031_v4, %v1187_v2  ;;  %924 = vadd.xlane.f32.xlu1 %v923_v3 }
 0x73a   :  { %v6085_v6 = vpop.eup %5442  ;;  %v1193_v8 = vmul.f32 1.442695, %v1191_v62 }
 0x73b   :  { %v1190_v10 = vpop.xlane.xlu1 %1189  ;;  %v926_v5 = vsel %vm675_vm2, %v6085_v6, 0.0 }
 0x73c   :  { %5448 = vpow2.f32 %v1193_v8  ;;  %v1192_v1 = vsub.f32 %v6035_v9, %v1190_v10  ;;  %927 = vadd.xlane.f32.xlu0 %v926_v5 }
 0x73e   :  { %v6090_v12 = vpop.eup %5444  ;;  %v1195_v13 = vmul.f32 1.442695, %v1192_v1 }
 0x73f   :  { %v1309_v16 = vpop.xlane.xlu1 %1308  ;;  %v1041_v19 = vsel %vm675_vm2, %v6090_v12, 0.0 }
 0x740   :  { %5450 = vpow2.f32 %v1195_v13  ;;  %v1313_v4 = vsub.f32 %v6039_v11, %v1309_v16  ;;  %1042 = vadd.xlane.f32.xlu1 %v1041_v19 }
 0x741   :  { %v1312_v21 = vpop.xlane.xlu0 %1311 }
 0x742   :  { %v6095_v24 = vpop.eup %5446  ;;  %v1315_v27 = vmul.f32 1.442695, %v1313_v4  ;;  %v1314_v30 = vsub.f32 %v6043_v14, %v1312_v21 }
 0x743   :  { %v817_v34 = vpop.permute.xlu1 %816  ;;  %v1044_v9 = vsel %vm675_vm2, %v6095_v24, 0.0 }
 0x744   :  { %5452 = vpow2.f32 %v1315_v27  ;;  %v1317_v35 = vmul.f32 1.442695, %v1314_v30  ;;  %4907 = vmatpush3.bf16.msra.mxu0 %v817_v34  ;;  %1045 = vadd.xlane.f32.xlu0 %v1044_v9 }
 0x745   :  { %4920 = vmatprep.subr.bf16.mxu0 %v5647_v58  ;;  %v935_v8 = vpop.permute.xlu0 %934 }
 0x746   :  { %v6101_v37 = vpop.eup %5448  ;;  %5454 = vpow2.f32 %v1317_v35 }
 0x747   :  { %v1197_v11 = vsel %vm675_vm2, %v6101_v37, 0.0 }
 0x748   :  { %1198 = vadd.xlane.f32.xlu1 %v1197_v11 }
 0x74a   :  { %v6105_v38 = vpop.eup %5450 }
 0x74b   :  { %v1200_v14 = vsel %vm675_vm2, %v6105_v38, 0.0 }
 0x74c   :  { %1201 = vadd.xlane.f32.xlu0 %v1200_v14 }
 0x74e   :  { %v6109_v40 = vpop.eup %5452 }
 0x74f   :  { %v1319_v41 = vsel %vm675_vm2, %v6109_v40, 0.0 }
 0x750   :  { %v6113_v42 = vpop.eup %5454  ;;  %1320 = vadd.xlane.f32.xlu0 %v1319_v41 }
 0x751   :  { %v1322_v15 = vsel %vm675_vm2, %v6113_v42, 0.0 }
 0x754   :  { %1323 = vadd.xlane.f32.xlu0 %v1322_v15 }
 0x759   :  { %1331 = vrot.lane.b32.xlu1 %v5940_v32, %s5649_s1 }
 0x774   :  { %v1434_v43 = vpop.xlane.xlu1 %1433 }
 0x775   :  { %v1438_v44 = vsub.f32 %v6047_v20, %v1434_v43 }
 0x777   :  { %v1440_v46 = vmul.f32 1.442695, %v1438_v44 }
 0x778   :  { %v1437_v48 = vpop.xlane.xlu1 %1436 }
 0x779   :  { %5456 = vpow2.f32 %v1440_v46  ;;  %v1439_v50 = vsub.f32 %v6049_v23, %v1437_v48 }
 0x77b   :  { %v1442_v51 = vmul.f32 1.442695, %v1439_v50 }
 0x77c   :  { %v1558_v53 = vpop.xlane.xlu1 %1557 }
 0x77d   :  { %5458 = vpow2.f32 %v1442_v51  ;;  %v1562_v56 = vsub.f32 %v6051_v25, %v1558_v53 }
 0x77f   :  { %v1564_v57 = vmul.f32 1.442695, %v1562_v56 }
 0x780   :  { %v1561_v33 = vpop.xlane.xlu1 %1560 }
 0x781   :  { %5460 = vpow2.f32 %v1564_v57  ;;  %v1563_v49 = vsub.f32 %v6053_v28, %v1561_v33 }
 0x783   :  { %v6123_v60 = vpop.eup %5456  ;;  %v1566_v55 = vmul.f32 1.442695, %v1563_v49 }
 0x784   :  { %v1444_v20 = vsel %vm675_vm2, %v6123_v60, 0.0  ;;  %v1053_v2 = vpop.permute.xlu1 %1052 }
 0x785   :  { %5462 = vpow2.f32 %v1566_v55  ;;  %1445 = vadd.xlane.f32.xlu1 %v1444_v20 }
 0x787   :  { %v6127_v61 = vpop.eup %5458 }
 0x788   :  { %v1447_v23 = vsel %vm675_vm2, %v6127_v61, 0.0 }
 0x789   :  { %1448 = vadd.xlane.f32.xlu0 %v1447_v23 }
 0x78b   :  { %v6131_v25 = vpop.eup %5460 }
 0x78c   :  { %v1568_v59 = vsel %vm675_vm2, %v6131_v25, 0.0 }
 0x78d   :  { %1569 = vadd.xlane.f32.xlu0 %v1568_v59 }
 0x78f   :  { %v6135_v28 = vpop.eup %5462 }
 0x790   :  { %v1571_v0 = vsel %vm675_vm2, %v6135_v28, 0.0 }
 0x791   :  { %1572 = vadd.xlane.f32.xlu0 %v1571_v0 }
 0x796   :  { %1579 = vrot.lane.b32.xlu1 %v5940_v32, %s5651_s15 }
 0x7a7   :  { %1455 = vrot.lane.b32.xlu0 %v5940_v32, %s5650_s14 }
 0x7bd   :  { %v806_v3 = vpop.xlane.xlu1 %805 }
 0x7be   :  { %5464 = vrcp.f32 %v806_v3 }
 0x7c1   :  { %v809_v62 = vpop.xlane.xlu1 %808 }
 0x7c2   :  { %5466 = vrcp.f32 %v809_v62 }
 0x7c5   :  { %v925_v10 = vpop.xlane.xlu1 %924 }
 0x7c6   :  { %5468 = vrcp.f32 %v925_v10 }
 0x7c8   :  { %v5465_v1 = vpop.eup %5464 }
 0x7c9   :  { %v928_v5 = vpop.xlane.xlu0 %927  ;;  %v812_v16 = vmul.f32 %v5465_v1, %v6070_v54 }
 0x7ca   :  { %5470 = vrcp.f32 %v928_v5 }
 0x7cc   :  { %v5467_v13 = vpop.eup %5466 }
 0x7cd   :  { %v813_v19 = vmul.f32 %v5467_v13, %v6075_v52  ;;  %v1043_v4 = vpop.xlane.xlu1 %1042 }
 0x7ce   :  { %5472 = vrcp.f32 %v1043_v4 }
 0x7cf   :  { %v814_v21 = vpack.c.bf16 %v813_v19, %v812_v16 }
 0x7d0   :  { %v5469_v30 = vpop.eup %5468 }
 0x7d1   :  { %v1046_v27 = vpop.xlane.xlu0 %1045  ;;  %4909 = vmatmul.mubr.msk.bf16.vlgmr.msra.gmra.mrb[12].mxu0 %vm675_vm2, %v814_v21  ;;  %v931_v9 = vmul.f32 %v5469_v30, %v6080_v63 }
 0x7d2   :  { %5474 = vrcp.f32 %v1046_v27  ;;  %4921 = vmatpush3.bf16.msra.mxu0 %v935_v8  ;;  %4922 = vmatprep.mubr.msk.bf16.mxu0 %vm5648_vm0, %v5647_v58 }
 0x7d3   :  { %4934 = vmatprep.subr.bf16.mxu0 %v5647_v58 }
 0x7d4   :  { %v5471_v34 = vpop.eup %5470 }
 0x7d5   :  { %v932_v54 = vmul.f32 %v5471_v34, %v6085_v6  ;;  %v1199_v52 = vpop.xlane.xlu1 %1198 }
 0x7d6   :  { %5476 = vrcp.f32 %v1199_v52 }
 0x7d7   :  { %v933_v35 = vpack.c.bf16 %v932_v54, %v931_v9 }
 0x7d8   :  { %v5473_v14 = vpop.eup %5472 }
 0x7d9   :  { %v1202_v11 = vpop.xlane.xlu0 %1201  ;;  %4923 = vmatmul.mubr.msk.bf16.vlgmr.msra.gmra.mrb[16].mxu0 %vm675_vm2, %v933_v35  ;;  %v1049_v15 = vmul.f32 %v5473_v14, %v6090_v12  ;;  %v1332_v51 = vpop.permute.xlu1 %1331  ;;  %v5292_v14 = vld [vmem:[%s7071_s6] sm:$0xff]  }
 0x7da   :  { %5478 = vrcp.f32 %v1202_v11  ;;  %4935 = vmatpush3.bf16.msra.mxu0 %v1053_v2  ;;  %4936 = vmatprep.mubr.msk.bf16.mxu0 %vm5648_vm0, %v5647_v58 }
 0x7db   :  { %4948 = vmatprep.subr.bf16.mxu0 %v5647_v58  ;;  %4996 = vmatprep.subr.bf16.mxu1 %v5292_v14 }
 0x7dc   :  { %v5475_v41 = vpop.eup %5474  ;;  %4997 = vmatpush3.bf16.msra.mxu1 %v5292_v14 }
 0x7dd   :  { %v1050_v63 = vmul.f32 %v5475_v41, %v6095_v24  ;;  %v1321_v6 = vpop.xlane.xlu0 %1320  ;;  %v5293_v41 = vld [vmem:[%s7071_s6 + $0x8] sm:$0xff]  }
 0x7de   :  { %5480 = vrcp.f32 %v1321_v6  ;;  %4998 = vmatprep.subr.bf16.mxu1 %v5293_v41 }
 0x7df   :  { %v1051_v43 = vpack.c.bf16 %v1050_v63, %v1049_v15  ;;  %v5294_v63 = vld [vmem:[%s7071_s6 + $0x10] sm:$0xff]  }
 0x7e0   :  { %v5477_v46 = vpop.eup %5476  ;;  %4999 = vmatpush3.bf16.msra.mxu1 %v5293_v41 }
 0x7e1   :  { %v1324_v44 = vpop.xlane.xlu0 %1323  ;;  %4937 = vmatmul.mubr.msk.bf16.vlgmr.msra.gmra.mrb[20].mxu0 %vm675_vm2, %v1051_v43  ;;  %v1205_v12 = vmul.f32 %v5477_v46, %v6101_v37  ;;  %5000 = vmatprep.subr.bf16.mxu1 %v5294_v63  ;;  %v5295_v46 = vld [vmem:[%s7071_s6 + $0x18] sm:$0xff]  }
 0x7e2   :  { %5482 = vrcp.f32 %v1324_v44  ;;  %4949 = vmatpush3.bf16.msra.mxu0 %v5940_v32  ;;  %4950 = vmatprep.mubr.msk.bf16.mxu0 %vm5648_vm0, %v5647_v58 }
 0x7e3   :  { %4962 = vmatprep.subr.bf16.mxu0 %v5647_v58 }
 0x7e4   :  { %v5479_v48 = vpop.eup %5478  ;;  %5001 = vmatpush3.bf16.msra.mxu1 %v5294_v63 }
 0x7e5   :  { %v1206_v24 = vmul.f32 %v5479_v48, %v6105_v38  ;;  %5002 = vmatprep.subr.bf16.mxu1 %v5295_v46 }
 0x7e7   :  { %v1207_v50 = vpack.c.bf16 %v1206_v24, %v1205_v12  ;;  %v5296_v24 = vld [vmem:[%s7071_s6 + $0x20] sm:$0xff]  }
 0x7e8   :  { %v5481_v53 = vpop.eup %5480  ;;  %5003 = vmatpush3.bf16.msra.mxu1 %v5295_v46 }
 0x7e9   :  { %4951 = vmatmul.mubr.msk.bf16.vlgmr.msra.gmra.mrb[24].mxu0 %vm675_vm2, %v1207_v50  ;;  %v1327_v56 = vmul.f32 %v5481_v53, %v6109_v40  ;;  %5004 = vmatprep.subr.bf16.mxu1 %v5296_v24  ;;  %v5297_v50 = vld [vmem:[%s7071_s6 + $0x28] sm:$0xff]  }
 0x7ea   :  { %4963 = vmatpush3.bf16.msra.mxu0 %v1332_v51  ;;  %4964 = vmatprep.mubr.msk.bf16.mxu0 %vm5648_vm0, %v5647_v58  ;;  %v5298_v51 = vld [vmem:[%s7071_s6 + $0x30] sm:$0xff]  }
 0x7eb   :  { %4976 = vmatprep.subr.bf16.mxu0 %v5647_v58 }
 0x7ec   :  { %v5483_v32 = vpop.eup %5482  ;;  %5005 = vmatpush3.bf16.msra.mxu1 %v5296_v24 }
 0x7ed   :  { %v1328_v57 = vmul.f32 %v5483_v32, %v6113_v42  ;;  %5006 = vmatprep.subr.bf16.mxu1 %v5297_v50  ;;  %v5299_v32 = vld [vmem:[%s7071_s6 + $0x38] sm:$0xff]  }
 0x7ef   :  { %v1329_v33 = vpack.c.bf16 %v1328_v57, %v1327_v56 }
 0x7f0   :  { %5007 = vmatpush3.bf16.msra.mxu1 %v5297_v50 }
 0x7f1   :  { %4965 = vmatmul.mubr.msk.bf16.vlgmr.msra.gmra.mrb[28].mxu0 %vm675_vm2, %v1329_v33  ;;  %5008 = vmatprep.subr.bf16.mxu1 %v5298_v51 }
 0x7f2   :  { %4978 = vmatprep.mubr.msk.bf16.mxu0 %vm5648_vm0, %v5647_v58 }
 0x7f4   :  { %5009 = vmatpush3.bf16.msra.mxu1 %v5298_v51 }
 0x7f5   :  { %5010 = vmatprep.subr.bf16.mxu1 %v5299_v32 }
 0x7f8   :  { %5011 = vmatpush3.bf16.msra.mxu1 %v5299_v32 }
 0x812   :  { %v1446_v37 = vpop.xlane.xlu1 %1445 }
 0x813   :  { %5484 = vrcp.f32 %v1446_v37 }
 0x816   :  { %v1449_v38 = vpop.xlane.xlu0 %1448  ;;  %v1580_v2 = vpop.permute.xlu1 %1579 }
 0x817   :  { %5486 = vrcp.f32 %v1449_v38 }
 0x81a   :  { %v1570_v49 = vpop.xlane.xlu0 %1569 }
 0x81b   :  { %5488 = vrcp.f32 %v1570_v49 }
 0x81d   :  { %v5485_v20 = vpop.eup %5484 }
 0x81e   :  { %v1573_v55 = vpop.xlane.xlu0 %1572  ;;  %v1452_v40 = vmul.f32 %v5485_v20, %v6123_v60 }
 0x81f   :  { %5490 = vrcp.f32 %v1573_v55 }
 0x821   :  { %v5487_v23 = vpop.eup %5486 }
 0x822   :  { %v1453_v42 = vmul.f32 %v5487_v23, %v6127_v61  ;;  %v1456_v59 = vpop.permute.xlu0 %1455 }
 0x823   :  { %4977 = vmatpush3.bf16.msra.mxu0 %v1456_v59 }
 0x824   :  { %v1454_v0 = vpack.c.bf16 %v1453_v42, %v1452_v40  ;;  %4990 = vmatprep.subr.bf16.mxu0 %v5647_v58 }
 0x825   :  { %v5489_v3 = vpop.eup %5488 }
 0x826   :  { %4979 = vmatmul.mubr.msk.bf16.vlgmr.msra.gmra.mrb[32].mxu0 %vm675_vm2, %v1454_v0  ;;  %v1576_v8 = vmul.f32 %v5489_v3, %v6131_v25 }
 0x827   :  { %4991 = vmatpush3.bf16.msra.mxu0 %v1580_v2  ;;  %4992 = vmatprep.mubr.msk.bf16.mxu0 %vm5648_vm0, %v5647_v58 }
 0x829   :  { %v5491_v62 = vpop.eup %5490 }
 0x82a   :  { %v1577_v60 = vmul.f32 %v5491_v62, %v6135_v28 }
 0x82c   :  { %v1578_v10 = vpack.c.bf16 %v1577_v60, %v1576_v8 }
 0x82e   :  { %4993 = vmatmul.mubr.msk.bf16.vlgmr.msra.gmra.mrb[36].mxu0 %vm675_vm2, %v1578_v10 }
 0x82f   :  { %1984 = vmatprep.mubr.bf16.mxu0 %v5646_v7 }
 0x8a4   :  { %v856_v61 = vpop.f32.mrb[12].mxu0 }
 0x8a5   :  { %v4910_v5 = vpop.f32.mrb[13].mxu0 }
 0x8a6   :  { %v859_v1 = vpop.f32.mrb[14].mxu0 }
 0x8a7   :  { %v5178_v13 = vpack.i.bf16 %v859_v1, %v856_v61  ;;  %v4911_v16 = vpop.f32.mrb[15].mxu0 }
 0x8a9   :  { %5179 = vrot.lane.b32.xlu1 %v5178_v13, %s5651_s15 }
 0x8ac   :  { %v974_v19 = vpop.f32.mrb[16].mxu0 }
 0x8ad   :  { %v4924_v4 = vpop.f32.mrb[17].mxu0 }
 0x8ae   :  { %v977_v21 = vpop.f32.mrb[18].mxu0 }
 0x8af   :  { %v5183_v27 = vpack.i.bf16 %v977_v21, %v974_v19  ;;  %v4925_v30 = vpop.f32.mrb[19].mxu0 }
 0x8b1   :  { %5184 = vrot.lane.b32.xlu1 %v5183_v27, %s5650_s14 }
 0x8b4   :  { %v1092_v25 = vpop.f32.mrb[20].mxu0 }
 0x8b5   :  { %v4938_v28 = vpop.f32.mrb[21].mxu0 }
 0x8b6   :  { %v1095_v34 = vpop.f32.mrb[22].mxu0 }
 0x8b7   :  { %v5188_v9 = vpack.i.bf16 %v1095_v34, %v1092_v25  ;;  %v4939_v54 = vpop.f32.mrb[23].mxu0 }
 0x8b9   :  { %5189 = vrot.lane.b32.xlu1 %v5188_v9, %s5649_s1 }
 0x8bc   :  { %v6186_v52 = vpop.f32.mrb[24].mxu0 }
 0x8bd   :  { %v4952_v35 = vpop.f32.mrb[25].mxu0 }
 0x8be   :  { %v6188_v11 = vpop.f32.mrb[26].mxu0 }
 0x8bf   :  { %v4953_v15 = vpop.f32.mrb[27].mxu0 }
 0x8c4   :  { %v1371_v6 = vpop.f32.mrb[28].mxu0 }
 0x8c5   :  { %v4966_v43 = vpop.f32.mrb[29].mxu0 }
 0x8c6   :  { %v1374_v44 = vpop.f32.mrb[30].mxu0 }
 0x8c7   :  { %v5193_v48 = vpack.i.bf16 %v1374_v44, %v1371_v6  ;;  %v4967_v12 = vpop.f32.mrb[31].mxu0  ;;  %v4433_v6 = vld [vmem:[%s7072_s7] ss:$0 sm:$0xff] }
 0x8c9   :  { %5194 = vrot.lane.b32.xlu1 %v5193_v48, %s5651_s15 }
 0x8f9   :  { %v1495_v53 = vpop.f32.mrb[32].mxu0 }
 0x8fa   :  { %v4980_v56 = vpop.f32.mrb[33].mxu0 }
 0x8fb   :  { %v1498_v57 = vpop.f32.mrb[34].mxu0 }
 0x8fc   :  { %v5198_v33 = vpack.i.bf16 %v1498_v57, %v1495_v53  ;;  %v4981_v37 = vpop.f32.mrb[35].mxu0 }
 0x8fe   :  { %5199 = vrot.lane.b32.xlu1 %v5198_v33, %s5650_s14 }
 0x901   :  { %v1619_v38 = vpop.f32.mrb[36].mxu0 }
 0x902   :  { %v4994_v49 = vpop.f32.mrb[37].mxu0 }
 0x903   :  { %v1622_v55 = vpop.f32.mrb[38].mxu0 }
 0x904   :  { %v5203_v20 = vpack.i.bf16 %v1622_v55, %v1619_v38  ;;  %v4995_v23 = vpop.f32.mrb[39].mxu0 }
 0x906   :  { %5204 = vrot.lane.b32.xlu0 %v5203_v20, %s5649_s1 }
 0x91b   :  { %v5180_v40 = vpop.permute.xlu1 %5179 }
 0x91c   :  { %v5182_v59 = vunpack.i.h.bf16 %v5180_v40  ;;  %v5181_v0 = vunpack.i.l.bf16 %v5180_v40 }
 0x91e   :  { %v1124_v8 = vsel %vm630_vm1, %v6014_v47, %v5182_v59  ;;  %v1123_v60 = vsel %vm630_vm1, %v6012_v45, %v5181_v0 }
 0x923   :  { %v5185_v42 = vpop.permute.xlu1 %5184 }
 0x924   :  { %v5187_v2 = vunpack.i.h.bf16 %v5185_v42  ;;  %v5186_v3 = vunpack.i.l.bf16 %v5185_v42 }
 0x926   :  { %v1126_v5 = vsel %vm1125_vm3, %v1123_v60, %v5186_v3  ;;  %v1127_v1 = vsel %vm1125_vm3, %v1124_v8, %v5187_v2  ;;  %v5308_v8 = vld [vmem:[%s7073_s8 + $0x24] ss:$8 sps:$4 sm:$0xff]   ;;  %v5306_v60 = vld [vmem:[%s7073_s8 + $0x20] ss:$8 sps:$4 sm:$0xff]  }
 0x92b   :  { %v5190_v62 = vpop.permute.xlu1 %5189 }
 0x92c   :  { %v5192_v10 = vunpack.i.h.bf16 %v5190_v62  ;;  %v5191_v61 = vunpack.i.l.bf16 %v5190_v62 }
 0x92e   :  { %v1129_v13 = vsel %vm1128_vm4, %v1126_v5, %v5191_v61  ;;  %v1130_v16 = vsel %vm1128_vm4, %v1127_v1, %v5192_v10  ;;  %v5311_v10 = vld [vmem:[%s7073_s8 + $0x34] ss:$8 sps:$4 sm:$0xff]   ;;  %v5309_v61 = vld [vmem:[%s7073_s8 + $0x30] ss:$8 sps:$4 sm:$0xff]   ;;  %v5314_v5 = vld [vmem:[%s7073_s8 + $0x44] ss:$8 sps:$4 sm:$0xff]  }
 0x92f   :  { %v1656_v19 = vpack.c.bf16 %v1130_v16, %v1129_v13  ;;  %v5312_v1 = vld [vmem:[%s7073_s8 + $0x40] ss:$8 sps:$4 sm:$0xff]   ;;  %v5317_v13 = vld [vmem:[%s7073_s8 + $0x54] ss:$8 sps:$4 sm:$0xff]   ;;  %v5315_v16 = vld [vmem:[%s7073_s8 + $0x50] ss:$8 sps:$4 sm:$0xff]  }
 0x931   :  { %5012 = vmatprep.mubr.bf16.mxu1 %v1656_v19  ;;  %v5318_v19 = vld [vmem:[%s7073_s8 + $0x60] ss:$8 sps:$4 sm:$0xff]  }
 0x93b   :  { %v5195_v4 = vpop.permute.xlu1 %5194 }
 0x93c   :  { %v5197_v27 = vunpack.i.h.bf16 %v5195_v4  ;;  %v5196_v30 = vunpack.i.l.bf16 %v5195_v4  ;;  %v5320_v4 = vld [vmem:[%s7073_s8 + $0x64] ss:$8 sps:$4 sm:$0xff]  }
 0x93e   :  { %v1651_v45 = vsel %vm630_vm1, %v6188_v11, %v5197_v27  ;;  %v1650_v34 = vsel %vm630_vm1, %v6186_v52, %v5196_v30  ;;  %v5321_v27 = vld [vmem:[%s7073_s8 + $0x70] ss:$8 sps:$4 sm:$0xff]  }
 0x970   :  { %v5200_v21 = vpop.permute.xlu1 %5199 }
 0x971   :  { %v5202_v47 = vunpack.i.h.bf16 %v5200_v21  ;;  %v5201_v25 = vunpack.i.l.bf16 %v5200_v21  ;;  %v5323_v21 = vld [vmem:[%s7073_s8 + $0x74] ss:$8 sps:$4 sm:$0xff]  }
 0x973   :  { %v1652_v35 = vsel %vm1125_vm3, %v1650_v34, %v5201_v25  ;;  %v1653_v14 = vsel %vm1125_vm3, %v1651_v45, %v5202_v47 }
 0x978   :  { %v5205_v28 = vpop.permute.xlu0 %5204 }
 0x979   :  { %v5207_v9 = vunpack.i.h.bf16 %v5205_v28  ;;  %v5206_v54 = vunpack.i.l.bf16 %v5205_v28 }
 0x97b   :  { %v1654_v41 = vsel %vm1128_vm4, %v1652_v35, %v5206_v54  ;;  %v1655_v15 = vsel %vm1128_vm4, %v1653_v14, %v5207_v9 }
 0x97c   :  { %v1657_v63 = vpack.c.bf16 %v1655_v15, %v1654_v41 }
 0x97e   :  { %5013 = vmatmul.mubr.bf16.vlgmr.msra.gmra.mrb[44].mxu1 %v1657_v63  ;;  %v5620_v63 = vld [vmem:[%s7068_s3] sm:$0xf] }
 0xa51   :  { %v5014_v11 = vpop.f32.mrb[44].mxu1 }
 0xa52   :  { %v1763_v43 = vpop.f32.mrb[45].mxu1  ;;  %v1772_v24 = vadd.f32 %v5014_v11, %v4433_v6  ;;  %v1836_v11 = vsub.s32 3, %v5882_v18  ;;  %v5404_v18 = vld [vmem:[%s7075_s10 + $0xc0] sm:$0xff]  }
 0xa53   :  { %v1764_v44 = vadd.f32 %v4433_v6, %v1763_v43  ;;  %v5015_v52 = vpop.f32.mrb[46].mxu1 }
 0xa54   :  { %v1766_v46 = vpop.f32.mrb[47].mxu1  ;;  %v6245_v51 = vadd.f32 %v1772_v24, %v5801_v36  ;;  %v1775_v53 = vadd.f32 %v5015_v52, %v4433_v6  ;;  %v5305_v36 = vld [vmem:[%s7073_s8 + $0x14] ss:$8 sps:$4 sm:$0xff]   ;;  %v1837_v24 = vrot.slane %v5620_v63, %v1836_v11 }
 0xa55   :  { %v6237_v48 = vadd.f32 %v1764_v44, %v5789_v26  ;;  %v1767_v12 = vadd.f32 %v4433_v6, %v1766_v46  ;;  %v5300_v26 = vld [vmem:[%s7073_s8] ss:$8 sps:$4 sm:$0xff]   ;;  %v1829_v6 = vrot.slane %v5620_v63, %v5937_v17 }
 0xa56   :  { %v6249_v32 = vadd.f32 %v1775_v53, %v5807_v39  ;;  %v5303_v39 = vld [vmem:[%s7073_s8 + $0x10] ss:$8 sps:$4 sm:$0xff]  }
 0xa57   :  { %v6240_v50 = vadd.f32 %v1767_v12, %v5795_v29  ;;  %1782 = vadd.xlane.f32.xlu1 %v6237_v48  ;;  %v5302_v29 = vld [vmem:[%s7073_s8 + $0x4] ss:$8 sps:$4 sm:$0xff]  }
 0xa58   :  { %1952 = vmatprep.subr.bf16.mxu0 %v5302_v29 }
 0xa59   :  { %1784 = vadd.xlane.f32.xlu0 %v6240_v50  ;;  %1953 = vmatpush1.bf16.msra.mxu0 %v5300_v26 }
 0xa5a   :  { %1954 = vmatprep.subr.bf16.mxu0 %v5305_v36 }
 0xa5d   :  { %1786 = vadd.xlane.f32.xlu0 %v6245_v51  ;;  %1955 = vmatpush1.bf16.msra.mxu0 %v5303_v39 }
 0xa5e   :  { %1956 = vmatprep.subr.bf16.mxu0 %v5308_v8  ;;  %v5332_v8 = vld [vmem:[%s7075_s10 + $0x60] sm:$0xff]  }
 0xa61   :  { %1788 = vadd.xlane.f32.xlu0 %v6249_v32  ;;  %1957 = vmatpush1.bf16.msra.mxu0 %v5306_v60  ;;  %v5333_v60 = vld [vmem:[%s7075_s10 + $0x20] sm:$0xff]  }
 0xa62   :  { %1958 = vmatprep.subr.bf16.mxu0 %v5311_v10  ;;  %v5334_v10 = vld [vmem:[%s7075_s10 + $0x68] sm:$0xff]  }
 0xa65   :  { %1959 = vmatpush1.bf16.msra.mxu0 %v5309_v61  ;;  %v5335_v61 = vld [vmem:[%s7075_s10 + $0x28] sm:$0xff]  }
 0xa66   :  { %1960 = vmatprep.subr.bf16.mxu0 %v5314_v5  ;;  %v5336_v5 = vld [vmem:[%s7075_s10 + $0x70] sm:$0xff]  }
 0xa69   :  { %1961 = vmatpush1.bf16.msra.mxu0 %v5312_v1  ;;  %v5337_v1 = vld [vmem:[%s7075_s10 + $0x30] sm:$0xff]  }
 0xa6a   :  { %1962 = vmatprep.subr.bf16.mxu0 %v5317_v13  ;;  %v5338_v13 = vld [vmem:[%s7075_s10 + $0x78] sm:$0xff]  }
 0xa6d   :  { %1963 = vmatpush1.bf16.msra.mxu0 %v5315_v16  ;;  %v5339_v16 = vld [vmem:[%s7075_s10 + $0x38] sm:$0xff]  }
 0xa6e   :  { %1964 = vmatprep.subr.bf16.mxu0 %v5320_v4 }
 0xa71   :  { %1965 = vmatpush1.bf16.msra.mxu0 %v5318_v19  ;;  %v1860_v19 = vld [vmem:[%s7074_s9] sm:$0x3] }
 0xa72   :  { %1966 = vmatprep.subr.bf16.mxu0 %v5323_v21  ;;  %v1865_v4 = vrot.slane %v1860_v19, %v5885_v22  ;;  %v1869_v21 = vrot.slane %v1860_v19, %v5893_v31 }
 0xa75   :  { %1967 = vmatpush1.bf16.msra.mxu0 %v5321_v27 }
 0xae4   :  { %v1783_v56 = vpop.xlane.xlu1 %1782 }
 0xae5   :  { %v1790_v57 = vmul.f32 0.0078125, %v1783_v56 }
 0xae6   :  { %v1785_v33 = vpop.xlane.xlu0 %1784 }
 0xae7   :  { %v1794_v37 = vsub.f32 %v6237_v48, %v1790_v57  ;;  %v1791_v38 = vmul.f32 0.0078125, %v1785_v33 }
 0xae9   :  { %v1798_v49 = vmul.f32 %v1794_v37, %v1794_v37  ;;  %v1795_v55 = vsub.f32 %v6240_v50, %v1791_v38 }
 0xaea   :  { %v1787_v20 = vpop.xlane.xlu0 %1786 }
 0xaeb   :  { %v1792_v23 = vmul.f32 0.0078125, %v1787_v20  ;;  %1802 = vadd.xlane.f32.xlu1 %v1798_v49  ;;  %v1799_v40 = vmul.f32 %v1795_v55, %v1795_v55 }
 0xaed   :  { %v1796_v42 = vsub.f32 %v6245_v51, %v1792_v23  ;;  %1804 = vadd.xlane.f32.xlu0 %v1799_v40  ;;  %v5324_v23 = vld [vmem:[%s7075_s10 + $0x40] sm:$0xff]  }
 0xaee   :  { %v1789_v59 = vpop.xlane.xlu0 %1788  ;;  %v5325_v40 = vld [vmem:[%s7075_s10] sm:$0xff]   ;;  %4748 = vmatprep.subr.bf16.mxu1 %v5324_v23 }
 0xaef   :  { %v1793_v0 = vmul.f32 0.0078125, %v1789_v59  ;;  %v1800_v2 = vmul.f32 %v1796_v42, %v1796_v42  ;;  %4749 = vmatpush3.bf16.msra.mxu1 %v5325_v40  ;;  %v5327_v59 = vld [vmem:[%s7075_s10 + $0x8] sm:$0xff]  }
 0xaf1   :  { %1806 = vadd.xlane.f32.xlu1 %v1800_v2  ;;  %v1797_v3 = vsub.f32 %v6249_v32, %v1793_v0  ;;  %v5328_v0 = vld [vmem:[%s7075_s10 + $0x50] sm:$0xff]  }
 0xaf2   :  { %v5329_v2 = vld [vmem:[%s7075_s10 + $0x10] sm:$0xff]  }
 0xaf3   :  { %v1801_v62 = vmul.f32 %v1797_v3, %v1797_v3 }
 0xaf5   :  { %1808 = vadd.xlane.f32.xlu0 %v1801_v62  ;;  %v5331_v62 = vld [vmem:[%s7075_s10 + $0x18] sm:$0xff]  }
 0xb78   :  { %v1803_v30 = vpop.xlane.xlu1 %1802 }
 0xb79   :  { %v1810_v47 = vmul.f32 0.0078125, %v1803_v30 }
 0xb7a   :  { %v1805_v25 = vpop.xlane.xlu0 %1804 }
 0xb7b   :  { %v1814_v28 = vadd.f32 1e-06, %v1810_v47  ;;  %v1811_v45 = vmul.f32 0.0078125, %v1805_v25 }
 0xb7d   :  { %5492 = vrsqrt.f32 %v1814_v28  ;;  %v1815_v34 = vadd.f32 1e-06, %v1811_v45 }
 0xb7e   :  { %v1807_v9 = vpop.xlane.xlu1 %1806 }
 0xb7f   :  { %5494 = vrsqrt.f32 %v1815_v34  ;;  %v1812_v54 = vmul.f32 0.0078125, %v1807_v9 }
 0xb81   :  { %v1816_v35 = vadd.f32 1e-06, %v1812_v54 }
 0xb82   :  { %v1809_v14 = vpop.xlane.xlu0 %1808 }
 0xb83   :  { %5496 = vrsqrt.f32 %v1816_v35  ;;  %v1813_v41 = vmul.f32 0.0078125, %v1809_v14 }
 0xb85   :  { %v1817_v15 = vadd.f32 1e-06, %v1813_v41 }
 0xb87   :  { %v5493_v43 = vpop.eup %5492  ;;  %5498 = vrsqrt.f32 %v1817_v15 }
 0xb88   :  { %v1822_v44 = vmul.f32 %v5493_v43, %v1794_v37 }
 0xb89   :  { %v5495_v52 = vpop.eup %5494 }
 0xb8a   :  { %v1823_v46 = vmul.f32 %v5495_v52, %v1795_v55  ;;  %v1830_v12 = vmul.f32 %v1829_v6, %v1822_v44 }
 0xb8c   :  { %v1831_v53 = vmul.f32 %v1829_v6, %v1823_v46  ;;  %v1838_v29 = vadd.f32 %v1837_v24, %v1830_v12 }
 0xb8d   :  { %v5497_v26 = vpop.eup %5496 }
 0xb8e   :  { %v1839_v36 = vadd.f32 %v1837_v24, %v1831_v53  ;;  %v1824_v39 = vmul.f32 %v5497_v26, %v1796_v42  ;;  %v5326_v42 = vld [vmem:[%s7075_s10 + $0x48] sm:$0xff]  }
 0xb8f   :  { %4750 = vmatprep.subr.bf16.mxu1 %v5326_v42 }
 0xb90   :  { %v1842_v56 = vpack.c.bf16 %v1839_v36, %v1838_v29  ;;  %v1832_v38 = vmul.f32 %v1829_v6, %v1824_v39  ;;  %4751 = vmatpush3.bf16.msra.mxu1 %v5327_v59 }
 0xb91   :  { %v5499_v57 = vpop.eup %5498  ;;  %4752 = vmatprep.subr.bf16.mxu1 %v5328_v0 }
 0xb92   :  { %1985 = vmatmul.mubr.bf16.vlgmr.msra.gmra.mrb[40].mxu0 %v1842_v56  ;;  %v1825_v33 = vmul.f32 %v5499_v57, %v1797_v3  ;;  %v1840_v37 = vadd.f32 %v1837_v24, %v1832_v38  ;;  %v5330_v3 = vld [vmem:[%s7075_s10 + $0x58] sm:$0xff]  }
 0xb93   :  { %1994 = vmatprep.mubr.bf16.mxu0 %v5646_v7 }
 0xb94   :  { %v1833_v49 = vmul.f32 %v1829_v6, %v1825_v33  ;;  %4753 = vmatpush3.bf16.msra.mxu1 %v5329_v2 }
 0xb95   :  { %4754 = vmatprep.subr.bf16.mxu1 %v5330_v3 }
 0xb96   :  { %v1841_v20 = vadd.f32 %v1837_v24, %v1833_v49 }
 0xb98   :  { %v1843_v55 = vpack.c.bf16 %v1841_v20, %v1840_v37  ;;  %4755 = vmatpush3.bf16.msra.mxu1 %v5331_v62 }
 0xb99   :  { %4756 = vmatprep.subr.bf16.mxu1 %v5332_v8 }
 0xb9a   :  { %1995 = vmatmul.mubr.bf16.gmra.mrb[44].mxu0 %v1843_v55 }
 0xb9b   :  { %2544 = vmatprep.mubr.bf16.mxu0 %v5646_v7 }
 0xb9c   :  { %4757 = vmatpush3.bf16.msra.mxu1 %v5333_v60 }
 0xb9d   :  { %4758 = vmatprep.subr.bf16.mxu1 %v5334_v10 }
 0xba0   :  { %4759 = vmatpush3.bf16.msra.mxu1 %v5335_v61 }
 0xba1   :  { %4760 = vmatprep.subr.bf16.mxu1 %v5336_v5 }
 0xba4   :  { %4761 = vmatpush3.bf16.msra.mxu1 %v5337_v1 }
 0xba5   :  { %4762 = vmatprep.subr.bf16.mxu1 %v5338_v13 }
 0xba8   :  { %4763 = vmatpush3.bf16.msra.mxu1 %v5339_v16 }
 0xc65   :  { %v1986_v27 = vpop.f32.mrb[40].mxu0 }
 0xc66   :  { %v6366_v30 = vadd.f32 %v1986_v27, %v1865_v4  ;;  %v1988_v47 = vpop.f32.mrb[41].mxu0 }
 0xc67   :  { %v6368_v25 = vadd.f32 %v1988_v47, %v1869_v21  ;;  %v1990_v28 = vpop.f32.mrb[42].mxu0 }
 0xc68   :  { %v2005_v45 = vmul.f32 %v6366_v30, %v6366_v30  ;;  %v6372_v34 = vadd.f32 %v1990_v28, %v1865_v4  ;;  %v1992_v9 = vpop.f32.mrb[43].mxu0 }
 0xc69   :  { %v2006_v54 = vmul.f32 %v6368_v25, %v6368_v25  ;;  %v6376_v35 = vadd.f32 %v1992_v9, %v1869_v21 }
 0xc6a   :  { %v2013_v14 = vmul.f32 %v2005_v45, %v6366_v30  ;;  %v2007_v41 = vmul.f32 %v6372_v34, %v6372_v34 }
 0xc6b   :  { %v2014_v15 = vmul.f32 %v2006_v54, %v6368_v25  ;;  %v2008_v63 = vmul.f32 %v6376_v35, %v6376_v35 }
 0xc6c   :  { %v2021_v6 = vmul.f32 0.044715, %v2013_v14  ;;  %v2015_v43 = vmul.f32 %v2007_v41, %v6372_v34 }
 0xc6d   :  { %v2022_v44 = vmul.f32 0.044715, %v2014_v15  ;;  %v2016_v52 = vmul.f32 %v2008_v63, %v6376_v35  ;;  %v1996_v46 = vpop.f32.mrb[44].mxu0 }
 0xc6e   :  { %v2029_v12 = vadd.f32 %v2021_v6, %v6366_v30  ;;  %v2023_v24 = vmul.f32 0.044715, %v2015_v43  ;;  %v6387_v53 = vadd.f32 %v1996_v46, %v1865_v4  ;;  %v1998_v26 = vpop.f32.mrb[45].mxu0 }
 0xc6f   :  { %v2030_v29 = vadd.f32 %v2022_v44, %v6368_v25  ;;  %v2024_v36 = vmul.f32 0.044715, %v2016_v52  ;;  %v6390_v39 = vadd.f32 %v1998_v26, %v1869_v21  ;;  %v2000_v56 = vpop.f32.mrb[46].mxu0 }
 0xc70   :  { %v2037_v57 = vmul.f32 0.7978846, %v2029_v12  ;;  %v2031_v33 = vadd.f32 %v2023_v24, %v6372_v34  ;;  %v2009_v38 = vmul.f32 %v6387_v53, %v6387_v53  ;;  %v6395_v49 = vadd.f32 %v2000_v56, %v1865_v4  ;;  %v2002_v37 = vpop.f32.mrb[47].mxu0 }
 0xc71   :  { %v2038_v20 = vmul.f32 0.7978846, %v2030_v29  ;;  %v2032_v55 = vadd.f32 %v2024_v36, %v6376_v35  ;;  %v2010_v23 = vmul.f32 %v6390_v39, %v6390_v39  ;;  %v6400_v40 = vadd.f32 %v2002_v37, %v1869_v21 }
 0xc72   :  { %5500 = vtanh.f32 %v2037_v57  ;;  %v2039_v42 = vmul.f32 0.7978846, %v2031_v33  ;;  %v2017_v59 = vmul.f32 %v2009_v38, %v6387_v53  ;;  %v2011_v0 = vmul.f32 %v6395_v49, %v6395_v49 }
 0xc73   :  { %5502 = vtanh.f32 %v2038_v20  ;;  %v2040_v2 = vmul.f32 0.7978846, %v2032_v55  ;;  %v2018_v3 = vmul.f32 %v2010_v23, %v6390_v39  ;;  %v2012_v62 = vmul.f32 %v6400_v40, %v6400_v40 }
 0xc74   :  { %5504 = vtanh.f32 %v2039_v42  ;;  %v2025_v8 = vmul.f32 0.044715, %v2017_v59  ;;  %v2019_v60 = vmul.f32 %v2011_v0, %v6395_v49 }
 0xc75   :  { %5506 = vtanh.f32 %v2040_v2  ;;  %v2026_v10 = vmul.f32 0.044715, %v2018_v3  ;;  %v2020_v61 = vmul.f32 %v2012_v62, %v6400_v40 }
 0xc76   :  { %v2033_v5 = vadd.f32 %v2025_v8, %v6387_v53  ;;  %v2027_v1 = vmul.f32 0.044715, %v2019_v60 }
 0xc77   :  { %v2034_v13 = vadd.f32 %v2026_v10, %v6390_v39  ;;  %v2028_v16 = vmul.f32 0.044715, %v2020_v61  ;;  %v4458_v10 = vld [vmem:[%s7076_s11] ss:$0 sm:$0xff] }
 0xc78   :  { %v2041_v19 = vmul.f32 0.7978846, %v2033_v5  ;;  %v2035_v4 = vadd.f32 %v2027_v1, %v6395_v49 }
 0xc79   :  { %v2042_v21 = vmul.f32 0.7978846, %v2034_v13  ;;  %v2036_v27 = vadd.f32 %v2028_v16, %v6400_v40 }
 0xc7a   :  { %5508 = vtanh.f32 %v2041_v19  ;;  %v2043_v47 = vmul.f32 0.7978846, %v2035_v4 }
 0xc7b   :  { %5510 = vtanh.f32 %v2042_v21  ;;  %v2044_v28 = vmul.f32 0.7978846, %v2036_v27 }
 0xc7c   :  { %v5501_v45 = vpop.eup %5500  ;;  %5512 = vtanh.f32 %v2043_v47 }
 0xc7d   :  { %v5503_v9 = vpop.eup %5502  ;;  %v2053_v54 = vadd.f32 1.0, %v5501_v45  ;;  %5514 = vtanh.f32 %v2044_v28 }
 0xc7e   :  { %v5505_v14 = vpop.eup %5504  ;;  %v2054_v41 = vadd.f32 1.0, %v5503_v9 }
 0xc7f   :  { %v5507_v15 = vpop.eup %5506  ;;  %v2061_v63 = vmul.f32 0.5, %v2053_v54  ;;  %v2055_v6 = vadd.f32 1.0, %v5505_v14  ;;  %v5342_v14 = vld [vmem:[%s7069_s4 + $0xc4] ss:$12 sps:$4 sm:$0xff]  }
 0xc80   :  { %v2056_v43 = vadd.f32 1.0, %v5507_v15  ;;  %v2062_v44 = vmul.f32 0.5, %v2054_v41  ;;  %2512 = vmatprep.subr.bf16.mxu0 %v5342_v14 }
 0xc81   :  { %v2063_v52 = vmul.f32 0.5, %v2055_v6  ;;  %v2069_v12 = vmul.f32 %v2061_v63, %v6366_v30 }
 0xc82   :  { %v2064_v46 = vmul.f32 0.5, %v2056_v43  ;;  %v2070_v29 = vmul.f32 %v2062_v44, %v6368_v25 }
 0xc83   :  { %v2071_v24 = vmul.f32 %v2063_v52, %v6372_v34 }
 0xc84   :  { %v5509_v26 = vpop.eup %5508  ;;  %v2072_v36 = vmul.f32 %v2064_v46, %v6376_v35 }
 0xc85   :  { %v5511_v56 = vpop.eup %5510  ;;  %v2077_v57 = vpack.c.bf16 %v2071_v24, %v2069_v12  ;;  %v2057_v33 = vadd.f32 1.0, %v5509_v26 }
 0xc86   :  { %v5513_v38 = vpop.eup %5512  ;;  %v2078_v37 = vpack.c.bf16 %v2072_v36, %v2070_v29  ;;  %v2058_v20 = vadd.f32 1.0, %v5511_v56 }
 0xc87   :  { %v5515_v55 = vpop.eup %5514  ;;  %v2059_v23 = vadd.f32 1.0, %v5513_v38  ;;  %v2065_v42 = vmul.f32 0.5, %v2057_v33  ;;  %v5348_v38 = vld [vmem:[%s7069_s4 + $0xf4] ss:$12 sps:$4 sm:$0xff]  }
 0xc88   :  { %2248 = vmatprep.mubr.bf16.mxu1 %v2078_v37  ;;  %v2060_v59 = vadd.f32 1.0, %v5515_v55  ;;  %v2066_v0 = vmul.f32 0.5, %v2058_v20  ;;  %v5349_v37 = vld [vmem:[%s7069_s4 + $0xc8] ss:$12 sps:$4 sm:$0xff]   ;;  %v5346_v20 = vld [vmem:[%s7069_s4 + $0xf0] ss:$12 sps:$4 sm:$0xff]  }
 0xc89   :  { %2249 = vmatmul.mubr.bf16.vlgmr.msra.gmra.mrb[48].mxu1 %v2077_v57  ;;  %v2067_v30 = vmul.f32 0.5, %v2059_v23  ;;  %v2073_v2 = vmul.f32 %v2065_v42, %v6387_v53  ;;  %5016 = vmatprep.subr.bf16.mxu1 %v5349_v37  ;;  %v5352_v55 = vld [vmem:[%s7069_s4 + $0x10c] ss:$12 sps:$4 sm:$0xff]   ;;  %v5350_v42 = vld [vmem:[%s7069_s4 + $0x108] ss:$12 sps:$4 sm:$0xff]  }
 0xc8a   :  { %v2068_v34 = vmul.f32 0.5, %v2060_v59  ;;  %v2074_v35 = vmul.f32 %v2066_v0, %v6390_v39  ;;  %5017 = vmatpush3.bf16.msra.mxu1 %v5349_v37  ;;  %v5353_v23 = vld [vmem:[%s7069_s4 + $0xe0] ss:$12 sps:$4 sm:$0xff]   ;;  %v5356_v59 = vld [vmem:[%s7069_s4 + $0x124] ss:$12 sps:$4 sm:$0xff]  }
 0xc8b   :  { %v2075_v25 = vmul.f32 %v2067_v30, %v6395_v49  ;;  %5018 = vmatprep.subr.bf16.mxu1 %v5353_v23  ;;  %v5357_v0 = vld [vmem:[%s7069_s4 + $0xf8] ss:$12 sps:$4 sm:$0xff]   ;;  %v5354_v30 = vld [vmem:[%s7069_s4 + $0x120] ss:$12 sps:$4 sm:$0xff]  }
 0xc8c   :  { %v2076_v3 = vmul.f32 %v2068_v34, %v6400_v40  ;;  %v5360_v34 = vld [vmem:[%s7069_s4 + $0x13c] ss:$12 sps:$4 sm:$0xff]  }
 0xc8d   :  { %v2079_v62 = vpack.c.bf16 %v2075_v25, %v2073_v2  ;;  %v5361_v2 = vld [vmem:[%s7069_s4 + $0x110] ss:$12 sps:$4 sm:$0xff]   ;;  %v5358_v25 = vld [vmem:[%s7069_s4 + $0x138] ss:$12 sps:$4 sm:$0xff]  }
 0xc8e   :  { %v2080_v8 = vpack.c.bf16 %v2076_v3, %v2074_v35  ;;  %5019 = vmatpush3.bf16.msra.mxu1 %v5353_v23  ;;  %v5364_v35 = vld [vmem:[%s7069_s4 + $0x154] ss:$12 sps:$4 sm:$0xff]  }
 0xc8f   :  { %5020 = vmatprep.subr.bf16.mxu1 %v5357_v0  ;;  %v5365_v3 = vld [vmem:[%s7069_s4 + $0x128] ss:$12 sps:$4 sm:$0xff]  }
 0xc90   :  { %2256 = vmatprep.mubr.bf16.mxu1 %v2080_v8  ;;  %v5366_v8 = vld [vmem:[%s7069_s4 + $0x168] ss:$12 sps:$4 sm:$0xff]  }
 0xc91   :  { %2257 = vmatmul.mubr.bf16.gmra.mrb[52].mxu1 %v2079_v62  ;;  %v5362_v62 = vld [vmem:[%s7069_s4 + $0x150] ss:$12 sps:$4 sm:$0xff]  }
 0xc92   :  { %5021 = vmatpush3.bf16.msra.mxu1 %v5357_v0 }
 0xc93   :  { %5022 = vmatprep.subr.bf16.mxu1 %v5361_v2 }
 0xc96   :  { %5023 = vmatpush3.bf16.msra.mxu1 %v5361_v2 }
 0xc97   :  { %5024 = vmatprep.subr.bf16.mxu1 %v5365_v3 }
 0xc9a   :  { %5025 = vmatpush3.bf16.msra.mxu1 %v5365_v3 }
 0xd5c   :  { %v4764_v60 = vpop.f32.mrb[48].mxu1 }
 0xd5d   :  { %v4765_v61 = vpop.f32.mrb[49].mxu1 }
 0xd5e   :  { %v4766_v5 = vadd.f32 %v4765_v61, %v4764_v60  ;;  %v4767_v1 = vpop.f32.mrb[50].mxu1  ;;  %v5368_v60 = vld [vmem:[%s7069_s4 + $0x16c] ss:$12 sps:$4 sm:$0xff]  }
 0xd5f   :  { %v4768_v13 = vpop.f32.mrb[51].mxu1  ;;  %v5370_v61 = vld [vmem:[%s7069_s4 + $0x158] ss:$12 sps:$4 sm:$0xff]  }
 0xd60   :  { %v2251_v53 = vadd.f32 %v4766_v5, %v4458_v10  ;;  %v4769_v16 = vadd.f32 %v4768_v13, %v4767_v1  ;;  %v5371_v5 = vld [vmem:[%s7069_s4 + $0x170] ss:$12 sps:$4 sm:$0xff]  }
 0xd62   :  { %v2254_v49 = vadd.f32 %v4769_v16, %v4458_v10  ;;  %v6426_v39 = vadd.f32 %v2251_v53, %v6237_v48 }
 0xd64   :  { %2271 = vadd.xlane.f32.xlu1 %v6426_v39  ;;  %v4770_v40 = vpop.f32.mrb[52].mxu1  ;;  %v6430_v19 = vadd.f32 %v2254_v49, %v6240_v50  ;;  %v5340_v50 = vld [vmem:[%s7069_s4 + $0xc0] ss:$12 sps:$4 sm:$0xff]  }
 0xd65   :  { %v4771_v4 = vpop.f32.mrb[53].mxu1  ;;  %2513 = vmatpush1.bf16.msra.mxu0 %v5340_v50 }
 0xd66   :  { %v4772_v21 = vadd.f32 %v4771_v4, %v4770_v40  ;;  %2273 = vadd.xlane.f32.xlu0 %v6430_v19  ;;  %v4773_v27 = vpop.f32.mrb[54].mxu1 }
 0xd67   :  { %v4774_v47 = vpop.f32.mrb[55].mxu1 }
 0xd68   :  { %v2259_v28 = vadd.f32 %v4772_v21, %v4458_v10  ;;  %v4775_v45 = vadd.f32 %v4774_v47, %v4773_v27  ;;  %v4475_v47 = vld [vmem:[%s7068_s3 + $0x4] sm:$0xf] }
 0xd69   :  { %v2318_v50 = vrot.slane %v4475_v47, %v5885_v22 }
 0xd6a   :  { %v2262_v9 = vadd.f32 %v4775_v45, %v4458_v10  ;;  %v6434_v54 = vadd.f32 %v2259_v28, %v6245_v51  ;;  %v5345_v51 = vld [vmem:[%s7069_s4 + $0xdc] ss:$12 sps:$4 sm:$0xff]   ;;  %v5369_v10 = vld [vmem:[%s7069_s4 + $0x140] ss:$12 sps:$4 sm:$0xff]  }
 0xd6b   :  { %2514 = vmatprep.subr.bf16.mxu0 %v5345_v51  ;;  %5026 = vmatprep.subr.bf16.mxu1 %v5369_v10 }
 0xd6c   :  { %2275 = vadd.xlane.f32.xlu1 %v6434_v54  ;;  %v6438_v48 = vadd.f32 %v2262_v9, %v6249_v32  ;;  %v5343_v32 = vld [vmem:[%s7069_s4 + $0xd8] ss:$12 sps:$4 sm:$0xff]   ;;  %5027 = vmatpush3.bf16.msra.mxu1 %v5369_v10 }
 0xd6d   :  { %2515 = vmatpush1.bf16.msra.mxu0 %v5343_v32  ;;  %5028 = vmatprep.subr.bf16.mxu1 %v5370_v61 }
 0xd6e   :  { %2277 = vadd.xlane.f32.xlu0 %v6438_v48  ;;  %2516 = vmatprep.subr.bf16.mxu0 %v5348_v38 }
 0xd70   :  { %5029 = vmatpush3.bf16.msra.mxu1 %v5370_v61 }
 0xd71   :  { %2517 = vmatpush1.bf16.msra.mxu0 %v5346_v20  ;;  %5030 = vmatprep.subr.bf16.mxu1 %v5371_v5 }
 0xd72   :  { %2518 = vmatprep.subr.bf16.mxu0 %v5352_v55 }
 0xd74   :  { %5031 = vmatpush3.bf16.msra.mxu1 %v5371_v5 }
 0xd75   :  { %2519 = vmatpush1.bf16.msra.mxu0 %v5350_v42  ;;  %5058 = vmatprep.subr.bf16.mxu1 %v5647_v58 }
 0xd76   :  { %2520 = vmatprep.subr.bf16.mxu0 %v5356_v59 }
 0xd79   :  { %2521 = vmatpush1.bf16.msra.mxu0 %v5354_v30 }
 0xd7a   :  { %2522 = vmatprep.subr.bf16.mxu0 %v5360_v34 }
 0xd7d   :  { %2523 = vmatpush1.bf16.msra.mxu0 %v5358_v25 }
 0xd7e   :  { %2524 = vmatprep.subr.bf16.mxu0 %v5364_v35 }
 0xd81   :  { %2525 = vmatpush1.bf16.msra.mxu0 %v5362_v62 }
 0xd82   :  { %2526 = vmatprep.subr.bf16.mxu0 %v5368_v60 }
 0xd85   :  { %2527 = vmatpush1.bf16.msra.mxu0 %v5366_v8 }
 0xd86   :  { %5036 = vmatprep.subr.bf16.mxu0 %v5647_v58 }
 0xdf1   :  { %v2272_v41 = vpop.xlane.xlu1 %2271 }
 0xdf2   :  { %v2279_v15 = vmul.f32 0.0078125, %v2272_v41 }
 0xdf3   :  { %v2274_v63 = vpop.xlane.xlu0 %2273 }
 0xdf4   :  { %v6454_v6 = vsub.f32 %v6426_v39, %v2279_v15  ;;  %v2280_v43 = vmul.f32 0.0078125, %v2274_v63  ;;  %v2326_v63 = vrot.slane %v4475_v47, %v5893_v31 }
 0xdf6   :  { %v2287_v44 = vmul.f32 %v6454_v6, %v6454_v6  ;;  %v6459_v52 = vsub.f32 %v6430_v19, %v2280_v43 }
 0xdf8   :  { %2291 = vadd.xlane.f32.xlu1 %v2287_v44  ;;  %v2288_v46 = vmul.f32 %v6459_v52, %v6459_v52 }
 0xdf9   :  { %v2276_v12 = vpop.xlane.xlu1 %2275 }
 0xdfa   :  { %v2281_v24 = vmul.f32 0.0078125, %v2276_v12  ;;  %2293 = vadd.xlane.f32.xlu0 %v2288_v46 }
 0xdfb   :  { %v2278_v26 = vpop.xlane.xlu0 %2277 }
 0xdfc   :  { %v6464_v29 = vsub.f32 %v6434_v54, %v2281_v24  ;;  %v2282_v36 = vmul.f32 0.0078125, %v2278_v26 }
 0xdfe   :  { %v2289_v56 = vmul.f32 %v6464_v29, %v6464_v29  ;;  %v6469_v57 = vsub.f32 %v6438_v48, %v2282_v36 }
 0xe00   :  { %2295 = vadd.xlane.f32.xlu1 %v2289_v56  ;;  %v2290_v33 = vmul.f32 %v6469_v57, %v6469_v57 }
 0xe02   :  { %2297 = vadd.xlane.f32.xlu0 %v2290_v33 }
 0xe85   :  { %v2292_v1 = vpop.xlane.xlu1 %2291 }
 0xe86   :  { %v2299_v13 = vmul.f32 0.0078125, %v2292_v1 }
 0xe87   :  { %v2294_v53 = vpop.xlane.xlu0 %2293 }
 0xe88   :  { %v2303_v16 = vadd.f32 1e-06, %v2299_v13  ;;  %v2300_v49 = vmul.f32 0.0078125, %v2294_v53 }
 0xe8a   :  { %5516 = vrsqrt.f32 %v2303_v16  ;;  %v2304_v40 = vadd.f32 1e-06, %v2300_v49 }
 0xe8c   :  { %5518 = vrsqrt.f32 %v2304_v40 }
 0xe8d   :  { %v2296_v4 = vpop.xlane.xlu1 %2295 }
 0xe8e   :  { %v2301_v21 = vmul.f32 0.0078125, %v2296_v4 }
 0xe8f   :  { %v2298_v27 = vpop.xlane.xlu0 %2297 }
 0xe90   :  { %v2305_v28 = vadd.f32 1e-06, %v2301_v21  ;;  %v2302_v45 = vmul.f32 0.0078125, %v2298_v27 }
 0xe92   :  { %5520 = vrsqrt.f32 %v2305_v28  ;;  %v2306_v9 = vadd.f32 1e-06, %v2302_v45 }
 0xe94   :  { %v5517_v14 = vpop.eup %5516  ;;  %5522 = vrsqrt.f32 %v2306_v9 }
 0xe95   :  { %v2311_v51 = vmul.f32 %v5517_v14, %v6454_v6 }
 0xe96   :  { %v5519_v32 = vpop.eup %5518 }
 0xe97   :  { %v2319_v41 = vmul.f32 %v2318_v50, %v2311_v51  ;;  %v2312_v15 = vmul.f32 %v5519_v32, %v6459_v52 }
 0xe99   :  { %v2320_v43 = vmul.f32 %v2318_v50, %v2312_v15  ;;  %v2327_v44 = vadd.f32 %v2326_v63, %v2319_v41 }
 0xe9b   :  { %v2328_v46 = vadd.f32 %v2326_v63, %v2320_v43 }
 0xe9c   :  { %v5521_v12 = vpop.eup %5520 }
 0xe9d   :  { %v2331_v24 = vpack.c.bf16 %v2328_v46, %v2327_v44  ;;  %v2313_v26 = vmul.f32 %v5521_v12, %v6464_v29  ;;  %v4508_v29 = vld [vmem:[%s7070_s5 + $0x3] sm:$0x7] }
 0xe9e   :  { %v5523_v36 = vpop.eup %5522  ;;  %v2372_v20 = vrot.slane %v4508_v29, %v5885_v22  ;;  %v2380_v25 = vrot.slane %v4508_v29, %v5937_v17 }
 0xe9f   :  { %2545 = vmatmul.mubr.bf16.vlgmr.msra.gmra.mrb[48].mxu0 %v2331_v24  ;;  %5032 = vmatprep.mubr.bf16.mxu1 %v2331_v24  ;;  %v2314_v56 = vmul.f32 %v5523_v36, %v6469_v57  ;;  %v2321_v33 = vmul.f32 %v2318_v50, %v2313_v26  ;;  %v2376_v57 = vrot.slane %v4508_v29, %v5893_v31 }
 0xea0   :  { %2554 = vmatprep.mubr.bf16.mxu0 %v5646_v7 }
 0xea1   :  { %v2322_v6 = vmul.f32 %v2318_v50, %v2314_v56  ;;  %v2329_v38 = vadd.f32 %v2326_v63, %v2321_v33 }
 0xea3   :  { %v2330_v52 = vadd.f32 %v2326_v63, %v2322_v6 }
 0xea5   :  { %v2332_v37 = vpack.c.bf16 %v2330_v52, %v2329_v38 }
 0xea7   :  { %2555 = vmatmul.mubr.bf16.gmra.mrb[52].mxu0 %v2332_v37  ;;  %5033 = vmatmul.mubr.bf16.vlgmr.msra.gmra.mrb[56].mxu1 %v2332_v37 }
 0xea8   :  { %5040 = vmatprep.mubr.msk.bf16.mxu0 %vm5648_vm0, %v5647_v58  ;;  %5060 = vmatprep.mubr.msk.bf16.mxu1 %vm5648_vm0, %v5647_v58 }
 0xf72   :  { %v2546_v55 = vpop.f32.mrb[48].mxu0 }
 0xf73   :  { %v2548_v23 = vpop.f32.mrb[49].mxu0  ;;  %v2547_v0 = vadd.f32 %v2546_v55, %v2372_v20 }
 0xf74   :  { %v2549_v42 = vadd.f32 %v2548_v23, %v2376_v57  ;;  %v2550_v59 = vpop.f32.mrb[50].mxu0 }
 0xf75   :  { %v2551_v30 = vadd.f32 %v2550_v59, %v2372_v20  ;;  %v2552_v34 = vpop.f32.mrb[51].mxu0 }
 0xf76   :  { %2614 = vxpose.xlu1.b32.start [1/4] (short) %v2549_v42, 128  ;;  %v2553_v35 = vadd.f32 %v2552_v34, %v2376_v57 }
 0xf77   :  { %v6554_v2 = vpack.c.bf16 %v2551_v30, %v2547_v0 }
 0xf7a   :  { %2615 = vxpose.xlu1.b32.cont [2/4] (short) %v2553_v35, 128  ;;  %v2556_v3 = vpop.f32.mrb[52].mxu0  ;;  %v5034_v62 = vpop.f32.mrb[56].mxu1 }
 0xf7b   :  { %v2608_v8 = vadd.f32 %v5034_v62, %v2380_v25  ;;  %v2558_v60 = vpop.f32.mrb[53].mxu0  ;;  %v2599_v10 = vpop.f32.mrb[57].mxu1  ;;  %v2557_v13 = vadd.f32 %v2556_v3, %v2372_v20 }
 0xf7c   :  { %v2559_v61 = vadd.f32 %v2558_v60, %v2376_v57  ;;  %v2560_v5 = vpop.f32.mrb[54].mxu0  ;;  %v5035_v1 = vpop.f32.mrb[58].mxu1  ;;  %v2600_v4 = vadd.f32 %v2599_v10, %v2380_v25 }
 0xf7d   :  { %v2561_v53 = vadd.f32 %v2560_v5, %v2372_v20  ;;  %v2611_v16 = vadd.f32 %v5035_v1, %v2380_v25  ;;  %v2562_v49 = vpop.f32.mrb[55].mxu0  ;;  %v2602_v40 = vpop.f32.mrb[59].mxu1 }
 0xf7e   :  { %v2603_v21 = vadd.f32 %v2602_v40, %v2380_v25  ;;  %2616 = vxpose.xlu1.b32.cont [3/4] (short) %v2559_v61, 128  ;;  %v2563_v28 = vadd.f32 %v2562_v49, %v2376_v57 }
 0xf7f   :  { %v6557_v27 = vpack.c.bf16 %v2561_v53, %v2557_v13  ;;  %v6559_v47 = vpack.c.bf16 %v2611_v16, %v2608_v8 }
 0xf80   :  { %v6561_v45 = vpack.c.bf16 %v2603_v21, %v2600_v4 }
 0xf82   :  { %2617 = vxpose.xlu1.b32.end [4/4] (short) %v2563_v28, 128 }
 0xfd0   :  { %3269 = vrot.lane.b32.xlu1 %v6557_v27, %s5649_s1 }
 0xff6   :  { %v2630_v9 = vpop.trf.xlu1 }
 0xffa   :  { %v2631_v50 = vpop.trf.xlu1 }
 0xffb   :  { %v2647_v14 = vpack.c.bf16 %v2631_v50, %v2630_v9 }
 0xffd   :  { %5037 = vmatpush3.bf16.msra.mxu0 %v2647_v14 }
 0xffe   :  { %v2632_v51 = vpop.trf.xlu1  ;;  %5038 = vmatprep.subr.bf16.mxu0 %v5647_v58 }
0x1002   :  { %v2633_v32 = vpop.trf.xlu1 }
0x1003   :  { %v2648_v41 = vpack.c.bf16 %v2633_v32, %v2632_v51 }
0x1005   :  { %5039 = vmatpush3.bf16.msra.mxu0 %v2648_v41 }
0x1006   :  { %5044 = vmatprep.subr.bf16.mxu0 %v5647_v58  ;;  %v2634_v52 = vpop.trf.xlu1 }
0x1008   :  { %5041 = vmatmul.mubr.msk.bf16.vlgmr.msra.gmra.mrb[56].mxu0 %vm630_vm1, %v6554_v2 }
0x1009   :  { %5045 = vmatpush3.bf16.msra.mxu0 %v6561_v45  ;;  %5046 = vmatprep.mubr.msk.bf16.mxu0 %vm5648_vm0, %v5647_v58 }
0x100a   :  { %5050 = vmatprep.subr.bf16.mxu0 %v5647_v58  ;;  %v2635_v20 = vpop.trf.xlu1 }
0x100b   :  { %v2761_v34 = vpack.c.bf16 %v2635_v20, %v2634_v52 }
0x100e   :  { %v2636_v55 = vpop.trf.xlu1 }
0x1012   :  { %v2637_v23 = vpop.trf.xlu1 }
0x1013   :  { %v2762_v25 = vpack.c.bf16 %v2637_v23, %v2636_v55 }
0x1016   :  { %v2638_v42 = vpop.trf.xlu1 }
0x101a   :  { %v2639_v59 = vpop.trf.xlu1 }
0x101b   :  { %v2881_v3 = vpack.c.bf16 %v2639_v59, %v2638_v42 }
0x101e   :  { %v2640_v0 = vpop.trf.xlu1 }
0x1022   :  { %v2641_v30 = vpop.trf.xlu1 }
0x1023   :  { %v2882_v8 = vpack.c.bf16 %v2641_v30, %v2640_v0 }
0x1026   :  { %v2642_v35 = vpop.trf.xlu1 }
0x102a   :  { %v2643_v62 = vpop.trf.xlu1 }
0x102b   :  { %v2999_v60 = vpack.c.bf16 %v2643_v62, %v2642_v35 }
0x10db   :  { %v2687_v15 = vpop.f32.mrb[56].mxu0 }
0x10dc   :  { %v5042_v63 = vpop.f32.mrb[57].mxu0  ;;  %v2694_v43 = vsel %vm675_vm2, %v2687_v15, -inf }
0x10dd   :  { %2695 = vmax.xlane.f32.xlu0 %v2694_v43  ;;  %v2690_v44 = vpop.f32.mrb[58].mxu0 }
0x10de   :  { %v5043_v46 = vpop.f32.mrb[59].mxu0  ;;  %v2697_v12 = vsel %vm675_vm2, %v2690_v44, -inf }
0x10e1   :  { %2698 = vmax.xlane.f32.xlu0 %v2697_v12 }
0x116a   :  { %v2696_v24 = vpop.xlane.xlu0 %2695 }
0x116b   :  { %v2700_v26 = vsub.f32 %v2687_v15, %v2696_v24 }
0x116d   :  { %v2702_v36 = vmul.f32 1.442695, %v2700_v26 }
0x116e   :  { %v2699_v56 = vpop.xlane.xlu0 %2698 }
0x116f   :  { %5524 = vpow2.f32 %v2702_v36  ;;  %v2701_v33 = vsub.f32 %v2690_v44, %v2699_v56 }
0x1171   :  { %v2704_v6 = vmul.f32 1.442695, %v2701_v33 }
0x1173   :  { %5526 = vpow2.f32 %v2704_v6 }
0x1179   :  { %v5525_v38 = vpop.eup %5524 }
0x117a   :  { %v2706_v37 = vsel %vm675_vm2, %v5525_v38, 0.0 }
0x117b   :  { %2707 = vadd.xlane.f32.xlu0 %v2706_v37 }
0x117d   :  { %v5527_v29 = vpop.eup %5526 }
0x117e   :  { %v2709_v57 = vsel %vm675_vm2, %v5527_v29, 0.0 }
0x117f   :  { %2710 = vadd.xlane.f32.xlu0 %v2709_v57 }
0x1195   :  { %2764 = vrot.lane.b32.xlu0 %v6554_v2, %s5649_s1 }
0x1199   :  { %2883 = vrot.lane.b32.xlu0 %v6554_v2, %s5650_s14 }
0x119d   :  { %3001 = vrot.lane.b32.xlu0 %v6554_v2, %s5651_s15  ;;  %v2644_v2 = vpop.trf.xlu1 }
0x11a1   :  { %3151 = vrot.lane.b32.xlu0 %v2647_v14, %s5652_s16  ;;  %v2645_v10 = vpop.trf.xlu1 }
0x11a2   :  { %v3000_v61 = vpack.c.bf16 %v2645_v10, %v2644_v2 }
0x11a5   :  { %3153 = vrot.lane.b32.xlu0 %v2648_v41, %s5652_s16  ;;  %v3270_v63 = vpop.permute.xlu1 %3269 }
0x11a9   :  { %3273 = vrot.lane.b32.xlu0 %v2761_v34, %s5652_s16 }
0x11ad   :  { %3275 = vrot.lane.b32.xlu0 %v2762_v25, %s5652_s16 }
0x11b1   :  { %3398 = vrot.lane.b32.xlu0 %v2881_v3, %s5652_s16 }
0x11b5   :  { %3400 = vrot.lane.b32.xlu0 %v2882_v8, %s5652_s16 }
0x11b9   :  { %3394 = vrot.lane.b32.xlu0 %v6557_v27, %s5650_s14 }
0x11bd   :  { %3522 = vrot.lane.b32.xlu0 %v2999_v60, %s5652_s16 }
0x11c1   :  { %3524 = vrot.lane.b32.xlu0 %v3000_v61, %s5652_s16 }
0x11c5   :  { %3518 = vrot.lane.b32.xlu0 %v6557_v27, %s5651_s15 }
0x1208   :  { %v2708_v5 = vpop.xlane.xlu0 %2707 }
0x1209   :  { %5528 = vrcp.f32 %v2708_v5 }
0x120c   :  { %v2711_v1 = vpop.xlane.xlu0 %2710 }
0x120d   :  { %5530 = vrcp.f32 %v2711_v1 }
0x1210   :  { %v2765_v13 = vpop.permute.xlu0 %2764 }
0x1213   :  { %v5529_v16 = vpop.eup %5528 }
0x1214   :  { %v2884_v53 = vpop.permute.xlu0 %2883  ;;  %v2714_v40 = vmul.f32 %v5529_v16, %v5525_v38 }
0x1217   :  { %v5531_v49 = vpop.eup %5530 }
0x1218   :  { %v2715_v4 = vmul.f32 %v5531_v49, %v5527_v29  ;;  %v3002_v21 = vpop.permute.xlu0 %3001 }
0x121a   :  { %v2716_v28 = vpack.c.bf16 %v2715_v4, %v2714_v40 }
0x121c   :  { %5047 = vmatmul.mubr.msk.bf16.vlgmr.msra.gmra.mrb[60].mxu0 %vm675_vm2, %v2716_v28  ;;  %v3152_v9 = vpop.permute.xlu0 %3151 }
0x121d   :  { %5051 = vmatpush3.bf16.msra.mxu0 %v2761_v34  ;;  %5054 = vmatprep.mubr.msk.bf16.mxu0 %vm5648_vm0, %v5647_v58 }
0x121e   :  { %5052 = vmatprep.subr.bf16.mxu0 %v5647_v58 }
0x1220   :  { %v3154_v50 = vpop.permute.xlu0 %3153 }
0x1221   :  { %5053 = vmatpush3.bf16.msra.mxu0 %v2762_v25 }
0x1222   :  { %5064 = vmatprep.subr.bf16.mxu0 %v5647_v58 }
0x1224   :  { %5055 = vmatmul.mubr.msk.bf16.vlgmr.msra.gmra.mrb[64].mxu0 %vm630_vm1, %v2765_v13  ;;  %v3274_v14 = vpop.permute.xlu0 %3273 }
0x1225   :  { %5065 = vmatpush3.bf16.msra.mxu0 %v2881_v3  ;;  %5068 = vmatprep.mubr.msk.bf16.mxu0 %vm5648_vm0, %v5647_v58 }
0x1226   :  { %5066 = vmatprep.subr.bf16.mxu0 %v5647_v58 }
0x1228   :  { %v3276_v51 = vpop.permute.xlu0 %3275 }
0x1229   :  { %5067 = vmatpush3.bf16.msra.mxu0 %v2882_v8 }
0x122a   :  { %5078 = vmatprep.subr.bf16.mxu0 %v5647_v58 }
0x122c   :  { %5069 = vmatmul.mubr.msk.bf16.vlgmr.msra.gmra.mrb[68].mxu0 %vm630_vm1, %v2884_v53  ;;  %v3399_v32 = vpop.permute.xlu0 %3398 }
0x122d   :  { %5079 = vmatpush3.bf16.msra.mxu0 %v2999_v60  ;;  %5082 = vmatprep.mubr.msk.bf16.mxu0 %vm5648_vm0, %v5647_v58 }
0x122e   :  { %5080 = vmatprep.subr.bf16.mxu0 %v5647_v58 }
0x1230   :  { %v3401_v41 = vpop.permute.xlu0 %3400 }
0x1231   :  { %5081 = vmatpush3.bf16.msra.mxu0 %v3000_v61 }
0x1232   :  { %5092 = vmatprep.subr.bf16.mxu0 %v5647_v58 }
0x1234   :  { %5083 = vmatmul.mubr.msk.bf16.vlgmr.msra.gmra.mrb[72].mxu0 %vm630_vm1, %v3002_v21  ;;  %v3395_v15 = vpop.permute.xlu0 %3394 }
0x1235   :  { %5093 = vmatpush3.bf16.msra.mxu0 %v3152_v9  ;;  %5096 = vmatprep.mubr.msk.bf16.mxu0 %vm5648_vm0, %v5647_v58 }
0x1236   :  { %5094 = vmatprep.subr.bf16.mxu0 %v5647_v58 }
0x1239   :  { %5095 = vmatpush3.bf16.msra.mxu0 %v3154_v50 }
0x123a   :  { %5106 = vmatprep.subr.bf16.mxu0 %v5647_v58 }
0x123c   :  { %5097 = vmatmul.mubr.msk.bf16.vlgmr.msra.gmra.mrb[76].mxu0 %vm630_vm1, %v6557_v27  ;;  %v3523_v27 = vpop.permute.xlu0 %3522 }
0x123d   :  { %5107 = vmatpush3.bf16.msra.mxu0 %v3274_v14  ;;  %5110 = vmatprep.mubr.msk.bf16.mxu0 %vm5648_vm0, %v5647_v58 }
0x123e   :  { %5108 = vmatprep.subr.bf16.mxu0 %v5647_v58 }
0x1240   :  { %v3525_v43 = vpop.permute.xlu0 %3524 }
0x1241   :  { %5109 = vmatpush3.bf16.msra.mxu0 %v3276_v51 }
0x1242   :  { %5120 = vmatprep.subr.bf16.mxu0 %v5647_v58 }
0x1244   :  { %5111 = vmatmul.mubr.msk.bf16.vlgmr.msra.gmra.mrb[80].mxu0 %vm630_vm1, %v3270_v63  ;;  %v3519_v44 = vpop.permute.xlu0 %3518 }
0x1245   :  { %5121 = vmatpush3.bf16.msra.mxu0 %v3399_v32  ;;  %5124 = vmatprep.mubr.msk.bf16.mxu0 %vm5648_vm0, %v5647_v58 }
0x1246   :  { %5122 = vmatprep.subr.bf16.mxu0 %v5647_v58 }
0x1249   :  { %5123 = vmatpush3.bf16.msra.mxu0 %v3401_v41 }
0x124a   :  { %5134 = vmatprep.subr.bf16.mxu0 %v5647_v58 }
0x124c   :  { %5125 = vmatmul.mubr.msk.bf16.vlgmr.msra.gmra.mrb[84].mxu0 %vm630_vm1, %v3395_v15 }
0x124d   :  { %5135 = vmatpush3.bf16.msra.mxu0 %v3523_v27  ;;  %5138 = vmatprep.mubr.msk.bf16.mxu0 %vm5648_vm0, %v5647_v58 }
0x124e   :  { %5136 = vmatprep.subr.bf16.mxu0 %v5647_v58 }
0x1251   :  { %5137 = vmatpush3.bf16.msra.mxu0 %v3525_v43 }
0x1254   :  { %5139 = vmatmul.mubr.msk.bf16.vlgmr.msra.gmra.mrb[88].mxu0 %vm630_vm1, %v3519_v44 }
0x12ef   :  { %v6631_v46 = vpop.f32.mrb[60].mxu0 }
0x12f0   :  { %v5048_v12 = vpop.f32.mrb[61].mxu0 }
0x12f1   :  { %v6633_v24 = vpop.f32.mrb[62].mxu0 }
0x12f2   :  { %v5049_v26 = vpop.f32.mrb[63].mxu0 }
0x12f7   :  { %v2803_v36 = vpop.f32.mrb[64].mxu0 }
0x12f8   :  { %v5056_v56 = vpop.f32.mrb[65].mxu0  ;;  %v2810_v33 = vsel %vm675_vm2, %v2803_v36, -inf }
0x12f9   :  { %v2806_v6 = vpop.f32.mrb[66].mxu0  ;;  %2811 = vmax.xlane.f32.xlu0 %v2810_v33 }
0x12fa   :  { %v5057_v38 = vpop.f32.mrb[67].mxu0  ;;  %v2813_v52 = vsel %vm675_vm2, %v2806_v6, -inf }
0x12fd   :  { %2814 = vmax.xlane.f32.xlu0 %v2813_v52 }
0x12ff   :  { %v2922_v37 = vpop.f32.mrb[68].mxu0 }
0x1300   :  { %v5070_v29 = vpop.f32.mrb[69].mxu0  ;;  %v2929_v57 = vsel %vm675_vm2, %v2922_v37, -inf }
0x1301   :  { %v2925_v20 = vpop.f32.mrb[70].mxu0  ;;  %2930 = vmax.xlane.f32.xlu0 %v2929_v57 }
0x1302   :  { %v5071_v55 = vpop.f32.mrb[71].mxu0  ;;  %v2932_v23 = vsel %vm675_vm2, %v2925_v20, -inf }
0x1305   :  { %2933 = vmax.xlane.f32.xlu0 %v2932_v23 }
0x1307   :  { %v6639_v42 = vpop.f32.mrb[72].mxu0 }
0x1308   :  { %v5084_v59 = vpop.f32.mrb[73].mxu0  ;;  %v3047_v0 = vsel %vm675_vm2, %v6639_v42, -inf }
0x1309   :  { %v6643_v30 = vpop.f32.mrb[74].mxu0  ;;  %3048 = vmax.xlane.f32.xlu0 %v3047_v0 }
0x130a   :  { %v5085_v34 = vpop.f32.mrb[75].mxu0  ;;  %v3050_v25 = vsel %vm675_vm2, %v6643_v30, -inf }
0x130d   :  { %3051 = vmax.xlane.f32.xlu0 %v3050_v25 }
0x130f   :  { %v6647_v35 = vpop.f32.mrb[76].mxu0 }
0x1310   :  { %v5098_v3 = vpop.f32.mrb[77].mxu0  ;;  %v3201_v62 = vsel %vm675_vm2, %v6647_v35, -inf }
0x1311   :  { %3202 = vmax.xlane.f32.xlu0 %v3201_v62  ;;  %v6651_v8 = vpop.f32.mrb[78].mxu0 }
0x1312   :  { %v5099_v2 = vpop.f32.mrb[79].mxu0  ;;  %v3204_v60 = vsel %vm675_vm2, %v6651_v8, -inf }
0x1313   :  { %3205 = vmax.xlane.f32.xlu1 %v3204_v60 }
0x1317   :  { %v6655_v10 = vpop.f32.mrb[80].mxu0 }
0x1318   :  { %v5112_v61 = vpop.f32.mrb[81].mxu0  ;;  %v3323_v5 = vsel %vm675_vm2, %v6655_v10, -inf }
0x1319   :  { %3324 = vmax.xlane.f32.xlu0 %v3323_v5  ;;  %v6659_v1 = vpop.f32.mrb[82].mxu0 }
0x131a   :  { %v5113_v13 = vpop.f32.mrb[83].mxu0  ;;  %v3326_v53 = vsel %vm675_vm2, %v6659_v1, -inf }
0x131d   :  { %3327 = vmax.xlane.f32.xlu0 %v3326_v53 }
0x131f   :  { %v6663_v16 = vpop.f32.mrb[84].mxu0 }
0x1320   :  { %v5126_v49 = vpop.f32.mrb[85].mxu0  ;;  %v3448_v40 = vsel %vm675_vm2, %v6663_v16, -inf }
0x1321   :  { %3449 = vmax.xlane.f32.xlu0 %v3448_v40  ;;  %v6667_v4 = vpop.f32.mrb[86].mxu0 }
0x1322   :  { %v5127_v21 = vpop.f32.mrb[87].mxu0  ;;  %v3451_v28 = vsel %vm675_vm2, %v6667_v4, -inf }
0x1324   :  { %2952 = vrot.lane.b32.xlu1 %v6561_v45, %s5650_s14 }
0x1325   :  { %3452 = vmax.xlane.f32.xlu0 %v3451_v28 }
0x1327   :  { %v6673_v9 = vpop.f32.mrb[88].mxu0 }
0x1328   :  { %v5140_v50 = vpop.f32.mrb[89].mxu0  ;;  %v3572_v14 = vsel %vm675_vm2, %v6673_v9, -inf }
0x1329   :  { %3573 = vmax.xlane.f32.xlu0 %v3572_v14  ;;  %v6677_v51 = vpop.f32.mrb[90].mxu0 }
0x132a   :  { %v5141_v32 = vpop.f32.mrb[91].mxu0  ;;  %v3575_v41 = vsel %vm675_vm2, %v6677_v51, -inf }
0x132d   :  { %3576 = vmax.xlane.f32.xlu0 %v3575_v41 }
0x1343   :  { %2834 = vrot.lane.b32.xlu0 %v6561_v45, %s5649_s1 }
0x1386   :  { %v2812_v15 = vpop.xlane.xlu0 %2811 }
0x1387   :  { %v2816_v63 = vsub.f32 %v2803_v36, %v2812_v15 }
0x1389   :  { %v2818_v27 = vmul.f32 1.442695, %v2816_v63 }
0x138a   :  { %v2815_v43 = vpop.xlane.xlu0 %2814 }
0x138b   :  { %5532 = vpow2.f32 %v2818_v27  ;;  %v2817_v44 = vsub.f32 %v2806_v6, %v2815_v43 }
0x138d   :  { %v2820_v12 = vmul.f32 1.442695, %v2817_v44 }
0x138e   :  { %v2931_v26 = vpop.xlane.xlu0 %2930 }
0x138f   :  { %5534 = vpow2.f32 %v2820_v12  ;;  %v2935_v56 = vsub.f32 %v2922_v37, %v2931_v26 }
0x1391   :  { %v2937_v33 = vmul.f32 1.442695, %v2935_v56 }
0x1392   :  { %v2934_v38 = vpop.xlane.xlu0 %2933 }
0x1393   :  { %5536 = vpow2.f32 %v2937_v33  ;;  %v2936_v52 = vsub.f32 %v2925_v20, %v2934_v38 }
0x1395   :  { %v6683_v29 = vpop.eup %5532  ;;  %v2939_v57 = vmul.f32 1.442695, %v2936_v52 }
0x1396   :  { %v3049_v55 = vpop.xlane.xlu0 %3048  ;;  %v2822_v23 = vsel %vm675_vm2, %v6683_v29, 0.0 }
0x1397   :  { %5538 = vpow2.f32 %v2939_v57  ;;  %v3053_v36 = vsub.f32 %v6639_v42, %v3049_v55  ;;  %2823 = vadd.xlane.f32.xlu0 %v2822_v23 }
0x1399   :  { %v6688_v6 = vpop.eup %5534  ;;  %v3055_v59 = vmul.f32 1.442695, %v3053_v36 }
0x139a   :  { %v3052_v0 = vpop.xlane.xlu0 %3051  ;;  %v2825_v37 = vsel %vm675_vm2, %v6688_v6, 0.0 }
0x139b   :  { %5540 = vpow2.f32 %v3055_v59  ;;  %v3054_v20 = vsub.f32 %v6643_v30, %v3052_v0  ;;  %2826 = vadd.xlane.f32.xlu0 %v2825_v37 }
0x139d   :  { %v6693_v34 = vpop.eup %5536  ;;  %v3057_v25 = vmul.f32 1.442695, %v3054_v20 }
0x139e   :  { %v3203_v3 = vpop.xlane.xlu0 %3202  ;;  %v2941_v62 = vsel %vm675_vm2, %v6693_v34, 0.0 }
0x139f   :  { %5542 = vpow2.f32 %v3057_v25  ;;  %v3207_v42 = vsub.f32 %v6647_v35, %v3203_v3  ;;  %2942 = vadd.xlane.f32.xlu0 %v2941_v62 }
0x13a0   :  { %v3206_v2 = vpop.xlane.xlu1 %3205 }
0x13a1   :  { %v6698_v60 = vpop.eup %5538  ;;  %v3209_v61 = vmul.f32 1.442695, %v3207_v42  ;;  %v3208_v5 = vsub.f32 %v6651_v8, %v3206_v2 }
0x13a2   :  { %v2944_v30 = vsel %vm675_vm2, %v6698_v60, 0.0 }
0x13a3   :  { %5544 = vpow2.f32 %v3209_v61  ;;  %v3211_v13 = vmul.f32 1.442695, %v3208_v5  ;;  %2945 = vadd.xlane.f32.xlu1 %v2944_v30 }
0x13a4   :  { %v2953_v2 = vpop.permute.xlu1 %2952 }
0x13a5   :  { %v6703_v53 = vpop.eup %5540  ;;  %5546 = vpow2.f32 %v3211_v13 }
0x13a6   :  { %v3325_v49 = vpop.xlane.xlu0 %3324  ;;  %v3059_v35 = vsel %vm675_vm2, %v6703_v53, 0.0 }
0x13a7   :  { %v3329_v40 = vsub.f32 %v6655_v10, %v3325_v49  ;;  %3060 = vadd.xlane.f32.xlu0 %v3059_v35 }
0x13a9   :  { %v6708_v21 = vpop.eup %5542  ;;  %v3331_v28 = vmul.f32 1.442695, %v3329_v40 }
0x13aa   :  { %v3328_v8 = vpop.xlane.xlu0 %3327  ;;  %v3062_v50 = vsel %vm675_vm2, %v6708_v21, 0.0 }
0x13ab   :  { %5548 = vpow2.f32 %v3331_v28  ;;  %v3330_v14 = vsub.f32 %v6659_v1, %v3328_v8  ;;  %3063 = vadd.xlane.f32.xlu1 %v3062_v50 }
0x13ad   :  { %v6713_v32 = vpop.eup %5544  ;;  %v3333_v41 = vmul.f32 1.442695, %v3330_v14 }
0x13ae   :  { %v3450_v15 = vpop.xlane.xlu0 %3449  ;;  %v3213_v63 = vsel %vm675_vm2, %v6713_v32, 0.0 }
0x13af   :  { %v6717_v10 = vpop.eup %5546  ;;  %5550 = vpow2.f32 %v3333_v41  ;;  %3214 = vadd.xlane.f32.xlu0 %v3213_v63  ;;  %v3454_v25 = vsub.f32 %v6663_v16, %v3450_v15 }
0x13b0   :  { %v3216_v27 = vsel %vm675_vm2, %v6717_v10, 0.0 }
0x13b1   :  { %3217 = vadd.xlane.f32.xlu1 %v3216_v27  ;;  %v3456_v3 = vmul.f32 1.442695, %v3454_v25 }
0x13b2   :  { %v3453_v43 = vpop.xlane.xlu0 %3452 }
0x13b3   :  { %v3455_v44 = vsub.f32 %v6667_v4, %v3453_v43 }
0x13b5   :  { %v6722_v1 = vpop.eup %5548  ;;  %v3458_v12 = vmul.f32 1.442695, %v3455_v44 }
0x13b6   :  { %v3574_v26 = vpop.xlane.xlu0 %3573  ;;  %v3335_v56 = vsel %vm675_vm2, %v6722_v1, 0.0 }
0x13b7   :  { %5552 = vpow2.f32 %v3458_v12  ;;  %v3578_v33 = vsub.f32 %v6673_v9, %v3574_v26  ;;  %3336 = vadd.xlane.f32.xlu1 %v3335_v56 }
0x13b9   :  { %v6727_v38 = vpop.eup %5550  ;;  %v3580_v52 = vmul.f32 1.442695, %v3578_v33 }
0x13ba   :  { %v3577_v57 = vpop.xlane.xlu0 %3576  ;;  %v3338_v55 = vsel %vm675_vm2, %v6727_v38, 0.0 }
0x13bb   :  { %5554 = vpow2.f32 %v3580_v52  ;;  %v3579_v4 = vsub.f32 %v6677_v51, %v3577_v57  ;;  %3339 = vadd.xlane.f32.xlu1 %v3338_v55 }
0x13bd   :  { %v3582_v23 = vmul.f32 1.442695, %v3579_v4 }
0x13be   :  { %v2835_v36 = vpop.permute.xlu0 %2834 }
0x13bf   :  { %5556 = vpow2.f32 %v3582_v23  ;;  %5059 = vmatpush3.bf16.msra.mxu1 %v2835_v36 }
0x13c0   :  { %5072 = vmatprep.subr.bf16.mxu1 %v5647_v58  ;;  %5558 = vpow2.f32 %v3456_v3 }
0x13c1   :  { %v6733_v59 = vpop.eup %5552 }
0x13c2   :  { %v3463_v9 = vsel %vm675_vm2, %v6733_v59, 0.0 }
0x13c3   :  { %3464 = vadd.xlane.f32.xlu1 %v3463_v9 }
0x13c5   :  { %v6737_v0 = vpop.eup %5554  ;;  %3070 = vrot.lane.b32.xlu0 %v6561_v45, %s5651_s15 }
0x13c6   :  { %v3584_v51 = vsel %vm675_vm2, %v6737_v0, 0.0 }
0x13c7   :  { %3585 = vadd.xlane.f32.xlu1 %v3584_v51 }
0x13c9   :  { %v6743_v37 = vpop.eup %5556 }
0x13ca   :  { %v3587_v20 = vsel %vm675_vm2, %v6743_v37, 0.0  ;;  %v6750_v62 = vpop.eup %5558 }
0x13cb   :  { %3588 = vadd.xlane.f32.xlu1 %v3587_v20  ;;  %v3460_v45 = vsel %vm675_vm2, %v6750_v62, 0.0 }
0x13dc   :  { %3347 = vrot.lane.b32.xlu1 %v6559_v47, %s5649_s1 }
0x13e4   :  { %3461 = vadd.xlane.f32.xlu0 %v3460_v45 }
0x13fa   :  { %3471 = vrot.lane.b32.xlu0 %v6559_v47, %s5650_s14 }
0x13fe   :  { %3595 = vrot.lane.b32.xlu0 %v6559_v47, %s5651_s15 }
0x1424   :  { %v2824_v42 = vpop.xlane.xlu0 %2823 }
0x1425   :  { %5560 = vrcp.f32 %v2824_v42 }
0x1428   :  { %v2827_v16 = vpop.xlane.xlu0 %2826 }
0x1429   :  { %5562 = vrcp.f32 %v2827_v16 }
0x142c   :  { %v2943_v61 = vpop.xlane.xlu0 %2942 }
0x142d   :  { %5564 = vrcp.f32 %v2943_v61 }
0x142f   :  { %v5561_v30 = vpop.eup %5560 }
0x1430   :  { %v2946_v5 = vpop.xlane.xlu1 %2945  ;;  %v2830_v49 = vmul.f32 %v5561_v30, %v6683_v29 }
0x1431   :  { %5566 = vrcp.f32 %v2946_v5 }
0x1433   :  { %v5563_v13 = vpop.eup %5562 }
0x1434   :  { %v2831_v35 = vmul.f32 %v5563_v13, %v6688_v6  ;;  %v3061_v40 = vpop.xlane.xlu0 %3060 }
0x1435   :  { %5568 = vrcp.f32 %v3061_v40 }
0x1436   :  { %v2832_v28 = vpack.c.bf16 %v2831_v35, %v2830_v49 }
0x1437   :  { %v5565_v50 = vpop.eup %5564 }
0x1438   :  { %v3064_v8 = vpop.xlane.xlu1 %3063  ;;  %5061 = vmatmul.mubr.msk.bf16.vlgmr.msra.gmra.mrb[60].mxu1 %vm675_vm2, %v2832_v28  ;;  %v2949_v41 = vmul.f32 %v5565_v50, %v6693_v34 }
0x1439   :  { %5570 = vrcp.f32 %v3064_v8  ;;  %5073 = vmatpush3.bf16.msra.mxu1 %v2953_v2  ;;  %5074 = vmatprep.mubr.msk.bf16.mxu1 %vm5648_vm0, %v5647_v58 }
0x143a   :  { %5086 = vmatprep.subr.bf16.mxu1 %v5647_v58 }
0x143b   :  { %v5567_v14 = vpop.eup %5566 }
0x143c   :  { %v2950_v29 = vmul.f32 %v5567_v14, %v6698_v60  ;;  %v3215_v6 = vpop.xlane.xlu0 %3214 }
0x143d   :  { %5572 = vrcp.f32 %v3215_v6 }
0x143e   :  { %v3218_v15 = vpop.xlane.xlu1 %3217  ;;  %v2951_v63 = vpack.c.bf16 %v2950_v29, %v2949_v41 }
0x143f   :  { %5574 = vrcp.f32 %v3218_v15  ;;  %v5569_v43 = vpop.eup %5568 }
0x1440   :  { %5075 = vmatmul.mubr.msk.bf16.vlgmr.msra.gmra.mrb[64].mxu1 %vm675_vm2, %v2951_v63  ;;  %v3071_v27 = vpop.permute.xlu0 %3070  ;;  %v3067_v34 = vmul.f32 %v5569_v43, %v6703_v53 }
0x1441   :  { %5087 = vmatpush3.bf16.msra.mxu1 %v3071_v27  ;;  %5088 = vmatprep.mubr.msk.bf16.mxu1 %vm5648_vm0, %v5647_v58 }
0x1442   :  { %5100 = vmatprep.subr.bf16.mxu1 %v5647_v58 }
0x1443   :  { %v5571_v44 = vpop.eup %5570 }
0x1444   :  { %v3068_v60 = vmul.f32 %v5571_v44, %v6708_v21  ;;  %v3337_v12 = vpop.xlane.xlu1 %3336  ;;  %v5372_v44 = vld [vmem:[%s7071_s6 + $0x40] sm:$0xff]  }
0x1445   :  { %5148 = vmatprep.subr.bf16.mxu0 %v5372_v44 }
0x1446   :  { %v3069_v26 = vpack.c.bf16 %v3068_v60, %v3067_v34  ;;  %v5373_v34 = vld [vmem:[%s7071_s6 + $0x48] sm:$0xff]   ;;  %5149 = vmatpush3.bf16.msra.mxu0 %v5372_v44  ;;  %v5374_v60 = vld [vmem:[%s7071_s6 + $0x50] sm:$0xff]  }
0x1447   :  { %v5573_v56 = vpop.eup %5572  ;;  %5150 = vmatprep.subr.bf16.mxu0 %v5373_v34 }
0x1448   :  { %5089 = vmatmul.mubr.msk.bf16.vlgmr.msra.gmra.mrb[68].mxu1 %vm675_vm2, %v3069_v26  ;;  %v3340_v57 = vpop.xlane.xlu1 %3339  ;;  %v3221_v53 = vmul.f32 %v5573_v56, %v6713_v32 }
0x1449   :  { %v5575_v33 = vpop.eup %5574  ;;  %5101 = vmatpush3.bf16.msra.mxu1 %v6559_v47  ;;  %5102 = vmatprep.mubr.msk.bf16.mxu1 %vm5648_vm0, %v5647_v58  ;;  %5576 = vrcp.f32 %v3340_v57 }
0x144a   :  { %v3222_v52 = vmul.f32 %v5575_v33, %v6717_v10  ;;  %5114 = vmatprep.subr.bf16.mxu1 %v5647_v58  ;;  %5578 = vrcp.f32 %v3337_v12  ;;  %5151 = vmatpush3.bf16.msra.mxu0 %v5373_v34  ;;  %v5375_v33 = vld [vmem:[%s7071_s6 + $0x58] sm:$0xff]  }
0x144b   :  { %5152 = vmatprep.subr.bf16.mxu0 %v5374_v60 }
0x144c   :  { %v3223_v21 = vpack.c.bf16 %v3222_v52, %v3221_v53  ;;  %v5376_v53 = vld [vmem:[%s7071_s6 + $0x60] sm:$0xff]  }
0x144e   :  { %5153 = vmatpush3.bf16.msra.mxu0 %v5374_v60 }
0x144f   :  { %5154 = vmatprep.subr.bf16.mxu0 %v5375_v33 }
0x1450   :  { %v3465_v55 = vpop.xlane.xlu1 %3464  ;;  %5103 = vmatmul.mubr.msk.bf16.vlgmr.msra.gmra.mrb[72].mxu1 %vm675_vm2, %v3223_v21  ;;  %v5377_v21 = vld [vmem:[%s7071_s6 + $0x68] sm:$0xff]  }
0x1451   :  { %5116 = vmatprep.mubr.msk.bf16.mxu1 %vm5648_vm0, %v5647_v58  ;;  %5580 = vrcp.f32 %v3465_v55  ;;  %v5378_v55 = vld [vmem:[%s7071_s6 + $0x70] sm:$0xff]  }
0x1452   :  { %5155 = vmatpush3.bf16.msra.mxu0 %v5375_v33 }
0x1453   :  { %v5577_v4 = vpop.eup %5576  ;;  %5156 = vmatprep.subr.bf16.mxu0 %v5376_v53 }
0x1454   :  { %v3586_v47 = vpop.xlane.xlu1 %3585  ;;  %v5579_v36 = vpop.eup %5578  ;;  %v3344_v10 = vmul.f32 %v5577_v4, %v6727_v38  ;;  %v5379_v4 = vld [vmem:[%s7071_s6 + $0x78] sm:$0xff]  }
0x1455   :  { %v3343_v9 = vmul.f32 %v5579_v36, %v6722_v1 }
0x1456   :  { %5157 = vmatpush3.bf16.msra.mxu0 %v5376_v53 }
0x1457   :  { %v3345_v32 = vpack.c.bf16 %v3344_v10, %v3343_v9  ;;  %5158 = vmatprep.subr.bf16.mxu0 %v5377_v21 }
0x1458   :  { %v3589_v23 = vpop.xlane.xlu1 %3588 }
0x145a   :  { %5159 = vmatpush3.bf16.msra.mxu0 %v5377_v21 }
0x145b   :  { %v5581_v1 = vpop.eup %5580  ;;  %5160 = vmatprep.subr.bf16.mxu0 %v5378_v55 }
0x145c   :  { %v3348_v51 = vpop.permute.xlu1 %3347  ;;  %v3469_v3 = vmul.f32 %v5581_v1, %v6733_v59 }
0x145d   :  { %5115 = vmatpush3.bf16.msra.mxu1 %v3348_v51 }
0x145e   :  { %5128 = vmatprep.subr.bf16.mxu1 %v5647_v58  ;;  %5161 = vmatpush3.bf16.msra.mxu0 %v5378_v55 }
0x145f   :  { %5162 = vmatprep.subr.bf16.mxu0 %v5379_v4 }
0x1460   :  { %5117 = vmatmul.mubr.msk.bf16.vlgmr.msra.gmra.mrb[76].mxu1 %vm675_vm2, %v3345_v32 }
0x1461   :  { %5130 = vmatprep.mubr.msk.bf16.mxu1 %vm5648_vm0, %v5647_v58 }
0x1462   :  { %5163 = vmatpush3.bf16.msra.mxu0 %v5379_v4 }
0x1463   :  { %4836 = vmatprep.subr.bf16.mxu0 %v5404_v18 }
0x1471   :  { %v3462_v20 = vpop.xlane.xlu0 %3461 }
0x1472   :  { %5582 = vrcp.f32 %v3462_v20 }
0x1473   :  { %5584 = vrcp.f32 %v3589_v23 }
0x1474   :  { %5586 = vrcp.f32 %v3586_v47 }
0x1475   :  { %v3472_v25 = vpop.permute.xlu0 %3471 }
0x1476   :  { %5129 = vmatpush3.bf16.msra.mxu1 %v3472_v25 }
0x1477   :  { %5142 = vmatprep.subr.bf16.mxu1 %v5647_v58 }
0x1479   :  { %v3596_v2 = vpop.permute.xlu0 %3595 }
0x147c   :  { %v5583_v38 = vpop.eup %5582 }
0x147d   :  { %v3468_v45 = vmul.f32 %v5583_v38, %v6750_v62  ;;  %v5585_v16 = vpop.eup %5584 }
0x147e   :  { %v5587_v61 = vpop.eup %5586  ;;  %v3593_v5 = vmul.f32 %v5585_v16, %v6743_v37 }
0x147f   :  { %v3470_v42 = vpack.c.bf16 %v3469_v3, %v3468_v45  ;;  %v3592_v30 = vmul.f32 %v5587_v61, %v6737_v0 }
0x1481   :  { %5131 = vmatmul.mubr.msk.bf16.vlgmr.msra.gmra.mrb[80].mxu1 %vm675_vm2, %v3470_v42  ;;  %v3594_v13 = vpack.c.bf16 %v3593_v5, %v3592_v30 }
0x1482   :  { %5143 = vmatpush3.bf16.msra.mxu1 %v3596_v2  ;;  %5144 = vmatprep.mubr.msk.bf16.mxu1 %vm5648_vm0, %v5647_v58 }
0x1489   :  { %5145 = vmatmul.mubr.msk.bf16.vlgmr.msra.gmra.mrb[84].mxu1 %vm675_vm2, %v3594_v13 }
0x148a   :  { %4004 = vmatprep.mubr.bf16.mxu1 %v5646_v7 }
0x150b   :  { %v2874_v59 = vpop.f32.mrb[60].mxu1 }
0x150c   :  { %v5062_v62 = vpop.f32.mrb[61].mxu1 }
0x150d   :  { %v2877_v49 = vpop.f32.mrb[62].mxu1 }
0x150e   :  { %v5208_v35 = vpack.i.bf16 %v2877_v49, %v2874_v59  ;;  %v5063_v40 = vpop.f32.mrb[63].mxu1 }
0x1510   :  { %5209 = vrot.lane.b32.xlu0 %v5208_v35, %s5651_s15 }
0x1513   :  { %v2992_v28 = vpop.f32.mrb[64].mxu1 }
0x1514   :  { %v5076_v8 = vpop.f32.mrb[65].mxu1 }
0x1515   :  { %v2995_v50 = vpop.f32.mrb[66].mxu1 }
0x1516   :  { %v5213_v58 = vpack.i.bf16 %v2995_v50, %v2992_v28  ;;  %v5077_v14 = vpop.f32.mrb[67].mxu1 }
0x1518   :  { %5214 = vrot.lane.b32.xlu1 %v5213_v58, %s5650_s14 }
0x151b   :  { %v3110_v0 = vpop.f32.mrb[68].mxu1 }
0x151c   :  { %v5090_v37 = vpop.f32.mrb[69].mxu1 }
0x151d   :  { %v3113_v41 = vpop.f32.mrb[70].mxu1 }
0x151e   :  { %v5218_v29 = vpack.i.bf16 %v3113_v41, %v3110_v0  ;;  %v5091_v6 = vpop.f32.mrb[71].mxu1 }
0x1520   :  { %5219 = vrot.lane.b32.xlu1 %v5218_v29, %s5649_s1 }
0x1523   :  { %v6801_v15 = vpop.f32.mrb[72].mxu1 }
0x1524   :  { %v5104_v63 = vpop.f32.mrb[73].mxu1 }
0x1525   :  { %v6803_v27 = vpop.f32.mrb[74].mxu1 }
0x1526   :  { %v5105_v43 = vpop.f32.mrb[75].mxu1 }
0x1533   :  { %v3387_v12 = vpop.f32.mrb[76].mxu1 }
0x1534   :  { %v5118_v26 = vpop.f32.mrb[77].mxu1 }
0x1535   :  { %v3390_v56 = vpop.f32.mrb[78].mxu1 }
0x1536   :  { %v5223_v52 = vpack.i.bf16 %v3390_v56, %v3387_v12  ;;  %v5119_v57 = vpop.f32.mrb[79].mxu1  ;;  %v4566_v12 = vld [vmem:[%s7072_s7 + $0x1] ss:$0 sm:$0xff] }
0x1538   :  { %5224 = vrot.lane.b32.xlu0 %v5223_v52, %s5651_s15  ;;  %s4362_s15 = sshll.u32 %s5653_s22, 4  ;;  %s4363_s15 = int_to_ptr.vmem [resolvable:$true] %s4362_s15 }
0x1539   :  { %p5627_p1 = scmp.lt.s32.totalorder %s4363_s15, %s4363_s15 }
0x1554   :  { %v3511_v47 = vpop.f32.mrb[80].mxu1 }
0x1555   :  { %v5132_v23 = vpop.f32.mrb[81].mxu1 }
0x1556   :  { %v3514_v36 = vpop.f32.mrb[82].mxu1 }
0x1557   :  { %v5228_v10 = vpack.i.bf16 %v3514_v36, %v3511_v47  ;;  %v5133_v9 = vpop.f32.mrb[83].mxu1 }
0x1559   :  { %5229 = vrot.lane.b32.xlu0 %v5228_v10, %s5650_s14 }
0x155c   :  { %v3635_v51 = vpop.f32.mrb[84].mxu1 }
0x155d   :  { %v5146_v32 = vpop.f32.mrb[85].mxu1 }
0x155e   :  { %v3638_v20 = vpop.f32.mrb[86].mxu1 }
0x155f   :  { %v5233_v25 = vpack.i.bf16 %v3638_v20, %v3635_v51  ;;  %v5147_v1 = vpop.f32.mrb[87].mxu1 }
0x1561   :  { %5234 = vrot.lane.b32.xlu1 %v5233_v25, %s5649_s1 }
0x1582   :  { %v5210_v38 = vpop.permute.xlu0 %5209 }
0x1583   :  { %v5212_v45 = vunpack.i.h.bf16 %v5210_v38  ;;  %v5211_v42 = vunpack.i.l.bf16 %v5210_v38 }
0x1585   :  { %v3142_v5 = vsel %vm630_vm1, %v6633_v24, %v5212_v45  ;;  %v3141_v30 = vsel %vm630_vm1, %v6631_v46, %v5211_v42 }
0x158a   :  { %v5215_v3 = vpop.permute.xlu1 %5214 }
0x158b   :  { %v5217_v16 = vunpack.i.h.bf16 %v5215_v3  ;;  %v5216_v2 = vunpack.i.l.bf16 %v5215_v3 }
0x158d   :  { %v3143_v62 = vsel %vm1125_vm3, %v3141_v30, %v5216_v2  ;;  %v3144_v49 = vsel %vm1125_vm3, %v3142_v5, %v5217_v16  ;;  %v5388_v5 = vld [vmem:[%s7073_s8 + $0xa4] ss:$8 sps:$4 sm:$0xff]   ;;  %v5386_v30 = vld [vmem:[%s7073_s8 + $0xa0] ss:$8 sps:$4 sm:$0xff]  }
0x1592   :  { %v5220_v61 = vpop.permute.xlu1 %5219 }
0x1593   :  { %v5222_v13 = vunpack.i.h.bf16 %v5220_v61  ;;  %v5221_v59 = vunpack.i.l.bf16 %v5220_v61 }
0x1595   :  { %v3145_v35 = vsel %vm1128_vm4, %v3143_v62, %v5221_v59  ;;  %v3146_v40 = vsel %vm1128_vm4, %v3144_v49, %v5222_v13  ;;  %v5391_v13 = vld [vmem:[%s7073_s8 + $0xb4] ss:$8 sps:$4 sm:$0xff]   ;;  %v5389_v59 = vld [vmem:[%s7073_s8 + $0xb0] ss:$8 sps:$4 sm:$0xff]   ;;  %v5394_v62 = vld [vmem:[%s7073_s8 + $0xc4] ss:$8 sps:$4 sm:$0xff]  }
0x1596   :  { %v3672_v28 = vpack.c.bf16 %v3146_v40, %v3145_v35  ;;  %v5392_v49 = vld [vmem:[%s7073_s8 + $0xc0] ss:$8 sps:$4 sm:$0xff]   ;;  %v5397_v35 = vld [vmem:[%s7073_s8 + $0xd4] ss:$8 sps:$4 sm:$0xff]   ;;  %v5395_v40 = vld [vmem:[%s7073_s8 + $0xd0] ss:$8 sps:$4 sm:$0xff]  }
0x1598   :  { %5164 = vmatprep.mubr.bf16.mxu0 %v3672_v28  ;;  %v5400_v28 = vld [vmem:[%s7073_s8 + $0xe4] ss:$8 sps:$4 sm:$0xff]  }
0x15aa   :  { %v5225_v8 = vpop.permute.xlu0 %5224 }
0x15ab   :  { %v5227_v58 = vunpack.i.h.bf16 %v5225_v8  ;;  %v5226_v14 = vunpack.i.l.bf16 %v5225_v8  ;;  %v5398_v8 = vld [vmem:[%s7073_s8 + $0xe0] ss:$8 sps:$4 sm:$0xff]  }
0x15ad   :  { %v3667_v46 = vsel %vm630_vm1, %v6803_v27, %v5227_v58  ;;  %v3666_v41 = vsel %vm630_vm1, %v6801_v15, %v5226_v14  ;;  %v5401_v58 = vld [vmem:[%s7073_s8 + $0xf0] ss:$8 sps:$4 sm:$0xff]  }
0x15cb   :  { %v5230_v50 = vpop.permute.xlu0 %5229 }
0x15cc   :  { %v5232_v24 = vunpack.i.h.bf16 %v5230_v50  ;;  %v5231_v0 = vunpack.i.l.bf16 %v5230_v50  ;;  %v5403_v50 = vld [vmem:[%s7073_s8 + $0xf4] ss:$8 sps:$4 sm:$0xff]  }
0x15ce   :  { %v3668_v63 = vsel %vm1125_vm3, %v3666_v41, %v5231_v0  ;;  %v3669_v43 = vsel %vm1125_vm3, %v3667_v46, %v5232_v24 }
0x15d3   :  { %v5235_v37 = vpop.permute.xlu1 %5234 }
0x15d4   :  { %v5237_v29 = vunpack.i.h.bf16 %v5235_v37  ;;  %v5236_v6 = vunpack.i.l.bf16 %v5235_v37 }
0x15d6   :  { %v3670_v44 = vsel %vm1128_vm4, %v3668_v63, %v5236_v6  ;;  %v3671_v34 = vsel %vm1128_vm4, %v3669_v43, %v5237_v29 }
0x15d7   :  { %v3673_v60 = vpack.c.bf16 %v3671_v34, %v3670_v44 }
0x15d9   :  { %5165 = vmatmul.mubr.bf16.vlgmr.msra.gmra.mrb[92].mxu0 %v3673_v60  ;;  %v5621_v60 = vld [vmem:[%s7068_s3 + $0x4] sm:$0xf] }
0x16ac   :  { %v5166_v27 = vpop.f32.mrb[92].mxu0 }
0x16ad   :  { %v3781_v26 = vpop.f32.mrb[93].mxu0  ;;  %v3790_v52 = vadd.f32 %v5166_v27, %v4566_v12 }
0x16ae   :  { %v3782_v56 = vadd.f32 %v4566_v12, %v3781_v26  ;;  %v5167_v15 = vpop.f32.mrb[94].mxu0 }
0x16af   :  { %v3784_v33 = vpop.f32.mrb[95].mxu0  ;;  %v6859_v55 = vadd.f32 %v3790_v52, %v6434_v54  ;;  %v3793_v47 = vadd.f32 %v5167_v15, %v4566_v12  ;;  %v5385_v54 = vld [vmem:[%s7073_s8 + $0x94] ss:$8 sps:$4 sm:$0xff]   ;;  %v3855_v52 = vrot.slane %v5621_v60, %v1836_v11  ;;  %v5405_v11 = vld [vmem:[%s7075_s10 + $0x80] sm:$0xff]  }
0x16b0   :  { %v6852_v57 = vadd.f32 %v3782_v56, %v6426_v39  ;;  %v3785_v53 = vadd.f32 %v4566_v12, %v3784_v33  ;;  %v5380_v39 = vld [vmem:[%s7073_s8 + $0x80] ss:$8 sps:$4 sm:$0xff]   ;;  %v3847_v12 = vrot.slane %v5621_v60, %v5937_v17  ;;  %4837 = vmatpush3.bf16.msra.mxu0 %v5405_v11 }
0x16b1   :  { %v6864_v4 = vadd.f32 %v3793_v47, %v6438_v48  ;;  %v5383_v48 = vld [vmem:[%s7073_s8 + $0x90] ss:$8 sps:$4 sm:$0xff]  }
0x16b2   :  { %v6855_v21 = vadd.f32 %v3785_v53, %v6430_v19  ;;  %3800 = vadd.xlane.f32.xlu0 %v6852_v57  ;;  %v5382_v19 = vld [vmem:[%s7073_s8 + $0x84] ss:$8 sps:$4 sm:$0xff]  }
0x16b3   :  { %3972 = vmatprep.subr.bf16.mxu1 %v5382_v19 }
0x16b4   :  { %3802 = vadd.xlane.f32.xlu1 %v6855_v21  ;;  %3973 = vmatpush1.bf16.msra.mxu1 %v5380_v39 }
0x16b5   :  { %3974 = vmatprep.subr.bf16.mxu1 %v5385_v54 }
0x16b6   :  { %3804 = vadd.xlane.f32.xlu0 %v6859_v55 }
0x16b8   :  { %3975 = vmatpush1.bf16.msra.mxu1 %v5383_v48 }
0x16b9   :  { %3976 = vmatprep.subr.bf16.mxu1 %v5388_v5  ;;  %v5417_v5 = vld [vmem:[%s7075_s10 + $0xb0] sm:$0xff]  }
0x16ba   :  { %3806 = vadd.xlane.f32.xlu0 %v6864_v4 }
0x16bc   :  { %3977 = vmatpush1.bf16.msra.mxu1 %v5386_v30  ;;  %v5418_v30 = vld [vmem:[%s7075_s10 + $0xf8] sm:$0xff]  }
0x16bd   :  { %3978 = vmatprep.subr.bf16.mxu1 %v5391_v13  ;;  %v5419_v13 = vld [vmem:[%s7075_s10 + $0xb8] sm:$0xff]  }
0x16c0   :  { %3979 = vmatpush1.bf16.msra.mxu1 %v5389_v59  ;;  %v4591_v59 = vld [vmem:[%s7074_s9 + $0x2] sm:$0x3] }
0x16c1   :  { %3980 = vmatprep.subr.bf16.mxu1 %v5394_v62  ;;  %v3885_v62 = vrot.slane %v4591_v59, %v5885_v22 }
0x16c4   :  { %3981 = vmatpush1.bf16.msra.mxu1 %v5392_v49  ;;  %v3889_v49 = vrot.slane %v4591_v59, %v5893_v31 }
0x16c5   :  { %3982 = vmatprep.subr.bf16.mxu1 %v5397_v35 }
0x16c8   :  { %3983 = vmatpush1.bf16.msra.mxu1 %v5395_v40 }
0x16c9   :  { %3984 = vmatprep.subr.bf16.mxu1 %v5400_v28 }
0x16cc   :  { %3985 = vmatpush1.bf16.msra.mxu1 %v5398_v8 }
0x16cd   :  { %3986 = vmatprep.subr.bf16.mxu1 %v5403_v50 }
0x16d0   :  { %3987 = vmatpush1.bf16.msra.mxu1 %v5401_v58 }
0x173f   :  { %v3801_v23 = vpop.xlane.xlu0 %3800 }
0x1740   :  { %v3808_v36 = vmul.f32 0.0078125, %v3801_v23 }
0x1741   :  { %v3803_v10 = vpop.xlane.xlu1 %3802 }
0x1742   :  { %v3812_v9 = vsub.f32 %v6852_v57, %v3808_v36  ;;  %v3809_v51 = vmul.f32 0.0078125, %v3803_v10 }
0x1743   :  { %v3805_v32 = vpop.xlane.xlu0 %3804 }
0x1744   :  { %v3813_v20 = vsub.f32 %v6855_v21, %v3809_v51  ;;  %v3810_v25 = vmul.f32 0.0078125, %v3805_v32  ;;  %v3816_v1 = vmul.f32 %v3812_v9, %v3812_v9 }
0x1746   :  { %v6882_v38 = vsub.f32 %v6859_v55, %v3810_v25  ;;  %3820 = vadd.xlane.f32.xlu0 %v3816_v1  ;;  %v3817_v3 = vmul.f32 %v3813_v20, %v3813_v20  ;;  %v5408_v25 = vld [vmem:[%s7075_s10 + $0xd0] sm:$0xff]  }
0x1747   :  { %v3807_v45 = vpop.xlane.xlu0 %3806  ;;  %v5409_v1 = vld [vmem:[%s7075_s10 + $0x90] sm:$0xff]  }
0x1748   :  { %v3811_v42 = vmul.f32 0.0078125, %v3807_v45  ;;  %3822 = vadd.xlane.f32.xlu1 %v3817_v3  ;;  %v3818_v16 = vmul.f32 %v6882_v38, %v6882_v38  ;;  %v5411_v3 = vld [vmem:[%s7075_s10 + $0x98] sm:$0xff]   ;;  %v5412_v45 = vld [vmem:[%s7075_s10 + $0xe0] sm:$0xff]  }
0x174a   :  { %v3815_v2 = vsub.f32 %v6864_v4, %v3811_v42  ;;  %3824 = vadd.xlane.f32.xlu0 %v3818_v16  ;;  %v5413_v42 = vld [vmem:[%s7075_s10 + $0xa0] sm:$0xff]   ;;  %v5414_v16 = vld [vmem:[%s7075_s10 + $0xe8] sm:$0xff]  }
0x174c   :  { %v3819_v61 = vmul.f32 %v3815_v2, %v3815_v2 }
0x174e   :  { %3826 = vadd.xlane.f32.xlu1 %v3819_v61  ;;  %v5416_v61 = vld [vmem:[%s7075_s10 + $0xf0] sm:$0xff]  }
0x17d3   :  { %v3821_v14 = vpop.xlane.xlu0 %3820 }
0x17d4   :  { %v3828_v24 = vmul.f32 0.0078125, %v3821_v14 }
0x17d5   :  { %v3823_v0 = vpop.xlane.xlu1 %3822 }
0x17d6   :  { %v3832_v37 = vadd.f32 1e-06, %v3828_v24  ;;  %v3829_v46 = vmul.f32 0.0078125, %v3823_v0 }
0x17d7   :  { %v3825_v41 = vpop.xlane.xlu0 %3824 }
0x17d8   :  { %5588 = vrsqrt.f32 %v3832_v37  ;;  %v3833_v29 = vadd.f32 1e-06, %v3829_v46  ;;  %v3830_v6 = vmul.f32 0.0078125, %v3825_v41 }
0x17da   :  { %5590 = vrsqrt.f32 %v3833_v29  ;;  %v3834_v63 = vadd.f32 1e-06, %v3830_v6 }
0x17db   :  { %v3827_v43 = vpop.xlane.xlu1 %3826 }
0x17dc   :  { %5592 = vrsqrt.f32 %v3834_v63  ;;  %v3831_v44 = vmul.f32 0.0078125, %v3827_v43 }
0x17de   :  { %v3835_v34 = vadd.f32 1e-06, %v3831_v44 }
0x17e0   :  { %5594 = vrsqrt.f32 %v3835_v34 }
0x17e2   :  { %v5589_v27 = vpop.eup %5588 }
0x17e3   :  { %v3840_v26 = vmul.f32 %v5589_v27, %v3812_v9 }
0x17e4   :  { %v5591_v56 = vpop.eup %5590 }
0x17e5   :  { %v3841_v15 = vmul.f32 %v5591_v56, %v3813_v20  ;;  %v3848_v33 = vmul.f32 %v3847_v12, %v3840_v26  ;;  %v5406_v20 = vld [vmem:[%s7075_s10 + $0xc8] sm:$0xff]  }
0x17e6   :  { %v5593_v53 = vpop.eup %5592  ;;  %4838 = vmatprep.subr.bf16.mxu0 %v5406_v20 }
0x17e7   :  { %v3849_v47 = vmul.f32 %v3847_v12, %v3841_v15  ;;  %v3856_v39 = vadd.f32 %v3855_v52, %v3848_v33  ;;  %v3842_v54 = vmul.f32 %v5593_v53, %v6882_v38  ;;  %v5410_v38 = vld [vmem:[%s7075_s10 + $0xd8] sm:$0xff]  }
0x17e9   :  { %v3857_v19 = vadd.f32 %v3855_v52, %v3849_v47  ;;  %v3850_v10 = vmul.f32 %v3847_v12, %v3842_v54 }
0x17ea   :  { %v5595_v48 = vpop.eup %5594 }
0x17eb   :  { %v3860_v23 = vpack.c.bf16 %v3857_v19, %v3856_v39  ;;  %v3843_v36 = vmul.f32 %v5595_v48, %v3815_v2  ;;  %v3858_v51 = vadd.f32 %v3855_v52, %v3850_v10  ;;  %v5415_v2 = vld [vmem:[%s7075_s10 + $0xa8] sm:$0xff]  }
0x17ed   :  { %4005 = vmatmul.mubr.bf16.vlgmr.msra.gmra.mrb[88].mxu1 %v3860_v23  ;;  %v3851_v17 = vmul.f32 %v3847_v12, %v3843_v36 }
0x17ee   :  { %4014 = vmatprep.mubr.bf16.mxu1 %v5646_v7  ;;  %v5407_v7 = vld [vmem:[%s7075_s10 + $0x88] sm:$0xff]  }
0x17ef   :  { %v3859_v9 = vadd.f32 %v3855_v52, %v3851_v17  ;;  %4839 = vmatpush3.bf16.msra.mxu0 %v5407_v7 }
0x17f0   :  { %4840 = vmatprep.subr.bf16.mxu0 %v5408_v25 }
0x17f1   :  { %v3861_v32 = vpack.c.bf16 %v3859_v9, %v3858_v51 }
0x17f3   :  { %4841 = vmatpush3.bf16.msra.mxu0 %v5409_v1 }
0x17f4   :  { %4842 = vmatprep.subr.bf16.mxu0 %v5410_v38 }
0x17f5   :  { %4015 = vmatmul.mubr.bf16.gmra.mrb[92].mxu1 %v3861_v32 }
0x17f7   :  { %4843 = vmatpush3.bf16.msra.mxu0 %v5411_v3 }
0x17f8   :  { %4844 = vmatprep.subr.bf16.mxu0 %v5412_v45 }
0x17fb   :  { %4845 = vmatpush3.bf16.msra.mxu0 %v5413_v42 }
0x17fc   :  { %4846 = vmatprep.subr.bf16.mxu0 %v5414_v16 }
0x17ff   :  { %4847 = vmatpush3.bf16.msra.mxu0 %v5415_v2 }
0x1800   :  { %4848 = vmatprep.subr.bf16.mxu0 %v5416_v61 }
0x1803   :  { %4849 = vmatpush3.bf16.msra.mxu0 %v5417_v5 }
0x1804   :  { %4850 = vmatprep.subr.bf16.mxu0 %v5418_v30 }
0x1807   :  { %4851 = vmatpush3.bf16.msra.mxu0 %v5419_v13 }
0x18c0   :  { %v4006_v35 = vpop.f32.mrb[88].mxu1 }
0x18c1   :  { %v6984_v40 = vadd.f32 %v4006_v35, %v3885_v62  ;;  %v4008_v28 = vpop.f32.mrb[89].mxu1 }
0x18c2   :  { %v6986_v8 = vadd.f32 %v4008_v28, %v3889_v49  ;;  %v4010_v50 = vpop.f32.mrb[90].mxu1 }
0x18c3   :  { %v4025_v58 = vmul.f32 %v6984_v40, %v6984_v40  ;;  %v6990_v14 = vadd.f32 %v4010_v50, %v3885_v62  ;;  %v4012_v24 = vpop.f32.mrb[91].mxu1 }
0x18c4   :  { %v4026_v0 = vmul.f32 %v6986_v8, %v6986_v8  ;;  %v6994_v37 = vadd.f32 %v4012_v24, %v3889_v49 }
0x18c5   :  { %v4033_v22 = vmul.f32 %v4025_v58, %v6984_v40  ;;  %v4027_v31 = vmul.f32 %v6990_v14, %v6990_v14 }
0x18c6   :  { %v4034_v46 = vmul.f32 %v4026_v0, %v6986_v8  ;;  %v4028_v41 = vmul.f32 %v6994_v37, %v6994_v37 }
0x18c7   :  { %v4041_v29 = vmul.f32 0.044715, %v4033_v22  ;;  %v4035_v6 = vmul.f32 %v4027_v31, %v6990_v14 }
0x18c8   :  { %v4042_v63 = vmul.f32 0.044715, %v4034_v46  ;;  %v4036_v43 = vmul.f32 %v4028_v41, %v6994_v37  ;;  %v4016_v44 = vpop.f32.mrb[92].mxu1 }
0x18c9   :  { %v4049_v34 = vadd.f32 %v4041_v29, %v6984_v40  ;;  %v4043_v60 = vmul.f32 0.044715, %v4035_v6  ;;  %v7005_v12 = vadd.f32 %v4016_v44, %v3885_v62  ;;  %v4018_v27 = vpop.f32.mrb[93].mxu1 }
0x18ca   :  { %v4050_v26 = vadd.f32 %v4042_v63, %v6986_v8  ;;  %v4044_v56 = vmul.f32 0.044715, %v4036_v43  ;;  %v7008_v15 = vadd.f32 %v4018_v27, %v3889_v49  ;;  %v4020_v33 = vpop.f32.mrb[94].mxu1 }
0x18cb   :  { %v4057_v52 = vmul.f32 0.7978846, %v4049_v34  ;;  %v4051_v53 = vadd.f32 %v4043_v60, %v6990_v14  ;;  %v4029_v47 = vmul.f32 %v7005_v12, %v7005_v12  ;;  %v7013_v39 = vadd.f32 %v4020_v33, %v3885_v62  ;;  %v4022_v19 = vpop.f32.mrb[95].mxu1 }
0x18cc   :  { %v4058_v54 = vmul.f32 0.7978846, %v4050_v26  ;;  %v4052_v48 = vadd.f32 %v4044_v56, %v6994_v37  ;;  %v4030_v23 = vmul.f32 %v7008_v15, %v7008_v15  ;;  %v7018_v36 = vadd.f32 %v4022_v19, %v3889_v49 }
0x18cd   :  { %5596 = vtanh.f32 %v4057_v52  ;;  %v4059_v10 = vmul.f32 0.7978846, %v4051_v53  ;;  %v4037_v17 = vmul.f32 %v4029_v47, %v7005_v12  ;;  %v4031_v9 = vmul.f32 %v7013_v39, %v7013_v39 }
0x18ce   :  { %5598 = vtanh.f32 %v4058_v54  ;;  %v4060_v51 = vmul.f32 0.7978846, %v4052_v48  ;;  %v4038_v32 = vmul.f32 %v4030_v23, %v7008_v15  ;;  %v4032_v18 = vmul.f32 %v7018_v36, %v7018_v36 }
0x18cf   :  { %5600 = vtanh.f32 %v4059_v10  ;;  %v4045_v11 = vmul.f32 0.044715, %v4037_v17  ;;  %v4039_v20 = vmul.f32 %v4031_v9, %v7013_v39  ;;  %v4641_v17 = vld [vmem:[%s7076_s11 + $0x1] ss:$0 sm:$0xff] }
0x18d0   :  { %5602 = vtanh.f32 %v4060_v51  ;;  %v4046_v7 = vmul.f32 0.044715, %v4038_v32  ;;  %v4040_v25 = vmul.f32 %v4032_v18, %v7018_v36 }
0x18d1   :  { %v4053_v1 = vadd.f32 %v4045_v11, %v7005_v12  ;;  %v4047_v38 = vmul.f32 0.044715, %v4039_v20 }
0x18d2   :  { %v4054_v3 = vadd.f32 %v4046_v7, %v7008_v15  ;;  %v4048_v45 = vmul.f32 0.044715, %v4040_v25 }
0x18d3   :  { %v4061_v42 = vmul.f32 0.7978846, %v4053_v1  ;;  %v4055_v16 = vadd.f32 %v4047_v38, %v7013_v39 }
0x18d4   :  { %v4062_v2 = vmul.f32 0.7978846, %v4054_v3  ;;  %v4056_v61 = vadd.f32 %v4048_v45, %v7018_v36 }
0x18d5   :  { %5604 = vtanh.f32 %v4061_v42  ;;  %v4063_v5 = vmul.f32 0.7978846, %v4055_v16 }
0x18d6   :  { %5606 = vtanh.f32 %v4062_v2  ;;  %v4064_v30 = vmul.f32 0.7978846, %v4056_v61 }
0x18d7   :  { %v5597_v13 = vpop.eup %5596  ;;  %5608 = vtanh.f32 %v4063_v5 }
0x18d8   :  { %v5599_v59 = vpop.eup %5598  ;;  %v4073_v62 = vadd.f32 1.0, %v5597_v13  ;;  %5610 = vtanh.f32 %v4064_v30 }
0x18d9   :  { %v5601_v49 = vpop.eup %5600  ;;  %v4074_v35 = vadd.f32 1.0, %v5599_v59 }
0x18da   :  { %v5603_v28 = vpop.eup %5602  ;;  %v4081_v50 = vmul.f32 0.5, %v4073_v62  ;;  %v4075_v58 = vadd.f32 1.0, %v5601_v49 }
0x18db   :  { %v4076_v24 = vadd.f32 1.0, %v5603_v28  ;;  %v4082_v0 = vmul.f32 0.5, %v4074_v35 }
0x18dc   :  { %v4083_v22 = vmul.f32 0.5, %v4075_v58  ;;  %v4089_v46 = vmul.f32 %v4081_v50, %v6984_v40 }
0x18dd   :  { %v4084_v31 = vmul.f32 0.5, %v4076_v24  ;;  %v4090_v6 = vmul.f32 %v4082_v0, %v6986_v8 }
0x18de   :  { %v4091_v41 = vmul.f32 %v4083_v22, %v6990_v14 }
0x18df   :  { %v5605_v29 = vpop.eup %5604  ;;  %v4092_v63 = vmul.f32 %v4084_v31, %v6994_v37 }
0x18e0   :  { %v5607_v43 = vpop.eup %5606  ;;  %v4097_v44 = vpack.c.bf16 %v4091_v41, %v4089_v46  ;;  %v4077_v34 = vadd.f32 1.0, %v5605_v29 }
0x18e1   :  { %v5609_v60 = vpop.eup %5608  ;;  %v4098_v27 = vpack.c.bf16 %v4092_v63, %v4090_v6  ;;  %v4078_v26 = vadd.f32 1.0, %v5607_v43 }
0x18e2   :  { %v5611_v56 = vpop.eup %5610  ;;  %v4079_v33 = vadd.f32 1.0, %v5609_v60  ;;  %v4085_v52 = vmul.f32 0.5, %v4077_v34 }
0x18e3   :  { %4270 = vmatprep.mubr.bf16.mxu0 %v4098_v27  ;;  %v4080_v53 = vadd.f32 1.0, %v5611_v56  ;;  %v4086_v47 = vmul.f32 0.5, %v4078_v26  ;;  %v4658_v26 = vld [vmem:[%s7077_s12] ss:$0 sm:$0xff] }
0x18e4   :  { %4271 = vmatmul.mubr.bf16.vlgmr.msra.gmra.mrb[96].mxu0 %v4097_v44  ;;  %v4087_v40 = vmul.f32 0.5, %v4079_v33  ;;  %v4093_v19 = vmul.f32 %v4085_v52, %v7005_v12  ;;  %v4659_v52 = vld [vmem:[%s7077_s12 + $0x1] ss:$0 sm:$0xff]  ;;  %s5622_s12 = scalar_lea.vmem %s4363_s15, 512 }
0x18e5   :  { %v4088_v14 = vmul.f32 0.5, %v4080_v53  ;;  %v4094_v37 = vmul.f32 %v4086_v47, %v7008_v15  ;;  %p5623_p0 = scmp.ne.s32.totalorder %s4363_s15, %s5622_s12  ;;  %p5628_p2 = scmp.lt.s32.totalorder %s5622_s12, %s5622_s12 }
0x18e6   :  { %v4095_v8 = vmul.f32 %v4087_v40, %v7013_v39 }
0x18e7   :  { %v4096_v54 = vmul.f32 %v4088_v14, %v7018_v36  ;;  %p5629_p3 = por %p5628_p2, %p5627_p1 }
0x18e8   :  { %v4099_v48 = vpack.c.bf16 %v4095_v8, %v4093_v19 }
0x18e9   :  { %v4100_v23 = vpack.c.bf16 %v4096_v54, %v4094_v37  ;;  %p5630_p4 = pnand %p5629_p3, %p5623_p0 }
0x18eb   :  { %4278 = vmatprep.mubr.bf16.mxu0 %v4100_v23 }
0x18ec   :  { %4279 = vmatmul.mubr.bf16.gmra.mrb[100].mxu0 %v4099_v48 }
0x19b7   :  { %v4852_v10 = vpop.f32.mrb[96].mxu0 }
0x19b8   :  { %v4853_v9 = vpop.f32.mrb[97].mxu0 }
0x19b9   :  { %v4854_v51 = vadd.f32 %v4853_v9, %v4852_v10  ;;  %v4855_v32 = vpop.f32.mrb[98].mxu0 }
0x19ba   :  { %v4856_v18 = vpop.f32.mrb[99].mxu0 }
0x19bb   :  { %v4273_v12 = vadd.f32 %v4854_v51, %v4641_v17  ;;  %v4857_v11 = vadd.f32 %v4856_v18, %v4855_v32 }
0x19bd   :  { %v4276_v39 = vadd.f32 %v4857_v11, %v4641_v17  ;;  %v4287_v15 = vadd.f32 %v4273_v12, %v6852_v57 }
0x19bf   :  { %4293 = vadd.xlane.f32.xlu0 %v4287_v15  ;;  %v4858_v36 = vpop.f32.mrb[100].mxu0  ;;  %v4288_v20 = vadd.f32 %v4276_v39, %v6855_v21 }
0x19c0   :  { %v4859_v7 = vpop.f32.mrb[101].mxu0 }
0x19c1   :  { %v4860_v25 = vadd.f32 %v4859_v7, %v4858_v36  ;;  %4295 = vadd.xlane.f32.xlu1 %v4288_v20  ;;  %v4861_v1 = vpop.f32.mrb[102].mxu0 }
0x19c2   :  { %v4862_v38 = vpop.f32.mrb[103].mxu0 }
0x19c3   :  { %v4281_v3 = vadd.f32 %v4860_v25, %v4641_v17  ;;  %v4863_v45 = vadd.f32 %v4862_v38, %v4861_v1 }
0x19c5   :  { %v4284_v42 = vadd.f32 %v4863_v45, %v4641_v17  ;;  %v4289_v16 = vadd.f32 %v4281_v3, %v6859_v55 }
0x19c7   :  { %4297 = vadd.xlane.f32.xlu0 %v4289_v16  ;;  %v4290_v2 = vadd.f32 %v4284_v42, %v6864_v4 }
0x19c9   :  { %4299 = vadd.xlane.f32.xlu1 %v4290_v2 }
0x1a4c   :  { %v4294_v61 = vpop.xlane.xlu0 %4293 }
0x1a4d   :  { %v4301_v57 = vmul.f32 0.0078125, %v4294_v61 }
0x1a4e   :  { %v4296_v5 = vpop.xlane.xlu1 %4295 }
0x1a4f   :  { %v4305_v30 = vsub.f32 %v4287_v15, %v4301_v57  ;;  %v4302_v13 = vmul.f32 0.0078125, %v4296_v5 }
0x1a51   :  { %v4306_v21 = vsub.f32 %v4288_v20, %v4302_v13  ;;  %v4309_v59 = vmul.f32 %v4305_v30, %v4305_v30 }
0x1a53   :  { %4313 = vadd.xlane.f32.xlu0 %v4309_v59  ;;  %v4310_v62 = vmul.f32 %v4306_v21, %v4306_v21 }
0x1a54   :  { %v4298_v49 = vpop.xlane.xlu0 %4297 }
0x1a55   :  { %v4303_v35 = vmul.f32 0.0078125, %v4298_v49  ;;  %4315 = vadd.xlane.f32.xlu1 %v4310_v62 }
0x1a56   :  { %v4300_v28 = vpop.xlane.xlu1 %4299 }
0x1a57   :  { %v4307_v50 = vsub.f32 %v4289_v16, %v4303_v35  ;;  %v4304_v58 = vmul.f32 0.0078125, %v4300_v28 }
0x1a59   :  { %v4308_v55 = vsub.f32 %v4290_v2, %v4304_v58  ;;  %v4311_v24 = vmul.f32 %v4307_v50, %v4307_v50 }
0x1a5b   :  { %4317 = vadd.xlane.f32.xlu0 %v4311_v24  ;;  %v4312_v4 = vmul.f32 %v4308_v55, %v4308_v55 }
0x1a5d   :  { %4319 = vadd.xlane.f32.xlu1 %v4312_v4 }
0x1ae0   :  { %v4314_v0 = vpop.xlane.xlu0 %4313 }
0x1ae1   :  { %v4321_v22 = vmul.f32 0.0078125, %v4314_v0 }
0x1ae2   :  { %v4316_v31 = vpop.xlane.xlu1 %4315 }
0x1ae3   :  { %v4325_v46 = vadd.f32 1e-06, %v4321_v22  ;;  %v4322_v41 = vmul.f32 0.0078125, %v4316_v31 }
0x1ae5   :  { %5612 = vrsqrt.f32 %v4325_v46  ;;  %v4326_v29 = vadd.f32 1e-06, %v4322_v41 }
0x1ae7   :  { %5614 = vrsqrt.f32 %v4326_v29 }
0x1ae8   :  { %v4318_v6 = vpop.xlane.xlu0 %4317 }
0x1ae9   :  { %v4323_v63 = vmul.f32 0.0078125, %v4318_v6 }
0x1aea   :  { %v4320_v43 = vpop.xlane.xlu1 %4319 }
0x1aeb   :  { %v4327_v44 = vadd.f32 1e-06, %v4323_v63  ;;  %v4324_v34 = vmul.f32 0.0078125, %v4320_v43 }
0x1aed   :  { %5616 = vrsqrt.f32 %v4327_v44  ;;  %v4328_v60 = vadd.f32 1e-06, %v4324_v34 }
0x1aef   :  { %v5613_v27 = vpop.eup %5612  ;;  %5618 = vrsqrt.f32 %v4328_v60 }
0x1af0   :  { %v4333_v56 = vmul.f32 %v5613_v27, %v4305_v30 }
0x1af1   :  { %v5615_v33 = vpop.eup %5614 }
0x1af2   :  { %v4341_v53 = vmul.f32 %v4658_v26, %v4333_v56  ;;  %v4334_v47 = vmul.f32 %v5615_v33, %v4306_v21 }
0x1af4   :  { %v4342_v40 = vmul.f32 %v4658_v26, %v4334_v47  ;;  %v4349_v14 = vadd.f32 %v4659_v52, %v4341_v53 }
0x1af6   :  { %v4350_v19 = vadd.f32 %v4659_v52, %v4342_v40  ;;  %4353 = vst [vmem:[#allocation2] sm:$0xff] %v4349_v14 }
0x1af7   :  { %v5617_v8 = vpop.eup %5616 }
0x1af8   :  { %v4335_v37 = vmul.f32 %v5617_v8, %v4307_v50  ;;  %4354 = vst [vmem:[#allocation2 + $0x8] sm:$0xff] %v4350_v19 }
0x1af9   :  { %v5619_v54 = vpop.eup %5618 }
0x1afa   :  { %v4343_v48 = vmul.f32 %v4658_v26, %v4335_v37  ;;  %v4336_v23 = vmul.f32 %v5619_v54, %v4308_v55 }
0x1afc   :  { %v4351_v10 = vadd.f32 %v4659_v52, %v4343_v48  ;;  %v4344_v17 = vmul.f32 %v4658_v26, %v4336_v23 }
0x1afe   :  { %4355 = vst [vmem:[#allocation2 + $0x10] sm:$0xff] %v4351_v10  ;;  %v4352_v9 = vadd.f32 %v4659_v52, %v4344_v17 }
0x1b00   :  { %4356 = vst [vmem:[#allocation2 + $0x18] sm:$0xff] %v4352_v9 }
0x1b01   :  { %5633 = shalt.err (!%p5630_p4)
}
0x1b02   :  { %s5634_s1 = scalar_lea.hbm %s7078_s13, 512 }
0x1b03   :  { %p5635_p5 = scmp.ne.s32.totalorder %s7078_s13, %s5634_s1  ;;  %p5638_p6 = scmp.lt.u32.totalorder %s5634_s1, %s7078_s13 }
0x1b05   :  { %p5640_p7 = pnand %p5638_p6, %p5635_p5 }
0x1b07   :  { %5643 = shalt.err (!%p5640_p7)
}
0x1b08   :  { %s5654_s4 = smov 128   ;;  %s5655_s2 = smov 8  }
0x1b09   :  { %4368 = dma.vmem_to_hbm [thread:$0]  %s4363_s15, 512, %s7078_s13, [#allocation3], %s5654_s4, %s5654_s4, %s5655_s2  }
0x1b0a   :  { %5644 = dma.done.wait [#allocation3], 512  }
0x1b0b   :  { %5645 = vsyncadd [#allocation3], 4294966784 }
0x1b0c   :  { %4372 = vsyncpa [#allocation3], 1 }

</bundles_post_ra>
